<compile_context>
chip_gen: v6e
topology: v6e:2x2x1
jax: 0.10.0
libtpu: 0.0.40
codegen_flags: <defaults>
</compile_context>

<pallas_src>
import jax
import jax.numpy as jnp
from jax import lax
from jax.experimental import pallas as pl
from jax.experimental.pallas import tpu as pltpu


def _round_up(x, m):
    return (x + m - 1) // m * m


def _tpu_kind():
    try:
        return jax.devices()[0].device_kind.lower()
    except Exception:
        return ""


def _vmem_budget_bytes(kind):
    """Safe per-kernel VMEM budget: ~75% of physical (48 MiB v7x, 96 MiB v5e/v6e)."""
    cap = 0
    try:
        info = pltpu.get_tpu_info()
        cap = int(getattr(info, "vmem_capacity_bytes", 0) or 0)
    except Exception:
        cap = 0
    if not cap:
        cap = (64 << 20) if ("v7" in kind or "7x" in kind) else (128 << 20)
    return (cap * 3) // 4


def _compute_dtype(kind):
    """bf16 elementwise math only on chips with a bf16 VALU (v6e/v7x)."""
    older = ("v2", "v3", "v4", "v5")
    if kind and not any(t in kind for t in older):
        return jnp.bfloat16
    return jnp.float32


def _make_kernel(*, tile_h, tile_h_in, wo, cp_in, cp_out, k, stride, dilation,
                 n_hi, compute_dtype):
    h_span = stride * (tile_h - 1) + 1
    w_span = stride * (wo - 1) + 1

    def kernel(x_hbm, wdw_ref, wpw_ref, bias_ref, o_ref, xbuf, copy_sem):
        n = pl.program_id(0)
        ho = pl.program_id(1)
        hi = pl.program_id(2)
        hblk = ho * n_hi + hi
        slot = hi & 1

        def start_row_copy(blk, s):
            # Rows [blk*tile_h*stride, ... + tile_h_in) of padded image n.
            pltpu.make_async_copy(
                x_hbm.at[n, pl.ds(blk * (tile_h * stride), tile_h_in)],
                xbuf.at[s],
                copy_sem.at[s],
            ).start()

        # Prime the double buffer at the start of each (image, outer-H) block.
        # Priming per block keeps the outer axes safely megacore-parallel.
        # TODO(synk): prefetch across (n, ho) block boundaries (with per-core
        # guards) to hide the per-block cold-start DMA when nH is small.
        @pl.when(hi == 0)
        def _():
            start_row_copy(hblk, slot)

        # Prefetch the next row tile of this block while computing the current.
        @pl.when(hi + 1 < n_hi)
        def _():
            start_row_copy(hblk + 1, (hi + 1) & 1)

        # Wait for the rows of the current tile.
        pltpu.make_async_copy(
            x_hbm.at[n, pl.ds(hblk * (tile_h * stride), tile_h_in)],
            xbuf.at[slot],
            copy_sem.at[slot],
        ).wait()

        # ReLU (relu_first=True).  Zero padding is preserved by ReLU.
        # bf16 DMA everywhere; upcast only where the VALU lacks bf16 (v5e).
        x = jnp.maximum(xbuf[slot].astype(compute_dtype), 0.0)

        # ---- depthwise KxK conv (groups == Cin) on the VPU.  BN(depth) scale
        # is already folded into wdw, so no per-tile affine pass here.
        # TODO(synk): use pltpu.roll along W (XLU slot) for the kw!=0 taps once
        # rank-3 sublane-rotate lowering is verified on the target jaxlib.
        wdw = wdw_ref[...]
        acc = None
        for kh in range(k):
            h0 = kh * dilation
            rows = x[h0:h0 + h_span:stride]
            for kw in range(k):
                w0 = kw * dilation
                patch = rows[:, w0:w0 + w_span:stride, :]
                term = patch * wdw[kh, kw, :]
                acc = term if acc is None else acc + term

        # ---- pointwise 1x1 conv == channel matmul on the MXU (bf16 x bf16 -> f32).
        # BN(point) scale is folded into wpw; both BN shifts live in bias_ref.
        # TODO(synk): at production channel counts (>=512) tile Cout (256-wide
        # on v6e/v7x), add a Cin-reduction grid axis, and mark the constant
        # weight specs pipeline_mode=pl.Buffered(1) to halve their VMEM.
        y = jnp.dot(acc.astype(jnp.bfloat16).reshape(tile_h * wo, cp_in),
                    wpw_ref[...],
                    preferred_element_type=jnp.float32)
        y = y + bias_ref[0]

        o_ref[0] = y.reshape(tile_h, wo, cp_out).astype(o_ref.dtype)

    return kernel


def separable_conv2d(x_nchw, w_dw, w_pw, bn_d, bn_p, *, stride=1, dilation=1,
                     tile_h=32, eps=1e-5):
    """relu_first=True SeparableConv2d forward (inference BN).

    x_nchw: (N, Cin, H, W).  w_dw: (Cin, K, K) depthwise.  w_pw: (Cout, Cin).
    bn_d / bn_p: dicts with gamma, beta, mean, var.  Returns (N, Cout, Ho, Wo).
    """
    N, Cin, H, W = x_nchw.shape
    Cout = w_pw.shape[0]
    K = w_dw.shape[1]
    pad = dilation

    kind = _tpu_kind()
    compute_dtype = _compute_dtype(kind)
    budget = _vmem_budget_bytes(kind)

    # ---- fold BN (inference) algebraically into the conv weights ----
    #   DW' = DW * sd (per channel), PW'[o,c] = sp_o * PW[o,c],
    #   bias_o = bp_o + sp_o * sum_c PW[o,c] * bd_c
    sd = bn_d["gamma"] / jnp.sqrt(bn_d["var"] + eps)
    bd = bn_d["beta"] - bn_d["mean"] * sd
    sp = bn_p["gamma"] / jnp.sqrt(bn_p["var"] + eps)
    bp = bn_p["beta"] - bn_p["mean"] * sp
    w_dw_f = (w_dw * sd[:, None, None]).astype(jnp.float32)       # (Cin, K, K)
    w_pw_f = (w_pw * sp[:, None]).astype(jnp.float32)             # (Cout, Cin)
    bias_f = (bp + sp * (w_pw.astype(jnp.float32) @ bd)).astype(jnp.float32)

    # Lane-dense channel padding (zero-padded channels are exact no-ops).
    cp_in = _round_up(Cin, 128)
    cp_out = _round_up(Cout, 128)

    Hp, Wp = H + 2 * pad, W + 2 * pad
    Ho = (Hp - dilation * (K - 1) - 1) // stride + 1
    Wo = (Wp - dilation * (K - 1) - 1) // stride + 1
    Wp8 = _round_up(Wp, 8)            # 8-sublane-aligned W in the VMEM row tiles

    out_itemsize = jnp.dtype(x_nchw.dtype).itemsize
    in_itemsize = 2                   # bf16 input stream on every generation
    cdt_itemsize = jnp.dtype(compute_dtype).itemsize

    def vmem_estimate(t):
        t_in = (t - 1) * stride + (K - 1) * dilation + 1
        xb = 2 * t_in * Wp8 * cp_in * in_itemsize                    # manual double buffer
        outb = 2 * t * Wo * cp_out * out_itemsize                    # pipelined out block
        wts = 2 * (K * K * cp_in * cdt_itemsize + cp_in * cp_out * 2 + cp_out * 4)
        tmp = (t_in * Wp8 * cp_in + 3 * t * Wo * cp_in + 2 * t * Wo * cp_out) * 4
        return xb + outb + wts + tmp

    # Tile height: as large as requested, shrunk only if it blows the VMEM budget.
    tH = max(1, min(tile_h, Ho))
    while tH > 8 and vmem_estimate(tH) > budget:
        tH = max(8, tH // 2)

    # Pad Ho to a multiple of tH (no divisor search / no tile_h=1 cliff);
    # keep the number of H blocks even so both v7x TensorCores get work at N=1.
    nH = -(-Ho // tH)
    if nH > 1 and nH % 2:
        nH += 1
    Ho_pad = nH * tH
    n_ho = 2 if nH >= 2 else 1
    n_hi = nH // n_ho
    tHin = (tH - 1) * stride + (K - 1) * dilation + 1       # rows incl. halo
    Hin = (Ho_pad - 1) * stride + (K - 1) * dilation + 1    # padded-input rows needed
    total_H = max(Hin, H + pad)

    # NCHW -> NHWC, zero-pad spatially (ReLU(0)=0, so pre-pad is equivalent),
    # pad channels to the 128-lane width, W to a multiple of 8, store bf16 so
    # the dominant HBM->VMEM stream is half the bytes.
    # TODO(synk): keep the surrounding model NHWC (and avoid the 4->128 lane
    # padding at such tiny channel counts) to remove these extra HBM passes.
    x = jnp.transpose(x_nchw, (0, 2, 3, 1))
    x_pad = jnp.pad(
        x, ((0, 0), (pad, total_H - H - pad), (pad, Wp8 - W - pad),
            (0, cp_in - Cin))).astype(jnp.bfloat16)

    wdw_hwc = jnp.pad(jnp.transpose(w_dw_f, (1, 2, 0)),
                      ((0, 0), (0, 0), (0, cp_in - Cin))).astype(compute_dtype)
    wpw_ck = jnp.pad(jnp.transpose(w_pw_f, (1, 0)),
                     ((0, cp_in - Cin), (0, cp_out - Cout))).astype(jnp.bfloat16)
    bias2 = jnp.pad(bias_f, (0, cp_out - Cout)).reshape(1, cp_out).astype(jnp.float32)

    kernel = _make_kernel(tile_h=tH, tile_h_in=tHin, wo=Wo, cp_in=cp_in,
                          cp_out=cp_out, k=K, stride=stride, dilation=dilation,
                          n_hi=n_hi, compute_dtype=compute_dtype)

    vmem_limit = int(min(max(vmem_estimate(tH) * 5 // 4 + (4 << 20), 16 << 20),
                         budget))

    out_nhwc = pl.pallas_call(
        kernel,
        out_shape=jax.ShapeDtypeStruct((N, Ho_pad, Wo, cp_out), x_nchw.dtype),
        grid_spec=pltpu.PrefetchScalarGridSpec(
            num_scalar_prefetch=0,
            grid=(N, n_ho, n_hi),
            in_specs=[
                pl.BlockSpec(memory_space=pl.ANY),                         # x (HBM, manual DMA)
                pl.BlockSpec((K, K, cp_in), lambda n, ho, hi: (0, 0, 0)),  # depthwise w (BN folded)
                pl.BlockSpec((cp_in, cp_out), lambda n, ho, hi: (0, 0)),   # pointwise w (BN folded, bf16)
                pl.BlockSpec((1, cp_out), lambda n, ho, hi: (0, 0)),       # fused bias
            ],
            out_specs=pl.BlockSpec((1, tH, Wo, cp_out),
                                   lambda n, ho, hi: (n, ho * n_hi + hi, 0, 0)),
            scratch_shapes=[
                pltpu.VMEM((2, tHin, Wp8, cp_in), jnp.bfloat16),  # row-tile double buffer
                pltpu.SemaphoreType.DMA((2,)),
            ],
        ),
        compiler_params=pltpu.CompilerParams(
            dimension_semantics=("parallel", "parallel", "arbitrary"),
            vmem_limit_bytes=vmem_limit,
        ),
    )(x_pad, wdw_hwc, wpw_ck, bias2)

    # Drop row/channel padding, NHWC -> NCHW to match the PyTorch module.
    return jnp.transpose(out_nhwc[:, :Ho, :, :Cout], (0, 3, 1, 2))


def _reference(x_nchw, w_dw, w_pw, bn_d, bn_p, *, stride=1, dilation=1):
    """Pure-JAX f32 reference (lax.conv) mirroring the PyTorch graph."""
    eps = 1e-5
    Cin = x_nchw.shape[1]
    x = jnp.maximum(x_nchw, 0.0)
    dw = w_dw[:, None, :, :]                           # (Cin, 1, K, K)
    y = lax.conv_general_dilated(
        x, dw, window_strides=(stride, stride),
        padding=[(dilation, dilation), (dilation, dilation)],
        rhs_dilation=(dilation, dilation),
        dimension_numbers=("NCHW", "OIHW", "NCHW"),
        feature_group_count=Cin)
    sd = bn_d["gamma"] / jnp.sqrt(bn_d["var"] + eps)
    bd = bn_d["beta"] - bn_d["mean"] * sd
    y = y * sd[None, :, None, None] + bd[None, :, None, None]
    y = lax.conv_general_dilated(
        y, w_pw[:, :, None, None], window_strides=(1, 1), padding=[(0, 0), (0, 0)],
        dimension_numbers=("NCHW", "OIHW", "NCHW"))
    sp = bn_p["gamma"] / jnp.sqrt(bn_p["var"] + eps)
    bp = bn_p["beta"] - bn_p["mean"] * sp
    return y * sp[None, :, None, None] + bp[None, :, None, None]


if __name__ == "__main__":
    N, Cin, H, W = 2, 4, 16, 16
    Cout, K = 8, 3
    stride, dilation = 1, 1

    key = jax.random.PRNGKey(0)
    k = jax.random.split(key, 8)
    x = jax.random.normal(k[0], (N, Cin, H, W), jnp.float32)
    w_dw = jax.random.normal(k[1], (Cin, K, K), jnp.float32) * 0.2
    w_pw = jax.random.normal(k[2], (Cout, Cin), jnp.float32) * 0.2
    bn_d = dict(gamma=1.0 + 0.1 * jax.random.normal(k[3], (Cin,)),
                beta=0.1 * jax.random.normal(k[4], (Cin,)),
                mean=0.05 * jax.random.normal(k[5], (Cin,)),
                var=jnp.abs(1.0 + 0.1 * jax.random.normal(k[6], (Cin,))))
    bn_p = dict(gamma=jnp.ones((Cout,)), beta=jnp.zeros((Cout,)),
                mean=0.05 * jax.random.normal(k[7], (Cout,)),
                var=jnp.ones((Cout,)))

    fn = jax.jit(lambda xx, wd, wp, bnd, bnp: separable_conv2d(
        xx, wd, wp, bnd, bnp, stride=stride, dilation=dilation))
    out = fn(x, w_dw, w_pw, bn_d, bn_p)
    out = jax.block_until_ready(out)

    ref = _reference(x, w_dw, w_pw, bn_d, bn_p, stride=stride, dilation=dilation)
    assert out.shape == (N, Cout, H, W)
    # bf16 input stream + (on v6e/v7x) bf16 depthwise math + bf16 MXU operands
    # for the 1x1 matmul (f32 accumulation) -> relaxed tol vs. the f32 reference.
    assert jnp.allclose(out, ref, atol=3e-2, rtol=3e-2)
    print("KERNEL_OK")
</pallas_src>

<mosaic_0001>
module attributes {stable_mosaic.version = 11 : i64} {
  func.func @kernel(%arg0: i32, %arg1: i32, %arg2: i32, %arg3: memref<2x18x24x128xbf16, #tpu.memory_space<any>>, %arg4: memref<3x3x128xbf16, #tpu.memory_space<vmem>>, %arg5: memref<128x128xbf16, #tpu.memory_space<vmem>>, %arg6: memref<1x128xf32, #tpu.memory_space<vmem>>, %arg7: memref<1x16x16x128xf32, #tpu.memory_space<vmem>>, %arg8: memref<2x18x24x128xbf16, #tpu.memory_space<vmem>>, %arg9: memref<2x!tpu.dma_semaphore, #tpu.memory_space<semaphore_mem>>) attributes {dimension_semantics = [#tpu.dimension_semantics<parallel>, #tpu.dimension_semantics<parallel>, #tpu.dimension_semantics<arbitrary>], iteration_bounds = array<i64: 2, 1, 1>, scalar_prefetch = 0 : i64, scratch_operands = 2 : i64, tpu.core_type = #tpu.core_type<tc>, window_params = [{}, {pipeline_mode = #tpu.pipeline_mode<synchronous>, transform_indices = @transform_1, window_bounds = array<i64: 3, 3, 128>}, {pipeline_mode = #tpu.pipeline_mode<synchronous>, transform_indices = @transform_2, window_bounds = array<i64: 128, 128>}, {pipeline_mode = #tpu.pipeline_mode<synchronous>, transform_indices = @transform_3, window_bounds = array<i64: 1, 128>}, {transform_indices = @transform_4, window_bounds = array<i64: 1, 16, 16, 128>}]} {
    %c1_i32 = arith.constant 1 : i32
    %0 = arith.muli %arg1, %c1_i32 : i32
    %1 = arith.addi %0, %arg2 : i32
    %c1_i32_0 = arith.constant 1 : i32
    %2 = arith.andi %arg2, %c1_i32_0 : i32
    %c0_i32 = arith.constant 0 : i32
    %3 = arith.cmpi eq, %arg2, %c0_i32 : i32
    %4 = arith.extui %3 : i1 to i32
    %c0_i32_1 = arith.constant 0 : i32
    %5 = arith.cmpi ne, %4, %c0_i32_1 : i32
    scf.if %5 {
      %c16_i32_24 = arith.constant 16 : i32
      %100 = arith.muli %1, %c16_i32_24 : i32
      %c0_i32_25 = arith.constant 0 : i32
      %c0_i32_26 = arith.constant 0 : i32
      %101 = tpu.memref_slice %arg3[%arg0, %100, %c0_i32_25, %c0_i32_26] : memref<2x18x24x128xbf16, #tpu.memory_space<any>> -> memref<1x18x24x128xbf16, #tpu.memory_space<any>>
      %102 = tpu.memref_squeeze %101 : memref<1x18x24x128xbf16, #tpu.memory_space<any>> -> memref<18x24x128xbf16, #tpu.memory_space<any>>
      %c0_i32_27 = arith.constant 0 : i32
      %c0_i32_28 = arith.constant 0 : i32
      %c0_i32_29 = arith.constant 0 : i32
      %103 = tpu.memref_slice %arg8[%2, %c0_i32_27, %c0_i32_28, %c0_i32_29] : memref<2x18x24x128xbf16, #tpu.memory_space<vmem>> -> memref<1x18x24x128xbf16, #tpu.memory_space<vmem>>
      %104 = tpu.memref_squeeze %103 : memref<1x18x24x128xbf16, #tpu.memory_space<vmem>> -> memref<18x24x128xbf16, #tpu.memory_space<vmem>>
      %105 = tpu.memref_slice %arg9[%2] : memref<2x!tpu.dma_semaphore, #tpu.memory_space<semaphore_mem>> -> memref<1x!tpu.dma_semaphore, #tpu.memory_space<semaphore_mem>>
      %106 = tpu.memref_squeeze %105 : memref<1x!tpu.dma_semaphore, #tpu.memory_space<semaphore_mem>> -> memref<!tpu.dma_semaphore, #tpu.memory_space<semaphore_mem>>
      tpu.enqueue_dma source(%102 : memref<18x24x128xbf16, #tpu.memory_space<any>>) target(%104 : memref<18x24x128xbf16, #tpu.memory_space<vmem>>) target_semaphore(%106 : memref<!tpu.dma_semaphore, #tpu.memory_space<semaphore_mem>>)
    } else {
    }
    %c1_i32_2 = arith.constant 1 : i32
    %6 = arith.addi %arg2, %c1_i32_2 : i32
    %c1_i32_3 = arith.constant 1 : i32
    %7 = arith.cmpi slt, %6, %c1_i32_3 : i32
    %8 = arith.extui %7 : i1 to i32
    %c0_i32_4 = arith.constant 0 : i32
    %9 = arith.cmpi ne, %8, %c0_i32_4 : i32
    scf.if %9 {
      %c1_i32_24 = arith.constant 1 : i32
      %100 = arith.addi %1, %c1_i32_24 : i32
      %c1_i32_25 = arith.constant 1 : i32
      %101 = arith.addi %arg2, %c1_i32_25 : i32
      %c1_i32_26 = arith.constant 1 : i32
      %102 = arith.andi %101, %c1_i32_26 : i32
      %c16_i32_27 = arith.constant 16 : i32
      %103 = arith.muli %100, %c16_i32_27 : i32
      %c0_i32_28 = arith.constant 0 : i32
      %c0_i32_29 = arith.constant 0 : i32
      %104 = tpu.memref_slice %arg3[%arg0, %103, %c0_i32_28, %c0_i32_29] : memref<2x18x24x128xbf16, #tpu.memory_space<any>> -> memref<1x18x24x128xbf16, #tpu.memory_space<any>>
      %105 = tpu.memref_squeeze %104 : memref<1x18x24x128xbf16, #tpu.memory_space<any>> -> memref<18x24x128xbf16, #tpu.memory_space<any>>
      %c0_i32_30 = arith.constant 0 : i32
      %c0_i32_31 = arith.constant 0 : i32
      %c0_i32_32 = arith.constant 0 : i32
      %106 = tpu.memref_slice %arg8[%102, %c0_i32_30, %c0_i32_31, %c0_i32_32] : memref<2x18x24x128xbf16, #tpu.memory_space<vmem>> -> memref<1x18x24x128xbf16, #tpu.memory_space<vmem>>
      %107 = tpu.memref_squeeze %106 : memref<1x18x24x128xbf16, #tpu.memory_space<vmem>> -> memref<18x24x128xbf16, #tpu.memory_space<vmem>>
      %108 = tpu.memref_slice %arg9[%102] : memref<2x!tpu.dma_semaphore, #tpu.memory_space<semaphore_mem>> -> memref<1x!tpu.dma_semaphore, #tpu.memory_space<semaphore_mem>>
      %109 = tpu.memref_squeeze %108 : memref<1x!tpu.dma_semaphore, #tpu.memory_space<semaphore_mem>> -> memref<!tpu.dma_semaphore, #tpu.memory_space<semaphore_mem>>
      tpu.enqueue_dma source(%105 : memref<18x24x128xbf16, #tpu.memory_space<any>>) target(%107 : memref<18x24x128xbf16, #tpu.memory_space<vmem>>) target_semaphore(%109 : memref<!tpu.dma_semaphore, #tpu.memory_space<semaphore_mem>>)
    } else {
    }
    %c16_i32 = arith.constant 16 : i32
    %10 = arith.muli %1, %c16_i32 : i32
    %c0_i32_5 = arith.constant 0 : i32
    %c0_i32_6 = arith.constant 0 : i32
    %11 = tpu.memref_slice %arg3[%arg0, %10, %c0_i32_5, %c0_i32_6] : memref<2x18x24x128xbf16, #tpu.memory_space<any>> -> memref<1x18x24x128xbf16, #tpu.memory_space<any>>
    %12 = tpu.memref_squeeze %11 : memref<1x18x24x128xbf16, #tpu.memory_space<any>> -> memref<18x24x128xbf16, #tpu.memory_space<any>>
    %c0_i32_7 = arith.constant 0 : i32
    %c0_i32_8 = arith.constant 0 : i32
    %c0_i32_9 = arith.constant 0 : i32
    %13 = tpu.memref_slice %arg8[%2, %c0_i32_7, %c0_i32_8, %c0_i32_9] : memref<2x18x24x128xbf16, #tpu.memory_space<vmem>> -> memref<1x18x24x128xbf16, #tpu.memory_space<vmem>>
    %14 = tpu.memref_squeeze %13 : memref<1x18x24x128xbf16, #tpu.memory_space<vmem>> -> memref<18x24x128xbf16, #tpu.memory_space<vmem>>
    %15 = tpu.memref_slice %arg9[%2] : memref<2x!tpu.dma_semaphore, #tpu.memory_space<semaphore_mem>> -> memref<1x!tpu.dma_semaphore, #tpu.memory_space<semaphore_mem>>
    %16 = tpu.memref_squeeze %15 : memref<1x!tpu.dma_semaphore, #tpu.memory_space<semaphore_mem>> -> memref<!tpu.dma_semaphore, #tpu.memory_space<semaphore_mem>>
    tpu.wait_dma2 semaphore(%16 : memref<!tpu.dma_semaphore, #tpu.memory_space<semaphore_mem>>) src(%12 : memref<18x24x128xbf16, #tpu.memory_space<any>>) dst(%14 : memref<18x24x128xbf16, #tpu.memory_space<vmem>>)
    %17 = arith.index_cast %2 : i32 to index
    %c0 = arith.constant 0 : index
    %c0_10 = arith.constant 0 : index
    %c0_11 = arith.constant 0 : index
    %18 = vector.load %arg8[%17, %c0, %c0_10, %c0_11] : memref<2x18x24x128xbf16, #tpu.memory_space<vmem>>, vector<1x18x24x128xbf16>
    %19 = vector.shape_cast %18 : vector<1x18x24x128xbf16> to vector<18x24x128xbf16>
    %cst = arith.constant 0.000000e+00 : bf16
    %20 = vector.broadcast %cst : bf16 to vector<18x24x128xbf16>
    %21 = arith.maximumf %19, %20 : vector<18x24x128xbf16>
    %c0_12 = arith.constant 0 : index
    %c0_13 = arith.constant 0 : index
    %c0_14 = arith.constant 0 : index
    %22 = vector.load %arg4[%c0_12, %c0_13, %c0_14] : memref<3x3x128xbf16, #tpu.memory_space<vmem>>, vector<3x3x128xbf16>
    %23 = vector.extract_strided_slice %21 {offsets = [0, 0, 0], sizes = [16, 24, 128], strides = [1, 1, 1]} : vector<18x24x128xbf16> to vector<16x24x128xbf16>
    %24 = vector.extract_strided_slice %23 {offsets = [0, 0, 0], sizes = [16, 16, 128], strides = [1, 1, 1]} : vector<16x24x128xbf16> to vector<16x16x128xbf16>
    %25 = vector.extract_strided_slice %22 {offsets = [0, 0, 0], sizes = [1, 1, 128], strides = [1, 1, 1]} : vector<3x3x128xbf16> to vector<1x1x128xbf16>
    %26 = vector.shape_cast %25 : vector<1x1x128xbf16> to vector<128xbf16>
    %27 = vector.shape_cast %26 : vector<128xbf16> to vector<1x1x128xbf16>
    %28 = vector.broadcast %27 : vector<1x1x128xbf16> to vector<16x16x128xbf16>
    %29 = arith.mulf %24, %28 : vector<16x16x128xbf16>
    %30 = vector.extract_strided_slice %23 {offsets = [0, 1, 0], sizes = [16, 16, 128], strides = [1, 1, 1]} : vector<16x24x128xbf16> to vector<16x16x128xbf16>
    %31 = vector.extract_strided_slice %22 {offsets = [0, 1, 0], sizes = [1, 1, 128], strides = [1, 1, 1]} : vector<3x3x128xbf16> to vector<1x1x128xbf16>
    %32 = vector.shape_cast %31 : vector<1x1x128xbf16> to vector<128xbf16>
    %33 = vector.shape_cast %32 : vector<128xbf16> to vector<1x1x128xbf16>
    %34 = vector.broadcast %33 : vector<1x1x128xbf16> to vector<16x16x128xbf16>
    %35 = arith.mulf %30, %34 : vector<16x16x128xbf16>
    %36 = arith.addf %29, %35 : vector<16x16x128xbf16>
    %37 = vector.extract_strided_slice %23 {offsets = [0, 2, 0], sizes = [16, 16, 128], strides = [1, 1, 1]} : vector<16x24x128xbf16> to vector<16x16x128xbf16>
    %38 = vector.extract_strided_slice %22 {offsets = [0, 2, 0], sizes = [1, 1, 128], strides = [1, 1, 1]} : vector<3x3x128xbf16> to vector<1x1x128xbf16>
    %39 = vector.shape_cast %38 : vector<1x1x128xbf16> to vector<128xbf16>
    %40 = vector.shape_cast %39 : vector<128xbf16> to vector<1x1x128xbf16>
    %41 = vector.broadcast %40 : vector<1x1x128xbf16> to vector<16x16x128xbf16>
    %42 = arith.mulf %37, %41 : vector<16x16x128xbf16>
    %43 = arith.addf %36, %42 : vector<16x16x128xbf16>
    %44 = vector.extract_strided_slice %21 {offsets = [1, 0, 0], sizes = [16, 24, 128], strides = [1, 1, 1]} : vector<18x24x128xbf16> to vector<16x24x128xbf16>
    %45 = vector.extract_strided_slice %44 {offsets = [0, 0, 0], sizes = [16, 16, 128], strides = [1, 1, 1]} : vector<16x24x128xbf16> to vector<16x16x128xbf16>
    %46 = vector.extract_strided_slice %22 {offsets = [1, 0, 0], sizes = [1, 1, 128], strides = [1, 1, 1]} : vector<3x3x128xbf16> to vector<1x1x128xbf16>
    %47 = vector.shape_cast %46 : vector<1x1x128xbf16> to vector<128xbf16>
    %48 = vector.shape_cast %47 : vector<128xbf16> to vector<1x1x128xbf16>
    %49 = vector.broadcast %48 : vector<1x1x128xbf16> to vector<16x16x128xbf16>
    %50 = arith.mulf %45, %49 : vector<16x16x128xbf16>
    %51 = arith.addf %43, %50 : vector<16x16x128xbf16>
    %52 = vector.extract_strided_slice %44 {offsets = [0, 1, 0], sizes = [16, 16, 128], strides = [1, 1, 1]} : vector<16x24x128xbf16> to vector<16x16x128xbf16>
    %53 = vector.extract_strided_slice %22 {offsets = [1, 1, 0], sizes = [1, 1, 128], strides = [1, 1, 1]} : vector<3x3x128xbf16> to vector<1x1x128xbf16>
    %54 = vector.shape_cast %53 : vector<1x1x128xbf16> to vector<128xbf16>
    %55 = vector.shape_cast %54 : vector<128xbf16> to vector<1x1x128xbf16>
    %56 = vector.broadcast %55 : vector<1x1x128xbf16> to vector<16x16x128xbf16>
    %57 = arith.mulf %52, %56 : vector<16x16x128xbf16>
    %58 = arith.addf %51, %57 : vector<16x16x128xbf16>
    %59 = vector.extract_strided_slice %44 {offsets = [0, 2, 0], sizes = [16, 16, 128], strides = [1, 1, 1]} : vector<16x24x128xbf16> to vector<16x16x128xbf16>
    %60 = vector.extract_strided_slice %22 {offsets = [1, 2, 0], sizes = [1, 1, 128], strides = [1, 1, 1]} : vector<3x3x128xbf16> to vector<1x1x128xbf16>
    %61 = vector.shape_cast %60 : vector<1x1x128xbf16> to vector<128xbf16>
    %62 = vector.shape_cast %61 : vector<128xbf16> to vector<1x1x128xbf16>
    %63 = vector.broadcast %62 : vector<1x1x128xbf16> to vector<16x16x128xbf16>
    %64 = arith.mulf %59, %63 : vector<16x16x128xbf16>
    %65 = arith.addf %58, %64 : vector<16x16x128xbf16>
    %66 = vector.extract_strided_slice %21 {offsets = [2, 0, 0], sizes = [16, 24, 128], strides = [1, 1, 1]} : vector<18x24x128xbf16> to vector<16x24x128xbf16>
    %67 = vector.extract_strided_slice %66 {offsets = [0, 0, 0], sizes = [16, 16, 128], strides = [1, 1, 1]} : vector<16x24x128xbf16> to vector<16x16x128xbf16>
    %68 = vector.extract_strided_slice %22 {offsets = [2, 0, 0], sizes = [1, 1, 128], strides = [1, 1, 1]} : vector<3x3x128xbf16> to vector<1x1x128xbf16>
    %69 = vector.shape_cast %68 : vector<1x1x128xbf16> to vector<128xbf16>
    %70 = vector.shape_cast %69 : vector<128xbf16> to vector<1x1x128xbf16>
    %71 = vector.broadcast %70 : vector<1x1x128xbf16> to vector<16x16x128xbf16>
    %72 = arith.mulf %67, %71 : vector<16x16x128xbf16>
    %73 = arith.addf %65, %72 : vector<16x16x128xbf16>
    %74 = vector.extract_strided_slice %66 {offsets = [0, 1, 0], sizes = [16, 16, 128], strides = [1, 1, 1]} : vector<16x24x128xbf16> to vector<16x16x128xbf16>
    %75 = vector.extract_strided_slice %22 {offsets = [2, 1, 0], sizes = [1, 1, 128], strides = [1, 1, 1]} : vector<3x3x128xbf16> to vector<1x1x128xbf16>
    %76 = vector.shape_cast %75 : vector<1x1x128xbf16> to vector<128xbf16>
    %77 = vector.shape_cast %76 : vector<128xbf16> to vector<1x1x128xbf16>
    %78 = vector.broadcast %77 : vector<1x1x128xbf16> to vector<16x16x128xbf16>
    %79 = arith.mulf %74, %78 : vector<16x16x128xbf16>
    %80 = arith.addf %73, %79 : vector<16x16x128xbf16>
    %81 = vector.extract_strided_slice %66 {offsets = [0, 2, 0], sizes = [16, 16, 128], strides = [1, 1, 1]} : vector<16x24x128xbf16> to vector<16x16x128xbf16>
    %82 = vector.extract_strided_slice %22 {offsets = [2, 2, 0], sizes = [1, 1, 128], strides = [1, 1, 1]} : vector<3x3x128xbf16> to vector<1x1x128xbf16>
    %83 = vector.shape_cast %82 : vector<1x1x128xbf16> to vector<128xbf16>
    %84 = vector.shape_cast %83 : vector<128xbf16> to vector<1x1x128xbf16>
    %85 = vector.broadcast %84 : vector<1x1x128xbf16> to vector<16x16x128xbf16>
    %86 = arith.mulf %81, %85 : vector<16x16x128xbf16>
    %87 = arith.addf %80, %86 : vector<16x16x128xbf16>
    %88 = vector.shape_cast %87 : vector<16x16x128xbf16> to vector<256x128xbf16>
    %c0_15 = arith.constant 0 : index
    %c0_16 = arith.constant 0 : index
    %89 = vector.load %arg5[%c0_15, %c0_16] : memref<128x128xbf16, #tpu.memory_space<vmem>>, vector<128x128xbf16>
    %cst_17 = arith.constant dense<0.000000e+00> : vector<256x128xf32>
    %90 = tpu.matmul %88, %89, %cst_17 {dimension_numbers = #tpu.dot_dimension_numbers<[1], [0], [0], [1], [0, 0, 1, 1], [], []>} : vector<256x128xbf16>, vector<128x128xbf16>, vector<256x128xf32> -> vector<256x128xf32>
    %c0_18 = arith.constant 0 : index
    %c0_19 = arith.constant 0 : index
    %91 = vector.load %arg6[%c0_18, %c0_19] : memref<1x128xf32, #tpu.memory_space<vmem>>, vector<1x128xf32>
    %92 = vector.shape_cast %91 : vector<1x128xf32> to vector<128xf32>
    %93 = vector.shape_cast %92 : vector<128xf32> to vector<1x128xf32>
    %94 = vector.broadcast %93 : vector<1x128xf32> to vector<256x128xf32>
    %95 = arith.addf %90, %94 : vector<256x128xf32>
    %96 = vector.shape_cast %95 : vector<256x128xf32> to vector<16x16x128xf32>
    %c0_20 = arith.constant 0 : index
    %c0_21 = arith.constant 0 : index
    %c0_22 = arith.constant 0 : index
    %c0_23 = arith.constant 0 : index
    %97 = vector.load %arg7[%c0_20, %c0_21, %c0_22, %c0_23] : memref<1x16x16x128xf32, #tpu.memory_space<vmem>>, vector<1x16x16x128xf32>
    %98 = vector.shape_cast %97 : vector<1x16x16x128xf32> to vector<16x16x128xf32>
    %99 = vector.shape_cast %96 : vector<16x16x128xf32> to vector<1x16x16x128xf32>
    tpu.vector_store %arg7[%c0_20, %c0_21, %c0_22, %c0_23], %99 {strides = array<i32>} : memref<1x16x16x128xf32, #tpu.memory_space<vmem>>, vector<1x16x16x128xf32>,
    return
  }
  func.func @transform_1(%arg0: i32, %arg1: i32, %arg2: i32) -> (i32, i32, i32) {
    %c0_i32 = arith.constant 0 : i32
    %c0_i32_0 = arith.constant 0 : i32
    %c0_i32_1 = arith.constant 0 : i32
    %c0_i32_2 = arith.constant 0 : i32
    return %c0_i32, %c0_i32_0, %c0_i32_1 : i32, i32, i32
  }
  func.func @transform_2(%arg0: i32, %arg1: i32, %arg2: i32) -> (i32, i32) {
    %c0_i32 = arith.constant 0 : i32
    %c0_i32_0 = arith.constant 0 : i32
    %c0_i32_1 = arith.constant 0 : i32
    return %c0_i32, %c0_i32_0 : i32, i32
  }
  func.func @transform_3(%arg0: i32, %arg1: i32, %arg2: i32) -> (i32, i32) {
    %c0_i32 = arith.constant 0 : i32
    %c0_i32_0 = arith.constant 0 : i32
    %c0_i32_1 = arith.constant 0 : i32
    return %c0_i32, %c0_i32_0 : i32, i32
  }
  func.func @transform_4(%arg0: i32, %arg1: i32, %arg2: i32) -> (i32, i32, i32, i32) {
    %c1_i32 = arith.constant 1 : i32
    %0 = arith.muli %arg1, %c1_i32 : i32
    %1 = arith.addi %0, %arg2 : i32
    %c0_i32 = arith.constant 0 : i32
    %c0_i32_0 = arith.constant 0 : i32
    %c0_i32_1 = arith.constant 0 : i32
    return %arg0, %1, %c0_i32, %c0_i32_0 : i32, i32, i32, i32
  }
}

</mosaic_0001>

<bundles_post_ra>
// kernel: _lambda_.1
= control target key start
LH: loop header
LB: loop body
LE: loop exit
PB: predicated region body
PF: predicated region fallthrough
CT: control target
= control target key end

     0   :  { %s3910_s15 = smov 0   ;;  %s3912_s16 = smov 0   ;;  %s5487_s0 = inlined_call_operand.vmem [shape: bf16[2,18,24,128], index: 0, kind: input, shape index: {}]   ;;  %s5488_s1 = inlined_call_operand.vmem [shape: bf16[3,3,128], index: 1, kind: input, shape index: {}]   ;;  %s5489_s2 = inlined_call_operand.vmem [shape: bf16[128,128], index: 2, kind: input, shape index: {}]   ;;  %s5490_s3 = inlined_call_operand.vmem [shape: f32[1,128], index: 3, kind: input, shape index: {}]   ;;  %s5491_s4 = inlined_call_operand.vmem [shape: f32[2,16,16,128], index: 4, kind: output, shape index: {}]  }
   0x1   :  { %s3914_s17 = smov 0  }
   0x2 LB: > { %s33_s18 = sadd.s32 1, %s3878_s16  ;;  %p3588_p0 = scmp.ge.s32.totalorder %s3882_s17, 1  ;;  %s3882_s17 = sphi %s3914_s17, %s14_s17   ;;  %s3878_s16 = sphi %s3912_s16, %s5497_s16   ;;  %s3874_s15 = sphi %s3910_s15, %s5496_s15  }
   0x3   : > { %p35_p1 = scmp.ge.s32.totalorder %s33_s18, 2  ;;  %p151_p2 = scmp.lt.s32.totalorder %s3882_s17, 3 }
   0x5   : > { %s5499_s18 = smov (%p35_p1, %s33_s18), 0  ;;  %p152_p3 = pnand %p3588_p0, %p151_p2 }
   0x6   : > { %p178_p4 = scmp.lt.s32.totalorder (!%p152_p3), %s3874_s15, 1  ;;  %s3736_s19 = smul.u32 (!%p152_p3), 216, %s3874_s15 }
   0x7   : > { %155 = sbr.rel (%p152_p3) target bundleno = 692 (0x2b4), region = 32 }
   0x8   : > { %s3931_s22 = scalar_lea.vmem (!%p152_p3), %s5487_s0, %s3736_s19 }
   0xc   : > { %s5501_s15 = smov (!%p178_p4, %s3874_s15), 1  ;;  %v239_v0 = vld [vmem:[%s3931_s22] sm:$0xff]  ;;  %v241_v1 = vld [vmem:[%s3931_s22 + $0x8] sm:$0xff]  ;;  %v243_v2 = vld [vmem:[%s3931_s22 + $0x10] sm:$0xff] }
   0xd   : > { %s3735_s23 = sshll.u32 %s5501_s15, 8  ;;  %240 = vst [vmem:[#allocation2] sm:$0xff] %v239_v0  ;;  %242 = vst [vmem:[#allocation2 + $0x8] sm:$0xff] %v241_v1  ;;  %v245_v3 = vld [vmem:[%s3931_s22 + $0x18] sm:$0xff]  ;;  %v247_v4 = vld [vmem:[%s3931_s22 + $0x20] sm:$0xff] }
   0xe   : > { %s3939_s26 = scalar_lea.vmem %s5491_s4, %s3735_s23  ;;  %244 = vst [vmem:[#allocation2 + $0x10] sm:$0xff] %v243_v2  ;;  %v249_v5 = vld [vmem:[%s3931_s22 + $0x28] sm:$0xff]  ;;  %246 = vst [vmem:[#allocation2 + $0x18] sm:$0xff] %v245_v3  ;;  %v251_v6 = vld [vmem:[%s3931_s22 + $0x30] sm:$0xff] }
   0xf   : > { %248 = vst [vmem:[#allocation2 + $0x20] sm:$0xff] %v247_v4  ;;  %250 = vst [vmem:[#allocation2 + $0x28] sm:$0xff] %v249_v5  ;;  %v253_v7 = vld [vmem:[%s3931_s22 + $0x38] sm:$0xff]  ;;  %v255_v8 = vld [vmem:[%s3931_s22 + $0x40] sm:$0xff] }
  0x10   : > { %252 = vst [vmem:[#allocation2 + $0x30] sm:$0xff] %v251_v6  ;;  %254 = vst [vmem:[#allocation2 + $0x38] sm:$0xff] %v253_v7  ;;  %v257_v9 = vld [vmem:[%s3931_s22 + $0x48] sm:$0xff]  ;;  %v259_v10 = vld [vmem:[%s3931_s22 + $0x50] sm:$0xff] }
  0x11   : > { %256 = vst [vmem:[#allocation2 + $0x40] sm:$0xff] %v255_v8  ;;  %v261_v11 = vld [vmem:[%s3931_s22 + $0x58] sm:$0xff]  ;;  %258 = vst [vmem:[#allocation2 + $0x48] sm:$0xff] %v257_v9  ;;  %v263_v12 = vld [vmem:[%s3931_s22 + $0x60] sm:$0xff] }
  0x12   : > { %260 = vst [vmem:[#allocation2 + $0x50] sm:$0xff] %v259_v10  ;;  %262 = vst [vmem:[#allocation2 + $0x58] sm:$0xff] %v261_v11  ;;  %v265_v13 = vld [vmem:[%s3931_s22 + $0x68] sm:$0xff]  ;;  %v267_v14 = vld [vmem:[%s3931_s22 + $0x70] sm:$0xff] }
  0x13   : > { %264 = vst [vmem:[#allocation2 + $0x60] sm:$0xff] %v263_v12  ;;  %266 = vst [vmem:[#allocation2 + $0x68] sm:$0xff] %v265_v13  ;;  %v269_v15 = vld [vmem:[%s3931_s22 + $0x78] sm:$0xff]  ;;  %v271_v16 = vld [vmem:[%s3931_s22 + $0x80] sm:$0xff] }
  0x14   : > { %268 = vst [vmem:[#allocation2 + $0x70] sm:$0xff] %v267_v14  ;;  %v273_v17 = vld [vmem:[%s3931_s22 + $0x88] sm:$0xff]  ;;  %270 = vst [vmem:[#allocation2 + $0x78] sm:$0xff] %v269_v15  ;;  %v275_v18 = vld [vmem:[%s3931_s22 + $0x90] sm:$0xff] }
  0x15   : > { %272 = vst [vmem:[#allocation2 + $0x80] sm:$0xff] %v271_v16  ;;  %274 = vst [vmem:[#allocation2 + $0x88] sm:$0xff] %v273_v17  ;;  %v277_v19 = vld [vmem:[%s3931_s22 + $0x98] sm:$0xff]  ;;  %v279_v20 = vld [vmem:[%s3931_s22 + $0xa0] sm:$0xff] }
  0x16   : > { %276 = vst [vmem:[#allocation2 + $0x90] sm:$0xff] %v275_v18  ;;  %278 = vst [vmem:[#allocation2 + $0x98] sm:$0xff] %v277_v19  ;;  %v281_v21 = vld [vmem:[%s3931_s22 + $0xa8] sm:$0xff]  ;;  %v283_v22 = vld [vmem:[%s3931_s22 + $0xb0] sm:$0xff] }
  0x17   : > { %280 = vst [vmem:[#allocation2 + $0xa0] sm:$0xff] %v279_v20  ;;  %v285_v23 = vld [vmem:[%s3931_s22 + $0xb8] sm:$0xff]  ;;  %282 = vst [vmem:[#allocation2 + $0xa8] sm:$0xff] %v281_v21  ;;  %v287_v24 = vld [vmem:[%s3931_s22 + $0xc0] sm:$0xff] }
  0x18   : > { %284 = vst [vmem:[#allocation2 + $0xb0] sm:$0xff] %v283_v22  ;;  %286 = vst [vmem:[#allocation2 + $0xb8] sm:$0xff] %v285_v23  ;;  %v289_v25 = vld [vmem:[%s3931_s22 + $0xc8] sm:$0xff]  ;;  %v291_v26 = vld [vmem:[%s3931_s22 + $0xd0] sm:$0xff] }
  0x19   : > { %288 = vst [vmem:[#allocation2 + $0xc0] sm:$0xff] %v287_v24  ;;  %290 = vst [vmem:[#allocation2 + $0xc8] sm:$0xff] %v289_v25 }
  0x1a   : > { %292 = vst [vmem:[#allocation2 + $0xd0] sm:$0xff] %v291_v26 }
  0x1b   : > { %300 = vsyncadd [#allocation3], 3456 }
  0x1c   : > { %3870 = dma.done.wait [#allocation3], 3456 }
  0x1d   : > { %3871 = vsyncadd [#allocation3], 4294963840  ;;  %v536_v27 = vlaneseq  ;;  %v3850_v28 = vld [vmem:[%s5489_s2 + $0x38] sm:$0xff]   ;;  %v3851_v29 = vld [vmem:[%s5489_s2 + $0x30] sm:$0xff]   ;;  %v3884_v41 = vmov 0   ;;  %vm1190_vm0 = vcmask 1042432  }
  0x1e   : > { %3761 = vmatprep.subr.bf16.mxu0 %v3850_v28  ;;  %3809 = vmatprep.subr.bf16.mxu1 %v3850_v28  ;;  %v3852_v31 = vld [vmem:[%s5489_s2 + $0x28] sm:$0xff]   ;;  %v3853_v33 = vld [vmem:[%s5489_s2 + $0x20] sm:$0xff]   ;;  %v426_v39 = vld [vmem:[#allocation2 + $0x10] sm:$0xf]  ;;  %vm635_vm1 = vsmask.f32 3328 }
  0x1f   : > { %v537_v30 = vshrl.u32 %v536_v27, 7  ;;  %3762 = vmatpush3.bf16.msra.mxu0 %v3850_v28  ;;  %3817 = vmatpush3.bf16.msra.mxu1 %v3850_v28  ;;  %v422_v35 = vld [vmem:[#allocation2] sm:$0xf]  ;;  %v423_v36 = vld [vmem:[#allocation2 + $0x4] sm:$0xf]  ;;  %v3854_v43 = vld [vmem:[%s5489_s2 + $0x18] sm:$0xff]   ;;  %v3997_v50 = vmax.bf16 %v3884_v41, %v426_v39 }
  0x20   : > { %3763 = vmatprep.subr.bf16.mxu0 %v3851_v29  ;;  %3810 = vmatprep.subr.bf16.mxu1 %v3851_v29  ;;  %v424_v37 = vld [vmem:[#allocation2 + $0x8] sm:$0xf]  ;;  %v425_v38 = vld [vmem:[#allocation2 + $0xc] sm:$0xf]  ;;  %v427_v40 = vld [vmem:[#allocation2 + $0x14] sm:$0xf]  ;;  %v3982_v42 = vmax.bf16 %v3884_v41, %v422_v35  ;;  %v3988_v47 = vmax.bf16 %v3884_v41, %v423_v36 }
  0x21   : > { %v3974_v32 = vsub.s32 0, %v537_v30  ;;  %v3979_v34 = vsub.s32 1, %v537_v30  ;;  %v428_v44 = vld [vmem:[#allocation2 + $0x18] sm:$0xf]  ;;  %v429_v45 = vld [vmem:[#allocation2 + $0x1c] sm:$0xf]  ;;  %v3991_v48 = vmax.bf16 %v3884_v41, %v424_v37  ;;  %v3994_v49 = vmax.bf16 %v3884_v41, %v425_v38 }
  0x22   : > { %v430_v46 = vld [vmem:[#allocation2 + $0x20] sm:$0xf]  ;;  %v4000_v51 = vmax.bf16 %v3884_v41, %v427_v40  ;;  %v4003_v52 = vmax.bf16 %v3884_v41, %v428_v44  ;;  %v4006_v53 = vmax.bf16 %v3884_v41, %v429_v45  ;;  %v4017_v56 = vld [vmem:[%s5488_s1 + $0x4] sm:$0x3]  ;;  %v3855_v10 = vld [vmem:[%s5489_s2 + $0x10] sm:$0xff]   ;;  %vm1191_vm3 = vcmask 1046532  }
  0x23   : > { %3764 = vmatpush3.bf16.msra.mxu0 %v3851_v29  ;;  %3818 = vmatpush3.bf16.msra.mxu1 %v3851_v29  ;;  %v530_v54 = vld [vmem:[%s5488_s1] sm:$0x3]  ;;  %v531_v55 = vld [vmem:[%s5488_s1 + $0x2] sm:$0x3]  ;;  %v447_v62 = vld [vmem:[#allocation2 + $0x64] sm:$0xf]  ;;  %v4020_v63 = vmax.bf16 %v3884_v41, %v430_v46  ;;  %v4024_v0 = vpack.i.b16 %v4017_v56, %v4017_v56 }
  0x24   : > { %3765 = vmatprep.subr.bf16.mxu0 %v3852_v31  ;;  %3811 = vmatprep.subr.bf16.mxu1 %v3852_v31  ;;  %v534_v57 = vpack.i.b16 %v530_v54, %v530_v54  ;;  %v576_v58 = vshrl.u32 %v530_v54, 16  ;;  %v1370_v59 = vpack.i.b16 %v531_v55, %v531_v55  ;;  %v1444_v60 = vshrl.u32 %v531_v55, 16  ;;  %v446_v61 = vld [vmem:[#allocation2 + $0x60] sm:$0xf]  ;;  %v3856_v26 = vld [vmem:[%s5489_s2 + $0x8] sm:$0xff]   ;;  %vm4079_vm4 = vmor %vm1190_vm0, %vm1191_vm3 }
  0x25   : > { %v4027_v1 = vmax.bf16 %v3884_v41, %v446_v61  ;;  %v4030_v2 = vmax.bf16 %v3884_v41, %v447_v62  ;;  %v2237_v9 = vrot.slane %v4024_v0, %v3974_v32  ;;  %vm636_vm2 = vsmask.f32 7440  ;;  %v3857_v54 = vld [vmem:[%s5489_s2] sm:$0xff]  }
  0x26   : > { %v539_v3 = vrot.slane %v534_v57, %v3974_v32  ;;  %v577_v4 = vpack.i.b16 %v576_v58, %v576_v58  ;;  %v1089_v5 = vrot.slane %v534_v57, %v3979_v34  ;;  %v1375_v6 = vrot.slane %v1370_v59, %v3974_v32  ;;  %vm4102_vm5 = vmor %vm635_vm1, %vm636_vm2 }
  0x27   : > { %3766 = vmatpush3.bf16.msra.mxu0 %v3852_v31  ;;  %3819 = vmatpush3.bf16.msra.mxu1 %v3852_v31  ;;  %v1445_v7 = vpack.i.b16 %v1444_v60, %v1444_v60  ;;  %v1954_v8 = vrot.slane %v1370_v59, %v3979_v34  ;;  %v4051_v17 = vcombine.low %v2237_v9, %v2237_v9  ;;  %v2306_v25 = vshrl.u32 %v4017_v56, 16  ;;  %v453_v56 = vld [vmem:[#allocation2 + $0x7c] sm:$0xf] }
  0x28   : > { %3767 = vmatprep.subr.bf16.mxu0 %v3853_v33  ;;  %3812 = vmatprep.subr.bf16.mxu1 %v3853_v33  ;;  %v4041_v11 = vcombine.low %v539_v3, %v539_v3  ;;  %v582_v12 = vrot.slane %v577_v4, %v3974_v32  ;;  %v4044_v13 = vcombine.low %v1089_v5, %v1089_v5 }
  0x29   : > { %v4046_v14 = vcombine.low %v1375_v6, %v1375_v6  ;;  %v1450_v15 = vrot.slane %v1445_v7, %v3974_v32  ;;  %v4049_v16 = vcombine.low %v1954_v8, %v1954_v8 }
  0x2a   : > { %v544_v18 = vmul.bf16 %v4041_v11, %v3982_v42  ;;  %v545_v19 = vmul.bf16 %v4041_v11, %v3988_v47  ;;  %v4057_v20 = vcombine.low %v582_v12, %v582_v12  ;;  %v1094_v21 = vmul.bf16 %v4044_v13, %v3982_v42 }
  0x2b   : > { %3768 = vmatpush3.bf16.msra.mxu0 %v3853_v33  ;;  %3820 = vmatpush3.bf16.msra.mxu1 %v3853_v33  ;;  %v1095_v22 = vmul.bf16 %v4044_v13, %v3988_v47  ;;  %v1096_v23 = vmul.bf16 %v4044_v13, %v3991_v48  ;;  %v1380_v24 = vmul.bf16 %v4046_v14, %v3994_v49 }
  0x2c   : > { %3769 = vmatprep.subr.bf16.mxu0 %v3854_v43  ;;  %3813 = vmatprep.subr.bf16.mxu1 %v3854_v43  ;;  %v587_v27 = vmul.bf16 %v4057_v20, %v3982_v42  ;;  %v588_v28 = vmul.bf16 %v4057_v20, %v3988_v47  ;;  %v589_v29 = vmul.bf16 %v4057_v20, %v3991_v48  ;;  %v3652_v31 = vrot.slane %v1094_v21, 9  ;;  %v448_v42 = vld [vmem:[#allocation2 + $0x68] sm:$0xf] }
  0x2d   : > { %v1195_v33 = vrot.slane %v1095_v22, 5  ;;  %v1198_v35 = vrot.slane %v1096_v23, 5  ;;  %v1381_v36 = vmul.bf16 %v4046_v14, %v3997_v50  ;;  %v4085_v37 = vcombine.low %v1450_v15, %v1450_v15 }
  0x2e   : > { %v639_v38 = vshrl.u32 %v587_v27, 16  ;;  %v642_v39 = vshll.u32 %v587_v27, 16  ;;  %v648_v40 = vshll.u32 %v588_v28, 16  ;;  %v658_v44 = vshll.u32 %v589_v29, 16 }
  0x2f   : > { %3770 = vmatpush3.bf16.msra.mxu0 %v3854_v43  ;;  %3821 = vmatpush3.bf16.msra.mxu1 %v3854_v43  ;;  %v652_v43 = vshrl.u32 %v588_v28, 16  ;;  %v1196_v45 = vsel %vm4079_vm4, %v3652_v31, %v1195_v33  ;;  %v1197_v46 = vrot.slane %v1195_v33, 4  ;;  %v1455_v48 = vmul.bf16 %v4085_v37, %v3994_v49 }
  0x30   : > { %3771 = vmatprep.subr.bf16.mxu0 %v3855_v10  ;;  %3814 = vmatprep.subr.bf16.mxu1 %v3855_v10  ;;  %v641_v55 = vrot.slane %v639_v38, 4  ;;  %v644_v57 = vrot.slane %v642_v39, 5  ;;  %v650_v58 = vrot.slane %v648_v40, 5  ;;  %v660_v60 = vrot.slane %v658_v44, 5 }
  0x31   : > { %v654_v59 = vrot.slane %v652_v43, 4  ;;  %v1199_v61 = vsel %vm4079_vm4, %v1197_v46, %v1198_v35  ;;  %v1456_v62 = vmul.bf16 %v4085_v37, %v3997_v50  ;;  %v1457_v3 = vmul.bf16 %v4085_v37, %v4000_v51 }
  0x32   : > { %v645_v4 = vor.u32 %v644_v57, %v641_v55  ;;  %v1504_v6 = vshrl.u32 %v1455_v48, 16  ;;  %v1507_v7 = vshll.u32 %v1455_v48, 16  ;;  %v1959_v15 = vmul.bf16 %v4049_v16, %v3994_v49 }
  0x33   : > { %3772 = vmatpush3.bf16.msra.mxu0 %v3855_v10  ;;  %3822 = vmatpush3.bf16.msra.mxu1 %v3855_v10  ;;  %v655_v5 = vor.u32 %v654_v59, %v650_v58  ;;  %v1513_v9 = vshll.u32 %v1456_v62, 16  ;;  %v1517_v10 = vshrl.u32 %v1456_v62, 16  ;;  %v1523_v12 = vshll.u32 %v1457_v3, 16 }
  0x34   : > { %3773 = vmatprep.subr.bf16.mxu0 %v3856_v26  ;;  %3815 = vmatprep.subr.bf16.mxu1 %v3856_v26  ;;  %v646_v21 = vrot.slane %v645_v4, 4  ;;  %v1506_v23 = vrot.slane %v1504_v6, 4  ;;  %v1509_v27 = vrot.slane %v1507_v7, 5  ;;  %v1960_v31 = vmul.bf16 %v4049_v16, %v3997_v50 }
  0x35   : > { %v656_v22 = vrot.slane %v655_v5, 4  ;;  %v1515_v28 = vrot.slane %v1513_v9, 5  ;;  %v1525_v29 = vrot.slane %v1523_v12, 5  ;;  %v1961_v39 = vmul.bf16 %v4049_v16, %v4000_v51  ;;  %v450_v5 = vld [vmem:[#allocation2 + $0x70] sm:$0xf] }
  0x36   : > { %v651_v33 = vsel %vm4102_vm5, %v646_v21, %v650_v58  ;;  %v1510_v38 = vor.u32 %v1509_v27, %v1506_v23  ;;  %v3671_v46 = vrot.slane %v1959_v15, 9  ;;  %v2057_v55 = vrot.slane %v1960_v31, 5  ;;  %v451_v9 = vld [vmem:[#allocation2 + $0x74] sm:$0xf] }
  0x37   : > { %3774 = vmatpush3.bf16.msra.mxu0 %v3856_v26  ;;  %3823 = vmatpush3.bf16.msra.mxu1 %v3856_v26  ;;  %v1519_v26 = vrot.slane %v1517_v10, 4  ;;  %v661_v35 = vsel %vm4102_vm5, %v656_v22, %v660_v60  ;;  %v1054_v40 = vadd.bf16 %v651_v33, %v544_v18  ;;  %v2060_v57 = vrot.slane %v1961_v39, 5  ;;  %v449_v18 = vld [vmem:[#allocation2 + $0x6c] sm:$0xf]  ;;  %v452_v10 = vld [vmem:[#allocation2 + $0x78] sm:$0xf] }
  0x38   : > { %3775 = vmatprep.subr.bf16.mxu0 %v3857_v54  ;;  %3816 = vmatprep.subr.bf16.mxu1 %v3857_v54  ;;  %v1055_v43 = vadd.bf16 %v661_v35, %v545_v19  ;;  %v1511_v48 = vrot.slane %v1510_v38, 4  ;;  %v2242_v58 = vmul.bf16 %v4051_v17, %v4003_v52  ;;  %v2058_v19 = vsel %vm4079_vm4, %v3671_v46, %v2057_v55 }
  0x39   : > { %v1520_v44 = vor.u32 %v1519_v26, %v1515_v28  ;;  %v1337_v59 = vadd.bf16 %v1196_v45, %v1054_v40  ;;  %v2059_v3 = vrot.slane %v2057_v55, 4  ;;  %v2307_v4 = vpack.i.b16 %v2306_v25, %v2306_v25 }
  0x3a   : > { %v1338_v60 = vadd.bf16 %v1199_v61, %v1055_v43  ;;  %v1516_v47 = vsel %vm4102_vm5, %v1511_v48, %v1515_v28  ;;  %v2816_v7 = vrot.slane %v4024_v0, %v3979_v34  ;;  %v4150_v15 = vmax.bf16 %v3884_v41, %v449_v18 }
  0x3b   : > { %3776 = vmatpush3.bf16.msra.mxu0 %v3857_v54  ;;  %3824 = vmatpush3.bf16.msra.mxu1 %v3857_v54  ;;  %v1521_v62 = vrot.slane %v1520_v44, 4  ;;  %v2243_v54 = vmul.bf16 %v4051_v17, %v4006_v53  ;;  %v1412_v45 = vadd.bf16 %v1380_v24, %v1337_v59  ;;  %v2061_v25 = vsel %vm4079_vm4, %v2059_v3, %v2060_v57 }
  0x3c   : > { %v1413_v61 = vadd.bf16 %v1381_v36, %v1338_v60  ;;  %v2312_v12 = vrot.slane %v2307_v4, %v3974_v32  ;;  %v4147_v24 = vmax.bf16 %v3884_v41, %v448_v42  ;;  %v4152_v22 = vcombine.low %v2816_v7, %v2816_v7  ;;  %v454_v60 = vld [vmem:[#allocation2 + $0x80] sm:$0xf] }
  0x3d   : > { %v1526_v6 = vsel %vm4102_vm5, %v1521_v62, %v1525_v29  ;;  %v1919_v36 = vadd.bf16 %v1516_v47, %v1412_v45  ;;  %v4155_v34 = vmax.bf16 %v3884_v41, %v450_v5  ;;  %v4160_v23 = vmax.bf16 %v3884_v41, %v451_v9 }
  0x3e   : > { %v1920_v21 = vadd.bf16 %v1526_v6, %v1413_v61  ;;  %v4157_v0 = vcombine.low %v2312_v12, %v2312_v12  ;;  %v4163_v32 = vmax.bf16 %v3884_v41, %v452_v10  ;;  %v4166_v27 = vmax.bf16 %v3884_v41, %v453_v56 }
  0x3f   : > { %v2199_v28 = vadd.bf16 %v2058_v19, %v1919_v36  ;;  %v2821_v29 = vmul.bf16 %v4152_v22, %v4003_v52  ;;  %v2822_v31 = vmul.bf16 %v4152_v22, %v4006_v53  ;;  %v2823_v39 = vmul.bf16 %v4152_v22, %v4020_v63 }
  0x40   : > { %v2200_v26 = vadd.bf16 %v2061_v25, %v1920_v21  ;;  %v2317_v33 = vmul.bf16 %v4157_v0, %v4003_v52  ;;  %v2318_v35 = vmul.bf16 %v4157_v0, %v4006_v53  ;;  %v2319_v38 = vmul.bf16 %v4157_v0, %v4020_v63 }
  0x41   : > { %v2274_v40 = vadd.bf16 %v2242_v58, %v2199_v28  ;;  %v3690_v44 = vrot.slane %v2821_v29, 9  ;;  %v2919_v46 = vrot.slane %v2822_v31, 5  ;;  %v2922_v47 = vrot.slane %v2823_v39, 5 }
  0x42   : > { %v2275_v43 = vadd.bf16 %v2243_v54, %v2200_v26  ;;  %v2366_v48 = vshrl.u32 %v2317_v33, 16  ;;  %v2369_v55 = vshll.u32 %v2317_v33, 16  ;;  %v2375_v57 = vshll.u32 %v2318_v35, 16 }
  0x43   : > { %v2379_v59 = vshrl.u32 %v2318_v35, 16  ;;  %v2385_v62 = vshll.u32 %v2319_v38, 16  ;;  %v2920_v42 = vsel %vm4079_vm4, %v3690_v44, %v2919_v46  ;;  %v2921_v18 = vrot.slane %v2919_v46, 4 }
  0x44   : > { %v2368_v19 = vrot.slane %v2366_v48, 4  ;;  %v2371_v3 = vrot.slane %v2369_v55, 5  ;;  %v2377_v4 = vrot.slane %v2375_v57, 5  ;;  %v4185_v54 = vmax.bf16 %v3884_v41, %v454_v60 }
  0x45   : > { %v2381_v5 = vrot.slane %v2379_v59, 4  ;;  %v2387_v45 = vrot.slane %v2385_v62, 5  ;;  %v2923_v58 = vsel %vm4079_vm4, %v2921_v18, %v2922_v47  ;;  %v560_v61 = vmul.bf16 %v4041_v11, %v4027_v1 }
  0x46   : > { %v2372_v6 = vor.u32 %v2371_v3, %v2368_v19  ;;  %v561_v9 = vmul.bf16 %v4041_v11, %v4030_v2  ;;  %v611_v10 = vmul.bf16 %v4057_v20, %v4027_v1  ;;  %v612_v56 = vmul.bf16 %v4057_v20, %v4030_v2 }
  0x47   : > { %v2382_v7 = vor.u32 %v2381_v5, %v2377_v4  ;;  %v613_v25 = vmul.bf16 %v4057_v20, %v4147_v24  ;;  %v1118_v12 = vmul.bf16 %v4044_v13, %v4027_v1  ;;  %v1119_v36 = vmul.bf16 %v4044_v13, %v4030_v2 }
  0x48   : > { %v2373_v21 = vrot.slane %v2372_v6, 4  ;;  %v831_v26 = vshrl.u32 %v611_v10, 16  ;;  %v834_v29 = vshll.u32 %v611_v10, 16  ;;  %v840_v31 = vshll.u32 %v612_v56, 16 }
  0x49   : > { %v2383_v28 = vrot.slane %v2382_v7, 4  ;;  %v844_v33 = vshrl.u32 %v612_v56, 16  ;;  %v850_v35 = vshll.u32 %v613_v25, 16  ;;  %v1120_v38 = vmul.bf16 %v4044_v13, %v4147_v24 }
  0x4a   : > { %v2378_v39 = vsel %vm4102_vm5, %v2373_v21, %v2377_v4  ;;  %v833_v46 = vrot.slane %v831_v26, 4  ;;  %v836_v48 = vrot.slane %v834_v29, 5  ;;  %v842_v59 = vrot.slane %v840_v31, 5 }
  0x4b   : > { %v2388_v44 = vsel %vm4102_vm5, %v2383_v28, %v2387_v45  ;;  %v2781_v55 = vadd.bf16 %v2378_v39, %v2274_v40  ;;  %v846_v60 = vrot.slane %v844_v33, 4  ;;  %v852_v18 = vrot.slane %v850_v35, 5 }
  0x4c   : > { %v2782_v57 = vadd.bf16 %v2388_v44, %v2275_v43  ;;  %v837_v62 = vor.u32 %v836_v48, %v833_v46  ;;  %v3660_v47 = vrot.slane %v1118_v12, 9  ;;  %v1251_v19 = vrot.slane %v1119_v36, 5 }
  0x4d   : > { %v3061_v3 = vadd.bf16 %v2920_v42, %v2781_v55  ;;  %v847_v6 = vor.u32 %v846_v60, %v842_v59  ;;  %v1254_v7 = vrot.slane %v1120_v38, 5  ;;  %v1396_v45 = vmul.bf16 %v4046_v14, %v4150_v15 }
  0x4e   : > { %v3062_v5 = vadd.bf16 %v2923_v58, %v2782_v57  ;;  %v838_v10 = vrot.slane %v837_v62, 4  ;;  %v1252_v4 = vsel %vm4079_vm4, %v3660_v47, %v1251_v19  ;;  %v1253_v56 = vrot.slane %v1251_v19, 4 }
  0x4f   : > { %v848_v43 = vrot.slane %v847_v6, 4  ;;  %v1397_v25 = vmul.bf16 %v4046_v14, %v4155_v34  ;;  %v1479_v12 = vmul.bf16 %v4085_v37, %v4150_v15  ;;  %v1480_v36 = vmul.bf16 %v4085_v37, %v4155_v34 }
  0x50   : > { %v3707_v40 = vcombine.low %v3061_v3, %v3062_v5  ;;  %v843_v42 = vsel %vm4102_vm5, %v838_v10, %v842_v59  ;;  %v1255_v58 = vsel %vm4079_vm4, %v1253_v56, %v1254_v7  ;;  %v1481_v21 = vmul.bf16 %v4085_v37, %v4160_v23 }
  0x51   : > { %v853_v28 = vsel %vm4102_vm5, %v848_v43, %v852_v18  ;;  %v1070_v26 = vadd.bf16 %v843_v42, %v560_v61  ;;  %v1696_v29 = vshrl.u32 %v1479_v12, 16  ;;  %v1699_v31 = vshll.u32 %v1479_v12, 16 }
  0x52   : > { %3777 = vmatprep.mubr.bf16.mxu0 %v3707_v40  ;;  %v1071_v33 = vadd.bf16 %v853_v28, %v561_v9  ;;  %v1705_v35 = vshll.u32 %v1480_v36, 16  ;;  %v1709_v38 = vshrl.u32 %v1480_v36, 16  ;;  %v1715_v39 = vshll.u32 %v1481_v21, 16 }
  0x53   : > { %v1353_v44 = vadd.bf16 %v1252_v4, %v1070_v26  ;;  %v1698_v46 = vrot.slane %v1696_v29, 4  ;;  %v1701_v48 = vrot.slane %v1699_v31, 5  ;;  %v1983_v55 = vmul.bf16 %v4049_v16, %v4150_v15 }
  0x54   : > { %v1354_v57 = vadd.bf16 %v1255_v58, %v1071_v33  ;;  %v1707_v59 = vrot.slane %v1705_v35, 5  ;;  %v1711_v60 = vrot.slane %v1709_v38, 4  ;;  %v1717_v62 = vrot.slane %v1715_v39, 5 }
  0x55   : > { %v1428_v47 = vadd.bf16 %v1396_v45, %v1353_v44  ;;  %v1702_v19 = vor.u32 %v1701_v48, %v1698_v46  ;;  %v1984_v61 = vmul.bf16 %v4049_v16, %v4155_v34  ;;  %v1985_v9 = vmul.bf16 %v4049_v16, %v4160_v23 }
  0x56   : > { %v1429_v18 = vadd.bf16 %v1397_v25, %v1354_v57  ;;  %v1712_v3 = vor.u32 %v1711_v60, %v1707_v59  ;;  %v3679_v5 = vrot.slane %v1983_v55, 9  ;;  %v2258_v6 = vmul.bf16 %v4051_v17, %v4163_v32 }
  0x57   : > { %v1703_v7 = vrot.slane %v1702_v19, 4  ;;  %v2113_v10 = vrot.slane %v1984_v61, 5  ;;  %v2116_v4 = vrot.slane %v1985_v9, 5  ;;  %v2259_v56 = vmul.bf16 %v4051_v17, %v4166_v27 }
  0x58   : > { %v1713_v45 = vrot.slane %v1712_v3, 4  ;;  %v2341_v40 = vmul.bf16 %v4157_v0, %v4163_v32  ;;  %v2342_v43 = vmul.bf16 %v4157_v0, %v4166_v27  ;;  %v2343_v25 = vmul.bf16 %v4157_v0, %v4185_v54  ;;  %v433_v3 = vld [vmem:[#allocation2 + $0x2c] sm:$0xf] }
  0x59   : > { %v1708_v12 = vsel %vm4102_vm5, %v1703_v7, %v1707_v59  ;;  %v2114_v42 = vsel %vm4079_vm4, %v3679_v5, %v2113_v10  ;;  %v2115_v58 = vrot.slane %v2113_v10, 4  ;;  %v2845_v36 = vmul.bf16 %v4152_v22, %v4163_v32 }
  0x5a   : > { %v1718_v21 = vsel %vm4102_vm5, %v1713_v45, %v1717_v62  ;;  %v1935_v28 = vadd.bf16 %v1708_v12, %v1428_v47  ;;  %v2558_v26 = vshrl.u32 %v2341_v40, 16  ;;  %v2561_v29 = vshll.u32 %v2341_v40, 16  ;;  %v431_v62 = vld [vmem:[#allocation2 + $0x24] sm:$0xf]  ;;  %v432_v47 = vld [vmem:[#allocation2 + $0x28] sm:$0xf] }
  0x5b   : > { %v1936_v31 = vadd.bf16 %v1718_v21, %v1429_v18  ;;  %v2117_v33 = vsel %vm4079_vm4, %v2115_v58, %v2116_v4  ;;  %v2567_v35 = vshll.u32 %v2342_v43, 16  ;;  %v2571_v38 = vshrl.u32 %v2342_v43, 16 }
  0x5c   : > { %v2215_v39 = vadd.bf16 %v2114_v42, %v1935_v28  ;;  %v2560_v44 = vrot.slane %v2558_v26, 4  ;;  %v2563_v46 = vrot.slane %v2561_v29, 5  ;;  %v2577_v48 = vshll.u32 %v2343_v25, 16 }
  0x5d   : > { %v2216_v55 = vadd.bf16 %v2117_v33, %v1936_v31  ;;  %v2569_v57 = vrot.slane %v2567_v35, 5  ;;  %v2573_v59 = vrot.slane %v2571_v38, 4  ;;  %v2846_v60 = vmul.bf16 %v4152_v22, %v4166_v27 }
  0x5e   : > { %v2290_v19 = vadd.bf16 %v2258_v6, %v2215_v39  ;;  %v2564_v61 = vor.u32 %v2563_v46, %v2560_v44  ;;  %v2579_v9 = vrot.slane %v2577_v48, 5  ;;  %v2847_v18 = vmul.bf16 %v4152_v22, %v4185_v54 }
  0x5f   : > { %v2291_v5 = vadd.bf16 %v2259_v56, %v2216_v55  ;;  %v2574_v7 = vor.u32 %v2573_v59, %v2569_v57  ;;  %v3698_v10 = vrot.slane %v2845_v36, 9  ;;  %v2975_v4 = vrot.slane %v2846_v60, 5 }
  0x60   : > { %v2565_v45 = vrot.slane %v2564_v61, 4  ;;  %v2978_v40 = vrot.slane %v2847_v18, 5  ;;  %v4256_v43 = vmax.bf16 %v3884_v41, %v431_v62  ;;  %v4259_v25 = vmax.bf16 %v3884_v41, %v432_v47 }
  0x61   : > { %v2575_v12 = vrot.slane %v2574_v7, 4  ;;  %v2976_v6 = vsel %vm4079_vm4, %v3698_v10, %v2975_v4  ;;  %v2977_v42 = vrot.slane %v2975_v4, 4  ;;  %v4264_v58 = vmax.bf16 %v3884_v41, %v433_v3 }
  0x62   : > { %v2570_v56 = vsel %vm4102_vm5, %v2565_v45, %v2569_v57  ;;  %v546_v36 = vmul.bf16 %v4041_v11, %v3994_v49  ;;  %v547_v21 = vmul.bf16 %v4041_v11, %v3997_v50  ;;  %v590_v28 = vmul.bf16 %v4057_v20, %v3994_v49 }
  0x63   : > { %v2580_v26 = vsel %vm4102_vm5, %v2575_v12, %v2579_v9  ;;  %v2797_v29 = vadd.bf16 %v2570_v56, %v2290_v19  ;;  %v2979_v31 = vsel %vm4079_vm4, %v2977_v42, %v2978_v40  ;;  %v591_v33 = vmul.bf16 %v4057_v20, %v3997_v50 }
  0x64   : > { %v2798_v35 = vadd.bf16 %v2580_v26, %v2291_v5  ;;  %v592_v38 = vmul.bf16 %v4057_v20, %v4000_v51  ;;  %v663_v39 = vshrl.u32 %v590_v28, 16  ;;  %v666_v44 = vshll.u32 %v590_v28, 16 }
  0x65   : > { %v3077_v46 = vadd.bf16 %v2976_v6, %v2797_v29  ;;  %v672_v48 = vshll.u32 %v591_v33, 16  ;;  %v676_v55 = vshrl.u32 %v591_v33, 16  ;;  %v1097_v57 = vmul.bf16 %v4044_v13, %v3994_v49 }
  0x66   : > { %v3078_v59 = vadd.bf16 %v2979_v31, %v2798_v35  ;;  %v665_v60 = vrot.slane %v663_v39, 4  ;;  %v668_v62 = vrot.slane %v666_v44, 5  ;;  %v682_v47 = vshll.u32 %v592_v38, 16 }
  0x67   : > { %v674_v19 = vrot.slane %v672_v48, 5  ;;  %v678_v61 = vrot.slane %v676_v55, 4  ;;  %v1098_v9 = vmul.bf16 %v4044_v13, %v3997_v50  ;;  %v1099_v18 = vmul.bf16 %v4044_v13, %v4000_v51 }
  0x68   : > { %v3715_v3 = vcombine.low %v3077_v46, %v3078_v59  ;;  %v669_v5 = vor.u32 %v668_v62, %v665_v60  ;;  %v684_v7 = vrot.slane %v682_v47, 5  ;;  %v3653_v10 = vrot.slane %v1097_v57, 9 }
  0x69   : > { %v679_v4 = vor.u32 %v678_v61, %v674_v19  ;;  %v1202_v45 = vrot.slane %v1098_v9, 5  ;;  %v1205_v40 = vrot.slane %v1099_v18, 5  ;;  %v1382_v49 = vmul.bf16 %v4046_v14, %v4003_v52 }
  0x6a   : > { %3793 = vmatprep.mubr.bf16.mxu1 %v3715_v3  ;;  %v670_v12 = vrot.slane %v669_v5, 4  ;;  %v1383_v6 = vmul.bf16 %v4046_v14, %v4006_v53  ;;  %v1458_v50 = vmul.bf16 %v4085_v37, %v4003_v52  ;;  %v1459_v51 = vmul.bf16 %v4085_v37, %v4006_v53 }
  0x6b   : > { %v680_v42 = vrot.slane %v679_v4, 4  ;;  %v1203_v56 = vsel %vm4079_vm4, %v3653_v10, %v1202_v45  ;;  %v1204_v28 = vrot.slane %v1202_v45, 4  ;;  %v1460_v26 = vmul.bf16 %v4085_v37, %v4020_v63 }
  0x6c   : > { %v675_v29 = vsel %vm4102_vm5, %v670_v12, %v674_v19  ;;  %v1528_v31 = vshrl.u32 %v1458_v50, 16  ;;  %v1531_v33 = vshll.u32 %v1458_v50, 16  ;;  %v1537_v35 = vshll.u32 %v1459_v51, 16 }
  0x6d   : > { %v685_v38 = vsel %vm4102_vm5, %v680_v42, %v684_v7  ;;  %v1056_v39 = vadd.bf16 %v675_v29, %v546_v36  ;;  %v1206_v44 = vsel %vm4079_vm4, %v1204_v28, %v1205_v40  ;;  %v1541_v46 = vshrl.u32 %v1459_v51, 16 }
  0x6e   : > { %v1057_v48 = vadd.bf16 %v685_v38, %v547_v21  ;;  %v1530_v55 = vrot.slane %v1528_v31, 4  ;;  %v1533_v57 = vrot.slane %v1531_v33, 5  ;;  %v1539_v59 = vrot.slane %v1537_v35, 5 }
  0x6f   : > { %v1339_v60 = vadd.bf16 %v1203_v56, %v1056_v39  ;;  %v1543_v62 = vrot.slane %v1541_v46, 4  ;;  %v1547_v47 = vshll.u32 %v1460_v26, 16  ;;  %v1962_v19 = vmul.bf16 %v4049_v16, %v4003_v52 }
  0x70   : > { %v1340_v61 = vadd.bf16 %v1206_v44, %v1057_v48  ;;  %v1534_v9 = vor.u32 %v1533_v57, %v1530_v55  ;;  %v1963_v18 = vmul.bf16 %v4049_v16, %v4006_v53  ;;  %v1964_v36 = vmul.bf16 %v4049_v16, %v4020_v63 }
  0x71   : > { %v1414_v3 = vadd.bf16 %v1382_v49, %v1339_v60  ;;  %v1544_v5 = vor.u32 %v1543_v62, %v1539_v59  ;;  %v1549_v21 = vrot.slane %v1547_v47, 5  ;;  %v3672_v7 = vrot.slane %v1962_v19, 9  ;;  %v455_v19 = vld [vmem:[#allocation2 + $0x84] sm:$0xf] }
  0x72   : > { %v1415_v10 = vadd.bf16 %v1383_v6, %v1340_v61  ;;  %v1535_v4 = vrot.slane %v1534_v9, 4  ;;  %v2064_v45 = vrot.slane %v1963_v18, 5  ;;  %v2067_v40 = vrot.slane %v1964_v36, 5  ;;  %v456_v61 = vld [vmem:[#allocation2 + $0x88] sm:$0xf] }
  0x73   : > { %v1545_v12 = vrot.slane %v1544_v5, 4  ;;  %v2244_v50 = vmul.bf16 %v4051_v17, %v4256_v43  ;;  %v2245_v51 = vmul.bf16 %v4051_v17, %v4259_v25  ;;  %v2320_v42 = vmul.bf16 %v4157_v0, %v4256_v43  ;;  %v457_v5 = vld [vmem:[#allocation2 + $0x8c] sm:$0xf] }
  0x74   : > { %v1540_v49 = vsel %vm4102_vm5, %v1535_v4, %v1539_v59  ;;  %v2065_v56 = vsel %vm4079_vm4, %v3672_v7, %v2064_v45  ;;  %v2066_v6 = vrot.slane %v2064_v45, 4  ;;  %v2321_v28 = vmul.bf16 %v4157_v0, %v4259_v25 }
  0x75   : > { %v1550_v26 = vsel %vm4102_vm5, %v1545_v12, %v1549_v21  ;;  %v1921_v29 = vadd.bf16 %v1540_v49, %v1414_v3  ;;  %v2322_v31 = vmul.bf16 %v4157_v0, %v4264_v58  ;;  %v2390_v33 = vshrl.u32 %v2320_v42, 16 }
  0x76   : > { %v1922_v35 = vadd.bf16 %v1550_v26, %v1415_v10  ;;  %v2068_v38 = vsel %vm4079_vm4, %v2066_v6, %v2067_v40  ;;  %v2393_v39 = vshll.u32 %v2320_v42, 16  ;;  %v2399_v44 = vshll.u32 %v2321_v28, 16 }
  0x77   : > { %v2201_v46 = vadd.bf16 %v2065_v56, %v1921_v29  ;;  %v2392_v48 = vrot.slane %v2390_v33, 4  ;;  %v2403_v55 = vshrl.u32 %v2321_v28, 16  ;;  %v2409_v57 = vshll.u32 %v2322_v31, 16 }
  0x78   : > { %v2202_v59 = vadd.bf16 %v2068_v38, %v1922_v35  ;;  %v2395_v60 = vrot.slane %v2393_v39, 5  ;;  %v2401_v62 = vrot.slane %v2399_v44, 5  ;;  %v2824_v47 = vmul.bf16 %v4152_v22, %v4256_v43 }
  0x79   : > { %v2276_v9 = vadd.bf16 %v2244_v50, %v2201_v46  ;;  %v2405_v18 = vrot.slane %v2403_v55, 4  ;;  %v2411_v36 = vrot.slane %v2409_v57, 5  ;;  %v2825_v3 = vmul.bf16 %v4152_v22, %v4259_v25 }
  0x7a   : > { %v2277_v21 = vadd.bf16 %v2245_v51, %v2202_v59  ;;  %v2396_v7 = vor.u32 %v2395_v60, %v2392_v48  ;;  %v2826_v10 = vmul.bf16 %v4152_v22, %v4264_v58  ;;  %v3691_v4 = vrot.slane %v2824_v47, 9 }
  0x7b   : > { %v2406_v45 = vor.u32 %v2405_v18, %v2401_v62  ;;  %v2926_v40 = vrot.slane %v2825_v3, 5  ;;  %v4337_v12 = vmax.bf16 %v3884_v41, %v455_v19  ;;  %v4340_v42 = vmax.bf16 %v3884_v41, %v456_v61 }
  0x7c   : > { %v2397_v50 = vrot.slane %v2396_v7, 4  ;;  %v2929_v49 = vrot.slane %v2826_v10, 5  ;;  %v4343_v56 = vmax.bf16 %v3884_v41, %v457_v5  ;;  %v562_v51 = vmul.bf16 %v4041_v11, %v4150_v15 }
  0x7d   : > { %v2407_v6 = vrot.slane %v2406_v45, 4  ;;  %v2927_v28 = vsel %vm4079_vm4, %v3691_v4, %v2926_v40  ;;  %v2928_v26 = vrot.slane %v2926_v40, 4  ;;  %v563_v29 = vmul.bf16 %v4041_v11, %v4155_v34 }
  0x7e   : > { %v2402_v31 = vsel %vm4102_vm5, %v2397_v50, %v2401_v62  ;;  %v614_v33 = vmul.bf16 %v4057_v20, %v4150_v15  ;;  %v615_v35 = vmul.bf16 %v4057_v20, %v4155_v34  ;;  %v616_v38 = vmul.bf16 %v4057_v20, %v4160_v23 }
  0x7f   : > { %v2412_v39 = vsel %vm4102_vm5, %v2407_v6, %v2411_v36  ;;  %v2783_v44 = vadd.bf16 %v2402_v31, %v2276_v9  ;;  %v2930_v46 = vsel %vm4079_vm4, %v2928_v26, %v2929_v49  ;;  %v1121_v48 = vmul.bf16 %v4044_v13, %v4150_v15 }
  0x80   : > { %v2784_v55 = vadd.bf16 %v2412_v39, %v2277_v21  ;;  %v855_v57 = vshrl.u32 %v614_v33, 16  ;;  %v858_v59 = vshll.u32 %v614_v33, 16  ;;  %v864_v60 = vshll.u32 %v615_v35, 16 }
  0x81   : > { %v3063_v62 = vadd.bf16 %v2927_v28, %v2783_v44  ;;  %v868_v47 = vshrl.u32 %v615_v35, 16  ;;  %v874_v19 = vshll.u32 %v616_v38, 16  ;;  %v1122_v61 = vmul.bf16 %v4044_v13, %v4155_v34 }
  0x82   : > { %v3064_v18 = vadd.bf16 %v2930_v46, %v2784_v55  ;;  %v857_v3 = vrot.slane %v855_v57, 4  ;;  %v860_v36 = vrot.slane %v858_v59, 5  ;;  %v866_v9 = vrot.slane %v864_v60, 5 }
  0x83   : > { %v870_v5 = vrot.slane %v868_v47, 4  ;;  %v876_v7 = vrot.slane %v874_v19, 5  ;;  %v1123_v10 = vmul.bf16 %v4044_v13, %v4160_v23  ;;  %v3661_v4 = vrot.slane %v1121_v48, 9 }
  0x84   : > { %v3708_v21 = vcombine.low %v3063_v62, %v3064_v18  ;;  %v861_v45 = vor.u32 %v860_v36, %v857_v3  ;;  %v1258_v40 = vrot.slane %v1122_v61, 5  ;;  %v1398_v50 = vmul.bf16 %v4046_v14, %v4163_v32 }
  0x85   : > { %v871_v49 = vor.u32 %v870_v5, %v866_v9  ;;  %v1261_v6 = vrot.slane %v1123_v10, 5  ;;  %v1399_v28 = vmul.bf16 %v4046_v14, %v4166_v27  ;;  %v1482_v26 = vmul.bf16 %v4085_v37, %v4163_v32 }
  0x86   : > { %3778 = vmatmul.mubr.bf16.vlgmr.msra.gmra.mxu0 %v3708_v21  ;;  %v862_v31 = vrot.slane %v861_v45, 4  ;;  %v1259_v33 = vsel %vm4079_vm4, %v3661_v4, %v1258_v40  ;;  %v1260_v35 = vrot.slane %v1258_v40, 4  ;;  %v1483_v38 = vmul.bf16 %v4085_v37, %v4166_v27 }
  0x87   : > { %v872_v39 = vrot.slane %v871_v49, 4  ;;  %v1484_v44 = vmul.bf16 %v4085_v37, %v4185_v54  ;;  %v1720_v46 = vshrl.u32 %v1482_v26, 16  ;;  %v1723_v48 = vshll.u32 %v1482_v26, 16 }
  0x88   : > { %v867_v55 = vsel %vm4102_vm5, %v862_v31, %v866_v9  ;;  %v1262_v57 = vsel %vm4079_vm4, %v1260_v35, %v1261_v6  ;;  %v1729_v59 = vshll.u32 %v1483_v38, 16  ;;  %v1733_v60 = vshrl.u32 %v1483_v38, 16 }
  0x89   : > { %v877_v62 = vsel %vm4102_vm5, %v872_v39, %v876_v7  ;;  %v1072_v47 = vadd.bf16 %v867_v55, %v562_v51  ;;  %v1722_v19 = vrot.slane %v1720_v46, 4  ;;  %v1725_v61 = vrot.slane %v1723_v48, 5 }
  0x8a   : > { %v1073_v18 = vadd.bf16 %v877_v62, %v563_v29  ;;  %v1731_v3 = vrot.slane %v1729_v59, 5  ;;  %v1735_v36 = vrot.slane %v1733_v60, 4  ;;  %v1739_v5 = vshll.u32 %v1484_v44, 16 }
  0x8b   : > { %v1355_v10 = vadd.bf16 %v1259_v33, %v1072_v47  ;;  %v1726_v4 = vor.u32 %v1725_v61, %v1722_v19  ;;  %v1986_v9 = vmul.bf16 %v4049_v16, %v4163_v32  ;;  %v1987_v21 = vmul.bf16 %v4049_v16, %v4166_v27 }
  0x8c   : > { %v1356_v45 = vadd.bf16 %v1262_v57, %v1073_v18  ;;  %v1736_v40 = vor.u32 %v1735_v36, %v1731_v3  ;;  %v1741_v49 = vrot.slane %v1739_v5, 5  ;;  %v1988_v51 = vmul.bf16 %v4049_v16, %v4185_v54 }
  0x8d   : > { %v1430_v7 = vadd.bf16 %v1398_v50, %v1355_v10  ;;  %v1727_v6 = vrot.slane %v1726_v4, 4  ;;  %v3680_v29 = vrot.slane %v1986_v9, 9  ;;  %v2120_v26 = vrot.slane %v1987_v21, 5  ;;  %v434_v9 = vld [vmem:[#allocation2 + $0x30] sm:$0xf] }
  0x8e   : > { %v1431_v31 = vadd.bf16 %v1399_v28, %v1356_v45  ;;  %v1737_v35 = vrot.slane %v1736_v40, 4  ;;  %v2123_v33 = vrot.slane %v1988_v51, 5  ;;  %v2260_v38 = vmul.bf16 %v4051_v17, %v4337_v12  ;;  %v435_v21 = vld [vmem:[#allocation2 + $0x34] sm:$0xf] }
  0x8f   : > { %v1732_v39 = vsel %vm4102_vm5, %v1727_v6, %v1731_v3  ;;  %v2121_v44 = vsel %vm4079_vm4, %v3680_v29, %v2120_v26  ;;  %v2122_v46 = vrot.slane %v2120_v26, 4  ;;  %v2261_v48 = vmul.bf16 %v4051_v17, %v4340_v42 }
  0x90   : > { %v1742_v50 = vsel %vm4102_vm5, %v1737_v35, %v1741_v49  ;;  %v1937_v55 = vadd.bf16 %v1732_v39, %v1430_v7  ;;  %v2344_v28 = vmul.bf16 %v4157_v0, %v4337_v12  ;;  %v2345_v57 = vmul.bf16 %v4157_v0, %v4340_v42  ;;  %v436_v7 = vld [vmem:[#allocation2 + $0x38] sm:$0xf] }
  0x91   : > { %v1938_v59 = vadd.bf16 %v1742_v50, %v1431_v31  ;;  %v2124_v60 = vsel %vm4079_vm4, %v2122_v46, %v2123_v33  ;;  %v2346_v62 = vmul.bf16 %v4157_v0, %v4343_v56  ;;  %v2848_v47 = vmul.bf16 %v4152_v22, %v4337_v12 }
  0x92   : > { %v2217_v19 = vadd.bf16 %v2121_v44, %v1937_v55  ;;  %v2582_v61 = vshrl.u32 %v2344_v28, 16  ;;  %v2585_v18 = vshll.u32 %v2344_v28, 16  ;;  %v2591_v3 = vshll.u32 %v2345_v57, 16 }
  0x93   : > { %v2218_v36 = vadd.bf16 %v2124_v60, %v1938_v59  ;;  %v2595_v5 = vshrl.u32 %v2345_v57, 16  ;;  %v2601_v10 = vshll.u32 %v2346_v62, 16  ;;  %v2849_v4 = vmul.bf16 %v4152_v22, %v4340_v42 }
  0x94   : > { %v2292_v45 = vadd.bf16 %v2260_v38, %v2217_v19  ;;  %v2584_v40 = vrot.slane %v2582_v61, 4  ;;  %v2587_v49 = vrot.slane %v2585_v18, 5  ;;  %v2593_v51 = vrot.slane %v2591_v3, 5 }
  0x95   : > { %v2293_v6 = vadd.bf16 %v2261_v48, %v2218_v36  ;;  %v2597_v29 = vrot.slane %v2595_v5, 4  ;;  %v2603_v26 = vrot.slane %v2601_v10, 5  ;;  %v2850_v31 = vmul.bf16 %v4152_v22, %v4343_v56 }
  0x96   : > { %v2588_v35 = vor.u32 %v2587_v49, %v2584_v40  ;;  %v3699_v33 = vrot.slane %v2848_v47, 9  ;;  %v2982_v39 = vrot.slane %v2849_v4, 5  ;;  %v4418_v44 = vmax.bf16 %v3884_v41, %v434_v9 }
  0x97   : > { %v2598_v46 = vor.u32 %v2597_v29, %v2593_v51  ;;  %v2985_v50 = vrot.slane %v2850_v31, 5  ;;  %v4421_v38 = vmax.bf16 %v3884_v41, %v435_v21  ;;  %v4424_v55 = vmax.bf16 %v3884_v41, %v436_v7 }
  0x98   : > { %v2589_v48 = vrot.slane %v2588_v35, 4  ;;  %v2983_v28 = vsel %vm4079_vm4, %v3699_v33, %v2982_v39  ;;  %v2984_v57 = vrot.slane %v2982_v39, 4  ;;  %v548_v59 = vmul.bf16 %v4041_v11, %v4003_v52 }
  0x99   : > { %v2599_v60 = vrot.slane %v2598_v46, 4  ;;  %v549_v62 = vmul.bf16 %v4041_v11, %v4006_v53  ;;  %v593_v47 = vmul.bf16 %v4057_v20, %v4003_v52  ;;  %v594_v19 = vmul.bf16 %v4057_v20, %v4006_v53 }
  0x9a   : > { %v2594_v61 = vsel %vm4102_vm5, %v2589_v48, %v2593_v51  ;;  %v2986_v18 = vsel %vm4079_vm4, %v2984_v57, %v2985_v50  ;;  %v595_v3 = vmul.bf16 %v4057_v20, %v4020_v63  ;;  %v1100_v36 = vmul.bf16 %v4044_v13, %v4003_v52 }
  0x9b   : > { %v2604_v5 = vsel %vm4102_vm5, %v2599_v60, %v2603_v26  ;;  %v2799_v10 = vadd.bf16 %v2594_v61, %v2292_v45  ;;  %v687_v4 = vshrl.u32 %v593_v47, 16  ;;  %v690_v9 = vshll.u32 %v593_v47, 16 }
  0x9c   : > { %v2800_v21 = vadd.bf16 %v2604_v5, %v2293_v6  ;;  %v696_v40 = vshll.u32 %v594_v19, 16  ;;  %v700_v49 = vshrl.u32 %v594_v19, 16  ;;  %v706_v7 = vshll.u32 %v595_v3, 16 }
  0x9d   : > { %v3079_v51 = vadd.bf16 %v2983_v28, %v2799_v10  ;;  %v689_v29 = vrot.slane %v687_v4, 4  ;;  %v692_v31 = vrot.slane %v690_v9, 5  ;;  %v1101_v35 = vmul.bf16 %v4044_v13, %v4006_v53 }
  0x9e   : > { %v3080_v33 = vadd.bf16 %v2986_v18, %v2800_v21  ;;  %v698_v39 = vrot.slane %v696_v40, 5  ;;  %v702_v46 = vrot.slane %v700_v49, 4  ;;  %v708_v52 = vrot.slane %v706_v7, 5 }
  0x9f   : > { %v693_v50 = vor.u32 %v692_v31, %v689_v29  ;;  %v1102_v45 = vmul.bf16 %v4044_v13, %v4020_v63  ;;  %v3654_v26 = vrot.slane %v1100_v36, 9  ;;  %v1209_v48 = vrot.slane %v1101_v35, 5 }
  0xa0   : > { %v3716_v6 = vcombine.low %v3079_v51, %v3080_v33  ;;  %v703_v57 = vor.u32 %v702_v46, %v698_v39  ;;  %v1384_v28 = vmul.bf16 %v4046_v14, %v4256_v43  ;;  %v1385_v60 = vmul.bf16 %v4046_v14, %v4259_v25 }
  0xa1   : > { %v694_v47 = vrot.slane %v693_v50, 4  ;;  %v1210_v53 = vsel %vm4079_vm4, %v3654_v26, %v1209_v48  ;;  %v1211_v19 = vrot.slane %v1209_v48, 4  ;;  %v1212_v61 = vrot.slane %v1102_v45, 5 }
  0xa2   : > { %3794 = vmatmul.mubr.bf16.vlgmr.msra.gmra.mxu1 %v3716_v6  ;;  %v704_v18 = vrot.slane %v703_v57, 4  ;;  %v1461_v63 = vmul.bf16 %v4085_v37, %v4256_v43  ;;  %v1462_v3 = vmul.bf16 %v4085_v37, %v4259_v25  ;;  %v1463_v36 = vmul.bf16 %v4085_v37, %v4264_v58 }
  0xa3   : > { %v699_v5 = vsel %vm4102_vm5, %v694_v47, %v698_v39  ;;  %v1213_v10 = vsel %vm4079_vm4, %v1211_v19, %v1212_v61  ;;  %v1965_v4 = vmul.bf16 %v4049_v16, %v4256_v43  ;;  %v1966_v9 = vmul.bf16 %v4049_v16, %v4259_v25 }
  0xa4   : > { %v709_v21 = vsel %vm4102_vm5, %v704_v18, %v708_v52  ;;  %v1058_v40 = vadd.bf16 %v699_v5, %v548_v59  ;;  %v1552_v49 = vshrl.u32 %v1461_v63, 16  ;;  %v1555_v7 = vshll.u32 %v1461_v63, 16 }
  0xa5   : > { %v1059_v51 = vadd.bf16 %v709_v21, %v549_v62  ;;  %v1561_v29 = vshll.u32 %v1462_v3, 16  ;;  %v1565_v31 = vshrl.u32 %v1462_v3, 16  ;;  %v1571_v35 = vshll.u32 %v1463_v36, 16 }
  0xa6   : > { %v1341_v33 = vadd.bf16 %v1210_v53, %v1058_v40  ;;  %v1554_v39 = vrot.slane %v1552_v49, 4  ;;  %v1557_v46 = vrot.slane %v1555_v7, 5  ;;  %v1967_v50 = vmul.bf16 %v4049_v16, %v4264_v58 }
  0xa7   : > { %v1342_v45 = vadd.bf16 %v1213_v10, %v1059_v51  ;;  %v1563_v26 = vrot.slane %v1561_v29, 5  ;;  %v1567_v48 = vrot.slane %v1565_v31, 4  ;;  %v1573_v6 = vrot.slane %v1571_v35, 5 }
  0xa8   : > { %v1416_v57 = vadd.bf16 %v1384_v28, %v1341_v33  ;;  %v1558_v47 = vor.u32 %v1557_v46, %v1554_v39  ;;  %v3673_v52 = vrot.slane %v1965_v4, 9  ;;  %v2071_v59 = vrot.slane %v1966_v9, 5 }
  0xa9   : > { %v1417_v19 = vadd.bf16 %v1385_v60, %v1342_v45  ;;  %v1568_v61 = vor.u32 %v1567_v48, %v1563_v26  ;;  %v2074_v62 = vrot.slane %v1967_v50, 5  ;;  %v2246_v18 = vmul.bf16 %v4051_v17, %v4418_v44  ;;  %v458_v48 = vld [vmem:[#allocation2 + $0x90] sm:$0xf] }
  0xaa   : > { %v1559_v53 = vrot.slane %v1558_v47, 4  ;;  %v2072_v63 = vsel %vm4079_vm4, %v3673_v52, %v2071_v59  ;;  %v2073_v3 = vrot.slane %v2071_v59, 4  ;;  %v2247_v36 = vmul.bf16 %v4051_v17, %v4421_v38 }
  0xab   : > { %v1569_v5 = vrot.slane %v1568_v61, 4  ;;  %v2323_v28 = vmul.bf16 %v4157_v0, %v4418_v44  ;;  %v2324_v60 = vmul.bf16 %v4157_v0, %v4421_v38  ;;  %v2325_v10 = vmul.bf16 %v4157_v0, %v4424_v55 }
  0xac   : > { %v1564_v4 = vsel %vm4102_vm5, %v1559_v53, %v1563_v26  ;;  %v2075_v9 = vsel %vm4079_vm4, %v2073_v3, %v2074_v62  ;;  %v2827_v21 = vmul.bf16 %v4152_v22, %v4418_v44  ;;  %v2828_v40 = vmul.bf16 %v4152_v22, %v4421_v38  ;;  %v459_v62 = vld [vmem:[#allocation2 + $0x94] sm:$0xf] }
  0xad   : > { %v1574_v49 = vsel %vm4102_vm5, %v1569_v5, %v1573_v6  ;;  %v1923_v7 = vadd.bf16 %v1564_v4, %v1416_v57  ;;  %v2414_v51 = vshrl.u32 %v2323_v28, 16  ;;  %v2417_v29 = vshll.u32 %v2323_v28, 16 }
  0xae   : > { %v1924_v31 = vadd.bf16 %v1574_v49, %v1417_v19  ;;  %v2423_v35 = vshll.u32 %v2324_v60, 16  ;;  %v2427_v33 = vshrl.u32 %v2324_v60, 16  ;;  %v2433_v39 = vshll.u32 %v2325_v10, 16  ;;  %v460_v19 = vld [vmem:[#allocation2 + $0x98] sm:$0xf] }
  0xaf   : > { %v2203_v46 = vadd.bf16 %v2072_v63, %v1923_v7  ;;  %v2416_v50 = vrot.slane %v2414_v51, 4  ;;  %v2419_v45 = vrot.slane %v2417_v29, 5  ;;  %v2829_v26 = vmul.bf16 %v4152_v22, %v4424_v55 }
  0xb0   : > { %v2204_v47 = vadd.bf16 %v2075_v9, %v1924_v31  ;;  %v2425_v52 = vrot.slane %v2423_v35, 5  ;;  %v2429_v59 = vrot.slane %v2427_v33, 4  ;;  %v2435_v61 = vrot.slane %v2433_v39, 5 }
  0xb1   : > { %v2278_v6 = vadd.bf16 %v2246_v18, %v2203_v46  ;;  %v2420_v57 = vor.u32 %v2419_v45, %v2416_v50  ;;  %v3692_v53 = vrot.slane %v2827_v21, 9  ;;  %v2933_v3 = vrot.slane %v2828_v40, 5 }
  0xb2   : > { %v2279_v5 = vadd.bf16 %v2247_v36, %v2204_v47  ;;  %v2430_v28 = vor.u32 %v2429_v59, %v2425_v52  ;;  %v2936_v60 = vrot.slane %v2829_v26, 5  ;;  %v4499_v63 = vmax.bf16 %v3884_v41, %v458_v48 }
  0xb3   : > { %v2421_v10 = vrot.slane %v2420_v57, 4  ;;  %v2934_v4 = vsel %vm4079_vm4, %v3692_v53, %v2933_v3  ;;  %v2935_v9 = vrot.slane %v2933_v3, 4  ;;  %v4504_v49 = vmax.bf16 %v3884_v41, %v459_v62 }
  0xb4   : > { %v2431_v7 = vrot.slane %v2430_v28, 4  ;;  %v4507_v18 = vmax.bf16 %v3884_v41, %v460_v19  ;;  %v564_v36 = vmul.bf16 %v4041_v11, %v4163_v32  ;;  %v565_v21 = vmul.bf16 %v4041_v11, %v4166_v27 }
  0xb5   : > { %v2426_v40 = vsel %vm4102_vm5, %v2421_v10, %v2425_v52  ;;  %v2937_v51 = vsel %vm4079_vm4, %v2935_v9, %v2936_v60  ;;  %v617_v29 = vmul.bf16 %v4057_v20, %v4163_v32  ;;  %v618_v31 = vmul.bf16 %v4057_v20, %v4166_v27 }
  0xb6   : > { %v2436_v35 = vsel %vm4102_vm5, %v2431_v7, %v2435_v61  ;;  %v2785_v33 = vadd.bf16 %v2426_v40, %v2278_v6  ;;  %v619_v39 = vmul.bf16 %v4057_v20, %v4185_v54  ;;  %v1124_v46 = vmul.bf16 %v4044_v13, %v4163_v32 }
  0xb7   : > { %v2786_v50 = vadd.bf16 %v2436_v35, %v2279_v5  ;;  %v879_v45 = vshrl.u32 %v617_v29, 16  ;;  %v882_v26 = vshll.u32 %v617_v29, 16  ;;  %v888_v48 = vshll.u32 %v618_v31, 16 }
  0xb8   : > { %v3065_v47 = vadd.bf16 %v2934_v4, %v2785_v33  ;;  %v892_v52 = vshrl.u32 %v618_v31, 16  ;;  %v898_v59 = vshll.u32 %v619_v39, 16  ;;  %v1125_v62 = vmul.bf16 %v4044_v13, %v4166_v27 }
  0xb9   : > { %v3066_v57 = vadd.bf16 %v2937_v51, %v2786_v50  ;;  %v881_v53 = vrot.slane %v879_v45, 4  ;;  %v884_v61 = vrot.slane %v882_v26, 5  ;;  %v890_v6 = vrot.slane %v888_v48, 5 }
  0xba   : > { %v894_v3 = vrot.slane %v892_v52, 4  ;;  %v900_v19 = vrot.slane %v898_v59, 5  ;;  %v1126_v28 = vmul.bf16 %v4044_v13, %v4185_v54  ;;  %v3662_v32 = vrot.slane %v1124_v46, 9 }
  0xbb   : > { %v3709_v5 = vcombine.low %v3065_v47, %v3066_v57  ;;  %v885_v60 = vor.u32 %v884_v61, %v881_v53  ;;  %v1265_v10 = vrot.slane %v1125_v62, 5  ;;  %v1400_v4 = vmul.bf16 %v4046_v14, %v4337_v12 }
  0xbc   : > { %v895_v9 = vor.u32 %v894_v3, %v890_v6  ;;  %v1268_v7 = vrot.slane %v1126_v28, 5  ;;  %v1401_v27 = vmul.bf16 %v4046_v14, %v4340_v42  ;;  %v1485_v40 = vmul.bf16 %v4085_v37, %v4337_v12 }
  0xbd   : > { %3781 = vmatprep.mubr.bf16.mxu0 %v3709_v5  ;;  %v886_v51 = vrot.slane %v885_v60, 4  ;;  %v1266_v54 = vsel %vm4079_vm4, %v3662_v32, %v1265_v10  ;;  %v1267_v29 = vrot.slane %v1265_v10, 4  ;;  %v1486_v31 = vmul.bf16 %v4085_v37, %v4340_v42 }
  0xbe   : > { %v896_v35 = vrot.slane %v895_v9, 4  ;;  %v1487_v33 = vmul.bf16 %v4085_v37, %v4343_v56  ;;  %v1744_v39 = vshrl.u32 %v1485_v40, 16  ;;  %v1747_v46 = vshll.u32 %v1485_v40, 16 }
  0xbf   : > { %v891_v50 = vsel %vm4102_vm5, %v886_v51, %v890_v6  ;;  %v1269_v45 = vsel %vm4079_vm4, %v1267_v29, %v1268_v7  ;;  %v1753_v26 = vshll.u32 %v1486_v31, 16  ;;  %v1757_v48 = vshrl.u32 %v1486_v31, 16 }
  0xc0   : > { %v901_v47 = vsel %vm4102_vm5, %v896_v35, %v900_v19  ;;  %v1074_v52 = vadd.bf16 %v891_v50, %v564_v36  ;;  %v1746_v59 = vrot.slane %v1744_v39, 4  ;;  %v1749_v62 = vrot.slane %v1747_v46, 5 }
  0xc1   : > { %v1075_v57 = vadd.bf16 %v901_v47, %v565_v21  ;;  %v1755_v53 = vrot.slane %v1753_v26, 5  ;;  %v1759_v61 = vrot.slane %v1757_v48, 4  ;;  %v1763_v3 = vshll.u32 %v1487_v33, 16 }
  0xc2   : > { %v1357_v28 = vadd.bf16 %v1266_v54, %v1074_v52  ;;  %v1750_v32 = vor.u32 %v1749_v62, %v1746_v59  ;;  %v1989_v6 = vmul.bf16 %v4049_v16, %v4337_v12  ;;  %v1990_v5 = vmul.bf16 %v4049_v16, %v4340_v42 }
  0xc3   : > { %v1358_v60 = vadd.bf16 %v1269_v45, %v1075_v57  ;;  %v1760_v10 = vor.u32 %v1759_v61, %v1755_v53  ;;  %v1765_v9 = vrot.slane %v1763_v3, 5  ;;  %v1991_v36 = vmul.bf16 %v4049_v16, %v4343_v56 }
  0xc4   : > { %v1432_v19 = vadd.bf16 %v1400_v4, %v1357_v28  ;;  %v1751_v7 = vrot.slane %v1750_v32, 4  ;;  %v3681_v21 = vrot.slane %v1989_v6, 9  ;;  %v2127_v40 = vrot.slane %v1990_v5, 5  ;;  %v437_v6 = vld [vmem:[#allocation2 + $0x3c] sm:$0xf] }
  0xc5   : > { %v1433_v51 = vadd.bf16 %v1401_v27, %v1358_v60  ;;  %v1761_v29 = vrot.slane %v1760_v10, 4  ;;  %v2130_v54 = vrot.slane %v1991_v36, 5  ;;  %v2262_v31 = vmul.bf16 %v4051_v17, %v4499_v63  ;;  %v438_v5 = vld [vmem:[#allocation2 + $0x40] sm:$0xf] }
  0xc6   : > { %v1756_v35 = vsel %vm4102_vm5, %v1751_v7, %v1755_v53  ;;  %v2128_v33 = vsel %vm4079_vm4, %v3681_v21, %v2127_v40  ;;  %v2129_v39 = vrot.slane %v2127_v40, 4  ;;  %v2263_v46 = vmul.bf16 %v4051_v17, %v4504_v49 }
  0xc7   : > { %v1766_v4 = vsel %vm4102_vm5, %v1761_v29, %v1765_v9  ;;  %v1939_v50 = vadd.bf16 %v1756_v35, %v1432_v19  ;;  %v2347_v27 = vmul.bf16 %v4157_v0, %v4499_v63  ;;  %v2348_v45 = vmul.bf16 %v4157_v0, %v4504_v49  ;;  %v439_v19 = vld [vmem:[#allocation2 + $0x44] sm:$0xf] }
  0xc8   : > { %v1940_v26 = vadd.bf16 %v1766_v4, %v1433_v51  ;;  %v2131_v48 = vsel %vm4079_vm4, %v2129_v39, %v2130_v54  ;;  %v2349_v47 = vmul.bf16 %v4157_v0, %v4507_v18  ;;  %v2851_v52 = vmul.bf16 %v4152_v22, %v4499_v63 }
  0xc9   : > { %v2219_v59 = vadd.bf16 %v2128_v33, %v1939_v50  ;;  %v2606_v62 = vshrl.u32 %v2347_v27, 16  ;;  %v2609_v57 = vshll.u32 %v2347_v27, 16  ;;  %v2615_v53 = vshll.u32 %v2348_v45, 16 }
  0xca   : > { %v2220_v61 = vadd.bf16 %v2131_v48, %v1940_v26  ;;  %v2619_v3 = vshrl.u32 %v2348_v45, 16  ;;  %v2625_v28 = vshll.u32 %v2349_v47, 16  ;;  %v2852_v32 = vmul.bf16 %v4152_v22, %v4504_v49 }
  0xcb   : > { %v2294_v60 = vadd.bf16 %v2262_v31, %v2219_v59  ;;  %v2608_v10 = vrot.slane %v2606_v62, 4  ;;  %v2611_v9 = vrot.slane %v2609_v57, 5  ;;  %v2617_v36 = vrot.slane %v2615_v53, 5 }
  0xcc   : > { %v2295_v7 = vadd.bf16 %v2263_v46, %v2220_v61  ;;  %v2621_v21 = vrot.slane %v2619_v3, 4  ;;  %v2627_v40 = vrot.slane %v2625_v28, 5  ;;  %v2853_v51 = vmul.bf16 %v4152_v22, %v4507_v18 }
  0xcd   : > { %v2612_v29 = vor.u32 %v2611_v9, %v2608_v10  ;;  %v3700_v54 = vrot.slane %v2851_v52, 9  ;;  %v2989_v35 = vrot.slane %v2852_v32, 5  ;;  %v4580_v33 = vmax.bf16 %v3884_v41, %v437_v6 }
  0xce   : > { %v2622_v39 = vor.u32 %v2621_v21, %v2617_v36  ;;  %v2992_v4 = vrot.slane %v2853_v51, 5  ;;  %v4583_v31 = vmax.bf16 %v3884_v41, %v438_v5  ;;  %v4586_v50 = vmax.bf16 %v3884_v41, %v439_v19 }
  0xcf   : > { %v2613_v46 = vrot.slane %v2612_v29, 4  ;;  %v2990_v27 = vsel %vm4079_vm4, %v3700_v54, %v2989_v35  ;;  %v2991_v45 = vrot.slane %v2989_v35, 4  ;;  %v550_v26 = vmul.bf16 %v4041_v11, %v4256_v43 }
  0xd0   : > { %v2623_v48 = vrot.slane %v2622_v39, 4  ;;  %v551_v47 = vmul.bf16 %v4041_v11, %v4259_v25  ;;  %v596_v52 = vmul.bf16 %v4057_v20, %v4256_v43  ;;  %v597_v59 = vmul.bf16 %v4057_v20, %v4259_v25 }
  0xd1   : > { %v2618_v62 = vsel %vm4102_vm5, %v2613_v46, %v2617_v36  ;;  %v2993_v57 = vsel %vm4079_vm4, %v2991_v45, %v2992_v4  ;;  %v598_v53 = vmul.bf16 %v4057_v20, %v4264_v58  ;;  %v1103_v61 = vmul.bf16 %v4044_v13, %v4256_v43 }
  0xd2   : > { %v2628_v3 = vsel %vm4102_vm5, %v2623_v48, %v2627_v40  ;;  %v2801_v28 = vadd.bf16 %v2618_v62, %v2294_v60  ;;  %v711_v32 = vshrl.u32 %v596_v52, 16  ;;  %v714_v6 = vshll.u32 %v596_v52, 16 }
  0xd3   : > { %v2802_v5 = vadd.bf16 %v2628_v3, %v2295_v7  ;;  %v720_v10 = vshll.u32 %v597_v59, 16  ;;  %v724_v9 = vshrl.u32 %v597_v59, 16  ;;  %v730_v19 = vshll.u32 %v598_v53, 16 }
  0xd4   : > { %v3081_v36 = vadd.bf16 %v2990_v27, %v2801_v28  ;;  %v713_v21 = vrot.slane %v711_v32, 4  ;;  %v716_v51 = vrot.slane %v714_v6, 5  ;;  %v1104_v29 = vmul.bf16 %v4044_v13, %v4259_v25 }
  0xd5   : > { %v3082_v54 = vadd.bf16 %v2993_v57, %v2802_v5  ;;  %v722_v35 = vrot.slane %v720_v10, 5  ;;  %v726_v39 = vrot.slane %v724_v9, 4  ;;  %v732_v43 = vrot.slane %v730_v19, 5 }
  0xd6   : > { %v717_v4 = vor.u32 %v716_v51, %v713_v21  ;;  %v1105_v60 = vmul.bf16 %v4044_v13, %v4264_v58  ;;  %v3655_v40 = vrot.slane %v1103_v61, 9  ;;  %v1216_v46 = vrot.slane %v1104_v29, 5 }
  0xd7   : > { %v3717_v7 = vcombine.low %v3081_v36, %v3082_v54  ;;  %v727_v45 = vor.u32 %v726_v39, %v722_v35  ;;  %v1386_v27 = vmul.bf16 %v4046_v14, %v4418_v44  ;;  %v1387_v48 = vmul.bf16 %v4046_v14, %v4421_v38 }
  0xd8   : > { %v718_v52 = vrot.slane %v717_v4, 4  ;;  %v1217_v25 = vsel %vm4079_vm4, %v3655_v40, %v1216_v46  ;;  %v1218_v59 = vrot.slane %v1216_v46, 4  ;;  %v1219_v62 = vrot.slane %v1105_v60, 5 }
  0xd9   : > { %3797 = vmatprep.mubr.bf16.mxu1 %v3717_v7  ;;  %v728_v57 = vrot.slane %v727_v45, 4  ;;  %v1464_v58 = vmul.bf16 %v4085_v37, %v4418_v44  ;;  %v1465_v53 = vmul.bf16 %v4085_v37, %v4421_v38  ;;  %v1466_v61 = vmul.bf16 %v4085_v37, %v4424_v55 }
  0xda   : > { %v723_v3 = vsel %vm4102_vm5, %v718_v52, %v722_v35  ;;  %v1220_v28 = vsel %vm4079_vm4, %v1218_v59, %v1219_v62  ;;  %v1968_v32 = vmul.bf16 %v4049_v16, %v4418_v44  ;;  %v1969_v6 = vmul.bf16 %v4049_v16, %v4421_v38 }
  0xdb   : > { %v733_v5 = vsel %vm4102_vm5, %v728_v57, %v732_v43  ;;  %v1060_v10 = vadd.bf16 %v723_v3, %v550_v26  ;;  %v1576_v9 = vshrl.u32 %v1464_v58, 16  ;;  %v1579_v19 = vshll.u32 %v1464_v58, 16 }
  0xdc   : > { %v1061_v36 = vadd.bf16 %v733_v5, %v551_v47  ;;  %v1585_v21 = vshll.u32 %v1465_v53, 16  ;;  %v1589_v51 = vshrl.u32 %v1465_v53, 16  ;;  %v1595_v29 = vshll.u32 %v1466_v61, 16 }
  0xdd   : > { %v1343_v54 = vadd.bf16 %v1217_v25, %v1060_v10  ;;  %v1578_v35 = vrot.slane %v1576_v9, 4  ;;  %v1581_v39 = vrot.slane %v1579_v19, 5  ;;  %v1970_v4 = vmul.bf16 %v4049_v16, %v4424_v55 }
  0xde   : > { %v1344_v60 = vadd.bf16 %v1220_v28, %v1061_v36  ;;  %v1587_v40 = vrot.slane %v1585_v21, 5  ;;  %v1591_v46 = vrot.slane %v1589_v51, 4  ;;  %v1597_v7 = vrot.slane %v1595_v29, 5 }
  0xdf   : > { %v1418_v45 = vadd.bf16 %v1386_v27, %v1343_v54  ;;  %v1582_v52 = vor.u32 %v1581_v39, %v1578_v35  ;;  %v3674_v43 = vrot.slane %v1968_v32, 9  ;;  %v2078_v26 = vrot.slane %v1969_v6, 5 }
  0xe0   : > { %v1419_v59 = vadd.bf16 %v1387_v48, %v1344_v60  ;;  %v1592_v62 = vor.u32 %v1591_v46, %v1587_v40  ;;  %v2081_v47 = vrot.slane %v1970_v4, 5  ;;  %v2248_v57 = vmul.bf16 %v4051_v17, %v4580_v33  ;;  %v461_v46 = vld [vmem:[#allocation2 + $0x9c] sm:$0xf] }
  0xe1   : > { %v1583_v25 = vrot.slane %v1582_v52, 4  ;;  %v2079_v58 = vsel %vm4079_vm4, %v3674_v43, %v2078_v26  ;;  %v2080_v53 = vrot.slane %v2078_v26, 4  ;;  %v2249_v61 = vmul.bf16 %v4051_v17, %v4583_v31 }
  0xe2   : > { %v1593_v3 = vrot.slane %v1592_v62, 4  ;;  %v2326_v27 = vmul.bf16 %v4157_v0, %v4580_v33  ;;  %v2327_v48 = vmul.bf16 %v4157_v0, %v4583_v31  ;;  %v2328_v28 = vmul.bf16 %v4157_v0, %v4586_v50 }
  0xe3   : > { %v1588_v32 = vsel %vm4102_vm5, %v1583_v25, %v1587_v40  ;;  %v2082_v6 = vsel %vm4079_vm4, %v2080_v53, %v2081_v47  ;;  %v2830_v5 = vmul.bf16 %v4152_v22, %v4580_v33  ;;  %v2831_v10 = vmul.bf16 %v4152_v22, %v4583_v31  ;;  %v462_v47 = vld [vmem:[#allocation2 + $0xa0] sm:$0xf] }
  0xe4   : > { %v1598_v9 = vsel %vm4102_vm5, %v1593_v3, %v1597_v7  ;;  %v1925_v19 = vadd.bf16 %v1588_v32, %v1418_v45  ;;  %v2438_v36 = vshrl.u32 %v2326_v27, 16  ;;  %v2441_v21 = vshll.u32 %v2326_v27, 16 }
  0xe5   : > { %v1926_v51 = vadd.bf16 %v1598_v9, %v1419_v59  ;;  %v2447_v29 = vshll.u32 %v2327_v48, 16  ;;  %v2451_v54 = vshrl.u32 %v2327_v48, 16  ;;  %v2457_v35 = vshll.u32 %v2328_v28, 16  ;;  %v463_v59 = vld [vmem:[#allocation2 + $0xa4] sm:$0xf] }
  0xe6   : > { %v2205_v39 = vadd.bf16 %v2079_v58, %v1925_v19  ;;  %v2440_v4 = vrot.slane %v2438_v36, 4  ;;  %v2443_v60 = vrot.slane %v2441_v21, 5  ;;  %v2832_v40 = vmul.bf16 %v4152_v22, %v4586_v50 }
  0xe7   : > { %v2206_v52 = vadd.bf16 %v2082_v6, %v1926_v51  ;;  %v2449_v43 = vrot.slane %v2447_v29, 5  ;;  %v2453_v26 = vrot.slane %v2451_v54, 4  ;;  %v2459_v62 = vrot.slane %v2457_v35, 5 }
  0xe8   : > { %v2280_v7 = vadd.bf16 %v2248_v57, %v2205_v39  ;;  %v2444_v45 = vor.u32 %v2443_v60, %v2440_v4  ;;  %v3693_v25 = vrot.slane %v2830_v5, 9  ;;  %v2940_v53 = vrot.slane %v2831_v10, 5 }
  0xe9   : > { %v2281_v3 = vadd.bf16 %v2249_v61, %v2206_v52  ;;  %v2454_v27 = vor.u32 %v2453_v26, %v2449_v43  ;;  %v2943_v48 = vrot.slane %v2832_v40, 5  ;;  %v4661_v58 = vmax.bf16 %v3884_v41, %v461_v46 }
  0xea   : > { %v2445_v28 = vrot.slane %v2444_v45, 4  ;;  %v2941_v32 = vsel %vm4079_vm4, %v3693_v25, %v2940_v53  ;;  %v2942_v6 = vrot.slane %v2940_v53, 4  ;;  %v4666_v9 = vmax.bf16 %v3884_v41, %v462_v47 }
  0xeb   : > { %v2455_v19 = vrot.slane %v2454_v27, 4  ;;  %v4669_v57 = vmax.bf16 %v3884_v41, %v463_v59  ;;  %v566_v61 = vmul.bf16 %v4041_v11, %v4337_v12  ;;  %v567_v5 = vmul.bf16 %v4041_v11, %v4340_v42 }
  0xec   : > { %v2450_v10 = vsel %vm4102_vm5, %v2445_v28, %v2449_v43  ;;  %v2944_v36 = vsel %vm4079_vm4, %v2942_v6, %v2943_v48  ;;  %v620_v21 = vmul.bf16 %v4057_v20, %v4337_v12  ;;  %v621_v51 = vmul.bf16 %v4057_v20, %v4340_v42 }
  0xed   : > { %v2460_v29 = vsel %vm4102_vm5, %v2455_v19, %v2459_v62  ;;  %v2787_v54 = vadd.bf16 %v2450_v10, %v2280_v7  ;;  %v622_v35 = vmul.bf16 %v4057_v20, %v4343_v56  ;;  %v1127_v39 = vmul.bf16 %v4044_v13, %v4337_v12 }
  0xee   : > { %v2788_v4 = vadd.bf16 %v2460_v29, %v2281_v3  ;;  %v903_v60 = vshrl.u32 %v620_v21, 16  ;;  %v906_v40 = vshll.u32 %v620_v21, 16  ;;  %v912_v46 = vshll.u32 %v621_v51, 16 }
  0xef   : > { %v3067_v52 = vadd.bf16 %v2941_v32, %v2787_v54  ;;  %v916_v43 = vshrl.u32 %v621_v51, 16  ;;  %v922_v26 = vshll.u32 %v622_v35, 16  ;;  %v1128_v47 = vmul.bf16 %v4044_v13, %v4340_v42 }
  0xf0   : > { %v3068_v45 = vadd.bf16 %v2944_v36, %v2788_v4  ;;  %v905_v25 = vrot.slane %v903_v60, 4  ;;  %v908_v62 = vrot.slane %v906_v40, 5  ;;  %v914_v7 = vrot.slane %v912_v46, 5 }
  0xf1   : > { %v918_v53 = vrot.slane %v916_v43, 4  ;;  %v924_v59 = vrot.slane %v922_v26, 5  ;;  %v1129_v27 = vmul.bf16 %v4044_v13, %v4343_v56  ;;  %v3663_v12 = vrot.slane %v1127_v39, 9 }
  0xf2   : > { %v3710_v3 = vcombine.low %v3067_v52, %v3068_v45  ;;  %v909_v48 = vor.u32 %v908_v62, %v905_v25  ;;  %v1272_v28 = vrot.slane %v1128_v47, 5  ;;  %v1402_v32 = vmul.bf16 %v4046_v14, %v4499_v63 }
  0xf3   : > { %v919_v6 = vor.u32 %v918_v53, %v914_v7  ;;  %v1275_v19 = vrot.slane %v1129_v27, 5  ;;  %v1403_v42 = vmul.bf16 %v4046_v14, %v4504_v49  ;;  %v1488_v10 = vmul.bf16 %v4085_v37, %v4499_v63 }
  0xf4   : > { %3782 = vmatmul.mubr.bf16.gmra.mxu0 %v3710_v3  ;;  %v910_v36 = vrot.slane %v909_v48, 4  ;;  %v1273_v56 = vsel %vm4079_vm4, %v3663_v12, %v1272_v28  ;;  %v1274_v21 = vrot.slane %v1272_v28, 4  ;;  %v1489_v51 = vmul.bf16 %v4085_v37, %v4504_v49 }
  0xf5   : > { %v920_v29 = vrot.slane %v919_v6, 4  ;;  %v1490_v54 = vmul.bf16 %v4085_v37, %v4507_v18  ;;  %v1768_v35 = vshrl.u32 %v1488_v10, 16  ;;  %v1771_v39 = vshll.u32 %v1488_v10, 16 }
  0xf6   : > { %v915_v4 = vsel %vm4102_vm5, %v910_v36, %v914_v7  ;;  %v1276_v60 = vsel %vm4079_vm4, %v1274_v21, %v1275_v19  ;;  %v1777_v40 = vshll.u32 %v1489_v51, 16  ;;  %v1781_v46 = vshrl.u32 %v1489_v51, 16 }
  0xf7   : > { %v925_v52 = vsel %vm4102_vm5, %v920_v29, %v924_v59  ;;  %v1076_v43 = vadd.bf16 %v915_v4, %v566_v61  ;;  %v1770_v26 = vrot.slane %v1768_v35, 4  ;;  %v1773_v47 = vrot.slane %v1771_v39, 5 }
  0xf8   : > { %v1077_v45 = vadd.bf16 %v925_v52, %v567_v5  ;;  %v1779_v25 = vrot.slane %v1777_v40, 5  ;;  %v1783_v62 = vrot.slane %v1781_v46, 4  ;;  %v1787_v53 = vshll.u32 %v1490_v54, 16 }
  0xf9   : > { %v1359_v27 = vadd.bf16 %v1273_v56, %v1076_v43  ;;  %v1774_v12 = vor.u32 %v1773_v47, %v1770_v26  ;;  %v1992_v7 = vmul.bf16 %v4049_v16, %v4499_v63  ;;  %v1993_v3 = vmul.bf16 %v4049_v16, %v4504_v49 }
  0xfa   : > { %v1360_v48 = vadd.bf16 %v1276_v60, %v1077_v45  ;;  %v1784_v28 = vor.u32 %v1783_v62, %v1779_v25  ;;  %v1789_v6 = vrot.slane %v1787_v53, 5  ;;  %v1994_v61 = vmul.bf16 %v4049_v16, %v4507_v18 }
  0xfb   : > { %v1434_v59 = vadd.bf16 %v1402_v32, %v1359_v27  ;;  %v1775_v19 = vrot.slane %v1774_v12, 4  ;;  %v3682_v5 = vrot.slane %v1992_v7, 9  ;;  %v2134_v10 = vrot.slane %v1993_v3, 5  ;;  %v440_v7 = vld [vmem:[#allocation2 + $0x48] sm:$0xf] }
  0xfc   : > { %v1435_v36 = vadd.bf16 %v1403_v42, %v1360_v48  ;;  %v1785_v21 = vrot.slane %v1784_v28, 4  ;;  %v2137_v56 = vrot.slane %v1994_v61, 5  ;;  %v2264_v51 = vmul.bf16 %v4051_v17, %v4661_v58  ;;  %v441_v3 = vld [vmem:[#allocation2 + $0x4c] sm:$0xf] }
  0xfd   : > { %v1780_v29 = vsel %vm4102_vm5, %v1775_v19, %v1779_v25  ;;  %v2135_v54 = vsel %vm4079_vm4, %v3682_v5, %v2134_v10  ;;  %v2136_v35 = vrot.slane %v2134_v10, 4  ;;  %v2265_v39 = vmul.bf16 %v4051_v17, %v4666_v9 }
  0xfe   : > { %v1790_v32 = vsel %vm4102_vm5, %v1785_v21, %v1789_v6  ;;  %v1941_v4 = vadd.bf16 %v1780_v29, %v1434_v59  ;;  %v2350_v42 = vmul.bf16 %v4157_v0, %v4661_v58  ;;  %v2351_v60 = vmul.bf16 %v4157_v0, %v4666_v9  ;;  %v442_v59 = vld [vmem:[#allocation2 + $0x50] sm:$0xf] }
  0xff   : > { %v1942_v40 = vadd.bf16 %v1790_v32, %v1435_v36  ;;  %v2138_v46 = vsel %vm4079_vm4, %v2136_v35, %v2137_v56  ;;  %v2352_v52 = vmul.bf16 %v4157_v0, %v4669_v57  ;;  %v2854_v43 = vmul.bf16 %v4152_v22, %v4661_v58 }
 0x100   : > { %v2221_v26 = vadd.bf16 %v2135_v54, %v1941_v4  ;;  %v2630_v47 = vshrl.u32 %v2350_v42, 16  ;;  %v2633_v45 = vshll.u32 %v2350_v42, 16  ;;  %v2639_v25 = vshll.u32 %v2351_v60, 16 }
 0x101   : > { %v2222_v62 = vadd.bf16 %v2138_v46, %v1942_v40  ;;  %v2643_v53 = vshrl.u32 %v2351_v60, 16  ;;  %v2649_v27 = vshll.u32 %v2352_v52, 16  ;;  %v2855_v12 = vmul.bf16 %v4152_v22, %v4666_v9 }
 0x102   : > { %v2296_v48 = vadd.bf16 %v2264_v51, %v2221_v26  ;;  %v2632_v28 = vrot.slane %v2630_v47, 4  ;;  %v2635_v6 = vrot.slane %v2633_v45, 5  ;;  %v2641_v61 = vrot.slane %v2639_v25, 5 }
 0x103   : > { %v2297_v19 = vadd.bf16 %v2265_v39, %v2222_v62  ;;  %v2645_v5 = vrot.slane %v2643_v53, 4  ;;  %v2651_v10 = vrot.slane %v2649_v27, 5  ;;  %v2856_v36 = vmul.bf16 %v4152_v22, %v4669_v57 }
 0x104   : > { %v2636_v21 = vor.u32 %v2635_v6, %v2632_v28  ;;  %v3701_v56 = vrot.slane %v2854_v43, 9  ;;  %v2996_v29 = vrot.slane %v2855_v12, 5  ;;  %v4742_v54 = vmax.bf16 %v3884_v41, %v440_v7 }
 0x105   : > { %v2646_v35 = vor.u32 %v2645_v5, %v2641_v61  ;;  %v2999_v32 = vrot.slane %v2856_v36, 5  ;;  %v4745_v51 = vmax.bf16 %v3884_v41, %v441_v3  ;;  %v4748_v4 = vmax.bf16 %v3884_v41, %v442_v59 }
 0x106   : > { %v2637_v39 = vrot.slane %v2636_v21, 4  ;;  %v2997_v42 = vsel %vm4079_vm4, %v3701_v56, %v2996_v29  ;;  %v2998_v60 = vrot.slane %v2996_v29, 4  ;;  %v552_v40 = vmul.bf16 %v4041_v11, %v4418_v44 }
 0x107   : > { %v2647_v46 = vrot.slane %v2646_v35, 4  ;;  %v553_v52 = vmul.bf16 %v4041_v11, %v4421_v38  ;;  %v599_v43 = vmul.bf16 %v4057_v20, %v4418_v44  ;;  %v600_v26 = vmul.bf16 %v4057_v20, %v4421_v38 }
 0x108   : > { %v2642_v47 = vsel %vm4102_vm5, %v2637_v39, %v2641_v61  ;;  %v3000_v45 = vsel %vm4079_vm4, %v2998_v60, %v2999_v32  ;;  %v601_v25 = vmul.bf16 %v4057_v20, %v4424_v55  ;;  %v1106_v62 = vmul.bf16 %v4044_v13, %v4418_v44 }
 0x109   : > { %v2652_v53 = vsel %vm4102_vm5, %v2647_v46, %v2651_v10  ;;  %v2803_v27 = vadd.bf16 %v2642_v47, %v2296_v48  ;;  %v735_v12 = vshrl.u32 %v599_v43, 16  ;;  %v738_v7 = vshll.u32 %v599_v43, 16 }
 0x10a   : > { %v2804_v3 = vadd.bf16 %v2652_v53, %v2297_v19  ;;  %v744_v28 = vshll.u32 %v600_v26, 16  ;;  %v748_v6 = vshrl.u32 %v600_v26, 16  ;;  %v754_v59 = vshll.u32 %v601_v25, 16 }
 0x10b   : > { %v3083_v61 = vadd.bf16 %v2997_v42, %v2803_v27  ;;  %v737_v5 = vrot.slane %v735_v12, 4  ;;  %v740_v36 = vrot.slane %v738_v7, 5  ;;  %v1107_v21 = vmul.bf16 %v4044_v13, %v4421_v38 }
 0x10c   : > { %v3084_v56 = vadd.bf16 %v3000_v45, %v2804_v3  ;;  %v746_v29 = vrot.slane %v744_v28, 5  ;;  %v750_v35 = vrot.slane %v748_v6, 4  ;;  %v756_v44 = vrot.slane %v754_v59, 5 }
 0x10d   : > { %v741_v32 = vor.u32 %v740_v36, %v737_v5  ;;  %v1108_v48 = vmul.bf16 %v4044_v13, %v4424_v55  ;;  %v3656_v10 = vrot.slane %v1106_v62, 9  ;;  %v1223_v39 = vrot.slane %v1107_v21, 5 }
 0x10e   : > { %v3718_v19 = vcombine.low %v3083_v61, %v3084_v56  ;;  %v751_v60 = vor.u32 %v750_v35, %v746_v29  ;;  %v1388_v42 = vmul.bf16 %v4046_v14, %v4580_v33  ;;  %v1389_v46 = vmul.bf16 %v4046_v14, %v4583_v31 }
 0x10f   : > { %v742_v43 = vrot.slane %v741_v32, 4  ;;  %v1224_v38 = vsel %vm4079_vm4, %v3656_v10, %v1223_v39  ;;  %v1225_v26 = vrot.slane %v1223_v39, 4  ;;  %v1226_v47 = vrot.slane %v1108_v48, 5 }
 0x110   : > { %3798 = vmatmul.mubr.bf16.gmra.mxu1 %v3718_v19  ;;  %v752_v45 = vrot.slane %v751_v60, 4  ;;  %v1467_v55 = vmul.bf16 %v4085_v37, %v4580_v33  ;;  %v1468_v25 = vmul.bf16 %v4085_v37, %v4583_v31  ;;  %v1469_v62 = vmul.bf16 %v4085_v37, %v4586_v50 }
 0x111   : > { %v747_v53 = vsel %vm4102_vm5, %v742_v43, %v746_v29  ;;  %v1227_v27 = vsel %vm4079_vm4, %v1225_v26, %v1226_v47  ;;  %v1971_v12 = vmul.bf16 %v4049_v16, %v4580_v33  ;;  %v1972_v7 = vmul.bf16 %v4049_v16, %v4583_v31 }
 0x112   : > { %v757_v3 = vsel %vm4102_vm5, %v752_v45, %v756_v44  ;;  %v1062_v28 = vadd.bf16 %v747_v53, %v552_v40  ;;  %v1600_v6 = vshrl.u32 %v1467_v55, 16  ;;  %v1603_v59 = vshll.u32 %v1467_v55, 16 }
 0x113   : > { %v1063_v61 = vadd.bf16 %v757_v3, %v553_v52  ;;  %v1609_v5 = vshll.u32 %v1468_v25, 16  ;;  %v1613_v36 = vshrl.u32 %v1468_v25, 16  ;;  %v1619_v21 = vshll.u32 %v1469_v62, 16 }
 0x114   : > { %v1345_v56 = vadd.bf16 %v1224_v38, %v1062_v28  ;;  %v1602_v29 = vrot.slane %v1600_v6, 4  ;;  %v1605_v35 = vrot.slane %v1603_v59, 5  ;;  %v1973_v32 = vmul.bf16 %v4049_v16, %v4586_v50 }
 0x115   : > { %v1346_v48 = vadd.bf16 %v1227_v27, %v1063_v61  ;;  %v1611_v10 = vrot.slane %v1609_v5, 5  ;;  %v1615_v39 = vrot.slane %v1613_v36, 4  ;;  %v1621_v19 = vrot.slane %v1619_v21, 5 }
 0x116   : > { %v1420_v60 = vadd.bf16 %v1388_v42, %v1345_v56  ;;  %v1606_v43 = vor.u32 %v1605_v35, %v1602_v29  ;;  %v3675_v44 = vrot.slane %v1971_v12, 9  ;;  %v2085_v40 = vrot.slane %v1972_v7, 5 }
 0x117   : > { %v1421_v26 = vadd.bf16 %v1389_v46, %v1346_v48  ;;  %v1616_v47 = vor.u32 %v1615_v39, %v1611_v10  ;;  %v2088_v52 = vrot.slane %v1973_v32, 5  ;;  %v2250_v45 = vmul.bf16 %v4051_v17, %v4742_v54  ;;  %v464_v39 = vld [vmem:[#allocation2 + $0xa8] sm:$0xf] }
 0x118   : > { %v1607_v38 = vrot.slane %v1606_v43, 4  ;;  %v2086_v55 = vsel %vm4079_vm4, %v3675_v44, %v2085_v40  ;;  %v2087_v25 = vrot.slane %v2085_v40, 4  ;;  %v2251_v62 = vmul.bf16 %v4051_v17, %v4745_v51 }
 0x119   : > { %v1617_v53 = vrot.slane %v1616_v47, 4  ;;  %v2329_v42 = vmul.bf16 %v4157_v0, %v4742_v54  ;;  %v2330_v46 = vmul.bf16 %v4157_v0, %v4745_v51  ;;  %v2331_v27 = vmul.bf16 %v4157_v0, %v4748_v4 }
 0x11a   : > { %v1612_v12 = vsel %vm4102_vm5, %v1607_v38, %v1611_v10  ;;  %v2089_v7 = vsel %vm4079_vm4, %v2087_v25, %v2088_v52  ;;  %v2833_v3 = vmul.bf16 %v4152_v22, %v4742_v54  ;;  %v2834_v28 = vmul.bf16 %v4152_v22, %v4745_v51  ;;  %v465_v52 = vld [vmem:[#allocation2 + $0xac] sm:$0xf] }
 0x11b   : > { %v1622_v6 = vsel %vm4102_vm5, %v1617_v53, %v1621_v19  ;;  %v1927_v59 = vadd.bf16 %v1612_v12, %v1420_v60  ;;  %v2462_v61 = vshrl.u32 %v2329_v42, 16  ;;  %v2465_v5 = vshll.u32 %v2329_v42, 16 }
 0x11c   : > { %v1928_v36 = vadd.bf16 %v1622_v6, %v1421_v26  ;;  %v2471_v21 = vshll.u32 %v2330_v46, 16  ;;  %v2475_v56 = vshrl.u32 %v2330_v46, 16  ;;  %v2481_v29 = vshll.u32 %v2331_v27, 16  ;;  %v466_v26 = vld [vmem:[#allocation2 + $0xb0] sm:$0xf] }
 0x11d   : > { %v2207_v35 = vadd.bf16 %v2086_v55, %v1927_v59  ;;  %v2464_v32 = vrot.slane %v2462_v61, 4  ;;  %v2467_v48 = vrot.slane %v2465_v5, 5  ;;  %v2835_v10 = vmul.bf16 %v4152_v22, %v4748_v4 }
 0x11e   : > { %v2208_v43 = vadd.bf16 %v2089_v7, %v1928_v36  ;;  %v2473_v44 = vrot.slane %v2471_v21, 5  ;;  %v2477_v40 = vrot.slane %v2475_v56, 4  ;;  %v2483_v47 = vrot.slane %v2481_v29, 5 }
 0x11f   : > { %v2282_v19 = vadd.bf16 %v2250_v45, %v2207_v35  ;;  %v2468_v60 = vor.u32 %v2467_v48, %v2464_v32  ;;  %v3694_v38 = vrot.slane %v2833_v3, 9  ;;  %v2947_v25 = vrot.slane %v2834_v28, 5 }
 0x120   : > { %v2283_v53 = vadd.bf16 %v2251_v62, %v2208_v43  ;;  %v2478_v42 = vor.u32 %v2477_v40, %v2473_v44  ;;  %v2950_v46 = vrot.slane %v2835_v10, 5  ;;  %v4823_v55 = vmax.bf16 %v3884_v41, %v464_v39 }
 0x121   : > { %v2469_v27 = vrot.slane %v2468_v60, 4  ;;  %v2948_v12 = vsel %vm4079_vm4, %v3694_v38, %v2947_v25  ;;  %v2949_v7 = vrot.slane %v2947_v25, 4  ;;  %v4828_v6 = vmax.bf16 %v3884_v41, %v465_v52 }
 0x122   : > { %v2479_v59 = vrot.slane %v2478_v42, 4  ;;  %v4831_v45 = vmax.bf16 %v3884_v41, %v466_v26  ;;  %v568_v62 = vmul.bf16 %v4041_v11, %v4499_v63  ;;  %v569_v3 = vmul.bf16 %v4041_v11, %v4504_v49 }
 0x123   : > { %v2474_v28 = vsel %vm4102_vm5, %v2469_v27, %v2473_v44  ;;  %v2951_v61 = vsel %vm4079_vm4, %v2949_v7, %v2950_v46  ;;  %v623_v5 = vmul.bf16 %v4057_v20, %v4499_v63  ;;  %v624_v36 = vmul.bf16 %v4057_v20, %v4504_v49 }
 0x124   : > { %v2484_v21 = vsel %vm4102_vm5, %v2479_v59, %v2483_v47  ;;  %v2789_v56 = vadd.bf16 %v2474_v28, %v2282_v19  ;;  %v625_v29 = vmul.bf16 %v4057_v20, %v4507_v18  ;;  %v1130_v35 = vmul.bf16 %v4044_v13, %v4499_v63 }
 0x125   : > { %v2790_v32 = vadd.bf16 %v2484_v21, %v2283_v53  ;;  %v927_v48 = vshrl.u32 %v623_v5, 16  ;;  %v930_v10 = vshll.u32 %v623_v5, 16  ;;  %v936_v39 = vshll.u32 %v624_v36, 16 }
 0x126   : > { %v3069_v43 = vadd.bf16 %v2948_v12, %v2789_v56  ;;  %v940_v44 = vshrl.u32 %v624_v36, 16  ;;  %v946_v40 = vshll.u32 %v625_v29, 16  ;;  %v1131_v52 = vmul.bf16 %v4044_v13, %v4504_v49 }
 0x127   : > { %v3070_v60 = vadd.bf16 %v2951_v61, %v2790_v32  ;;  %v929_v38 = vrot.slane %v927_v48, 4  ;;  %v932_v47 = vrot.slane %v930_v10, 5  ;;  %v938_v19 = vrot.slane %v936_v39, 5 }
 0x128   : > { %v942_v25 = vrot.slane %v940_v44, 4  ;;  %v948_v26 = vrot.slane %v946_v40, 5  ;;  %v1132_v42 = vmul.bf16 %v4044_v13, %v4507_v18  ;;  %v3664_v63 = vrot.slane %v1130_v35, 9 }
 0x129   : > { %v3711_v53 = vcombine.low %v3069_v43, %v3070_v60  ;;  %v933_v46 = vor.u32 %v932_v47, %v929_v38  ;;  %v1279_v27 = vrot.slane %v1131_v52, 5  ;;  %v1404_v12 = vmul.bf16 %v4046_v14, %v4661_v58 }
 0x12a   : > { %v943_v7 = vor.u32 %v942_v25, %v938_v19  ;;  %v1282_v59 = vrot.slane %v1132_v42, 5  ;;  %v1405_v49 = vmul.bf16 %v4046_v14, %v4666_v9  ;;  %v1491_v28 = vmul.bf16 %v4085_v37, %v4661_v58 }
 0x12b   : > { %3785 = vmatprep.mubr.bf16.mxu0 %v3711_v53  ;;  %v934_v61 = vrot.slane %v933_v46, 4  ;;  %v1280_v18 = vsel %vm4079_vm4, %v3664_v63, %v1279_v27  ;;  %v1281_v5 = vrot.slane %v1279_v27, 4  ;;  %v1492_v36 = vmul.bf16 %v4085_v37, %v4666_v9 }
 0x12c   : > { %v944_v21 = vrot.slane %v943_v7, 4  ;;  %v1493_v56 = vmul.bf16 %v4085_v37, %v4669_v57  ;;  %v1792_v29 = vshrl.u32 %v1491_v28, 16  ;;  %v1795_v35 = vshll.u32 %v1491_v28, 16 }
 0x12d   : > { %v939_v32 = vsel %vm4102_vm5, %v934_v61, %v938_v19  ;;  %v1283_v48 = vsel %vm4079_vm4, %v1281_v5, %v1282_v59  ;;  %v1801_v10 = vshll.u32 %v1492_v36, 16  ;;  %v1805_v39 = vshrl.u32 %v1492_v36, 16 }
 0x12e   : > { %v949_v43 = vsel %vm4102_vm5, %v944_v21, %v948_v26  ;;  %v1078_v44 = vadd.bf16 %v939_v32, %v568_v62  ;;  %v1794_v40 = vrot.slane %v1792_v29, 4  ;;  %v1797_v52 = vrot.slane %v1795_v35, 5 }
 0x12f   : > { %v1079_v60 = vadd.bf16 %v949_v43, %v569_v3  ;;  %v1803_v38 = vrot.slane %v1801_v10, 5  ;;  %v1807_v47 = vrot.slane %v1805_v39, 4  ;;  %v1811_v25 = vshll.u32 %v1493_v56, 16 }
 0x130   : > { %v1361_v42 = vadd.bf16 %v1280_v18, %v1078_v44  ;;  %v1798_v63 = vor.u32 %v1797_v52, %v1794_v40  ;;  %v1995_v19 = vmul.bf16 %v4049_v16, %v4661_v58  ;;  %v1996_v53 = vmul.bf16 %v4049_v16, %v4666_v9 }
 0x131   : > { %v1362_v46 = vadd.bf16 %v1283_v48, %v1079_v60  ;;  %v1808_v27 = vor.u32 %v1807_v47, %v1803_v38  ;;  %v1813_v7 = vrot.slane %v1811_v25, 5  ;;  %v1997_v62 = vmul.bf16 %v4049_v16, %v4669_v57 }
 0x132   : > { %v1436_v26 = vadd.bf16 %v1404_v12, %v1361_v42  ;;  %v1799_v59 = vrot.slane %v1798_v63, 4  ;;  %v3683_v3 = vrot.slane %v1995_v19, 9  ;;  %v2141_v28 = vrot.slane %v1996_v53, 5  ;;  %v443_v19 = vld [vmem:[#allocation2 + $0x54] sm:$0xf] }
 0x133   : > { %v1437_v61 = vadd.bf16 %v1405_v49, %v1362_v46  ;;  %v1809_v5 = vrot.slane %v1808_v27, 4  ;;  %v2144_v18 = vrot.slane %v1997_v62, 5  ;;  %v2266_v36 = vmul.bf16 %v4051_v17, %v4823_v55  ;;  %v444_v53 = vld [vmem:[#allocation2 + $0x58] sm:$0xf] }
 0x134   : > { %v1804_v21 = vsel %vm4102_vm5, %v1799_v59, %v1803_v38  ;;  %v2142_v56 = vsel %vm4079_vm4, %v3683_v3, %v2141_v28  ;;  %v2143_v29 = vrot.slane %v2141_v28, 4  ;;  %v2267_v35 = vmul.bf16 %v4051_v17, %v4828_v6 }
 0x135   : > { %v1814_v12 = vsel %vm4102_vm5, %v1809_v5, %v1813_v7  ;;  %v1943_v32 = vadd.bf16 %v1804_v21, %v1436_v26  ;;  %v2353_v49 = vmul.bf16 %v4157_v0, %v4823_v55  ;;  %v2354_v48 = vmul.bf16 %v4157_v0, %v4828_v6  ;;  %v445_v26 = vld [vmem:[#allocation2 + $0x5c] sm:$0xf] }
 0x136   : > { %v1944_v10 = vadd.bf16 %v1814_v12, %v1437_v61  ;;  %v2145_v39 = vsel %vm4079_vm4, %v2143_v29, %v2144_v18  ;;  %v2355_v43 = vmul.bf16 %v4157_v0, %v4831_v45  ;;  %v2857_v44 = vmul.bf16 %v4152_v22, %v4823_v55 }
 0x137   : > { %v2223_v40 = vadd.bf16 %v2142_v56, %v1943_v32  ;;  %v2654_v52 = vshrl.u32 %v2353_v49, 16  ;;  %v2657_v60 = vshll.u32 %v2353_v49, 16  ;;  %v2663_v38 = vshll.u32 %v2354_v48, 16 }
 0x138   : > { %v2224_v47 = vadd.bf16 %v2145_v39, %v1944_v10  ;;  %v2667_v25 = vshrl.u32 %v2354_v48, 16  ;;  %v2673_v42 = vshll.u32 %v2355_v43, 16  ;;  %v2858_v63 = vmul.bf16 %v4152_v22, %v4828_v6 }
 0x139   : > { %v2298_v46 = vadd.bf16 %v2266_v36, %v2223_v40  ;;  %v2656_v27 = vrot.slane %v2654_v52, 4  ;;  %v2659_v7 = vrot.slane %v2657_v60, 5  ;;  %v2665_v62 = vrot.slane %v2663_v38, 5 }
 0x13a   : > { %v2299_v59 = vadd.bf16 %v2267_v35, %v2224_v47  ;;  %v2669_v3 = vrot.slane %v2667_v25, 4  ;;  %v2675_v28 = vrot.slane %v2673_v42, 5  ;;  %v2859_v61 = vmul.bf16 %v4152_v22, %v4831_v45 }
 0x13b   : > { %v2660_v5 = vor.u32 %v2659_v7, %v2656_v27  ;;  %v3702_v18 = vrot.slane %v2857_v44, 9  ;;  %v3003_v21 = vrot.slane %v2858_v63, 5  ;;  %v4904_v56 = vmax.bf16 %v3884_v41, %v443_v19 }
 0x13c   : > { %v2670_v29 = vor.u32 %v2669_v3, %v2665_v62  ;;  %v3006_v12 = vrot.slane %v2859_v61, 5  ;;  %v4907_v36 = vmax.bf16 %v3884_v41, %v444_v53  ;;  %v4910_v32 = vmax.bf16 %v3884_v41, %v445_v26 }
 0x13d   : > { %v2661_v35 = vrot.slane %v2660_v5, 4  ;;  %v3004_v49 = vsel %vm4079_vm4, %v3702_v18, %v3003_v21  ;;  %v3005_v48 = vrot.slane %v3003_v21, 4  ;;  %v554_v10 = vmul.bf16 %v4041_v11, %v4580_v33 }
 0x13e   : > { %v2671_v39 = vrot.slane %v2670_v29, 4  ;;  %v555_v43 = vmul.bf16 %v4041_v11, %v4583_v31  ;;  %v602_v44 = vmul.bf16 %v4057_v20, %v4580_v33  ;;  %v603_v40 = vmul.bf16 %v4057_v20, %v4583_v31 }
 0x13f   : > { %v2666_v52 = vsel %vm4102_vm5, %v2661_v35, %v2665_v62  ;;  %v3007_v60 = vsel %vm4079_vm4, %v3005_v48, %v3006_v12  ;;  %v604_v38 = vmul.bf16 %v4057_v20, %v4586_v50  ;;  %v1109_v47 = vmul.bf16 %v4044_v13, %v4580_v33 }
 0x140   : > { %v2676_v25 = vsel %vm4102_vm5, %v2671_v39, %v2675_v28  ;;  %v2805_v42 = vadd.bf16 %v2666_v52, %v2298_v46  ;;  %v759_v63 = vshrl.u32 %v602_v44, 16  ;;  %v762_v19 = vshll.u32 %v602_v44, 16 }
 0x141   : > { %v2806_v53 = vadd.bf16 %v2676_v25, %v2299_v59  ;;  %v768_v27 = vshll.u32 %v603_v40, 16  ;;  %v772_v7 = vshrl.u32 %v603_v40, 16  ;;  %v778_v26 = vshll.u32 %v604_v38, 16 }
 0x142   : > { %v3085_v62 = vadd.bf16 %v3004_v49, %v2805_v42  ;;  %v761_v3 = vrot.slane %v759_v63, 4  ;;  %v764_v61 = vrot.slane %v762_v19, 5  ;;  %v1110_v5 = vmul.bf16 %v4044_v13, %v4583_v31 }
 0x143   : > { %v3086_v18 = vadd.bf16 %v3007_v60, %v2806_v53  ;;  %v770_v21 = vrot.slane %v768_v27, 5  ;;  %v774_v29 = vrot.slane %v772_v7, 4  ;;  %v780_v33 = vrot.slane %v778_v26, 5 }
 0x144   : > { %v765_v12 = vor.u32 %v764_v61, %v761_v3  ;;  %v1111_v46 = vmul.bf16 %v4044_v13, %v4586_v50  ;;  %v3657_v28 = vrot.slane %v1109_v47, 9  ;;  %v1230_v35 = vrot.slane %v1110_v5, 5 }
 0x145   : > { %v3719_v59 = vcombine.low %v3085_v62, %v3086_v18  ;;  %v775_v48 = vor.u32 %v774_v29, %v770_v21  ;;  %v1390_v49 = vmul.bf16 %v4046_v14, %v4742_v54  ;;  %v1391_v39 = vmul.bf16 %v4046_v14, %v4745_v51 }
 0x146   : > { %v766_v44 = vrot.slane %v765_v12, 4  ;;  %v1231_v31 = vsel %vm4079_vm4, %v3657_v28, %v1230_v35  ;;  %v1232_v40 = vrot.slane %v1230_v35, 4  ;;  %v1233_v52 = vrot.slane %v1111_v46, 5 }
 0x147   : > { %3801 = vmatprep.mubr.bf16.mxu1 %v3719_v59  ;;  %v776_v60 = vrot.slane %v775_v48, 4  ;;  %v1470_v50 = vmul.bf16 %v4085_v37, %v4742_v54  ;;  %v1471_v38 = vmul.bf16 %v4085_v37, %v4745_v51  ;;  %v1472_v47 = vmul.bf16 %v4085_v37, %v4748_v4 }
 0x148   : > { %v771_v25 = vsel %vm4102_vm5, %v766_v44, %v770_v21  ;;  %v1234_v42 = vsel %vm4079_vm4, %v1232_v40, %v1233_v52  ;;  %v1974_v63 = vmul.bf16 %v4049_v16, %v4742_v54  ;;  %v1975_v19 = vmul.bf16 %v4049_v16, %v4745_v51 }
 0x149   : > { %v781_v53 = vsel %vm4102_vm5, %v776_v60, %v780_v33  ;;  %v1064_v27 = vadd.bf16 %v771_v25, %v554_v10  ;;  %v1624_v7 = vshrl.u32 %v1470_v50, 16  ;;  %v1627_v26 = vshll.u32 %v1470_v50, 16 }
 0x14a   : > { %v1065_v62 = vadd.bf16 %v781_v53, %v555_v43  ;;  %v1633_v3 = vshll.u32 %v1471_v38, 16  ;;  %v1637_v61 = vshrl.u32 %v1471_v38, 16  ;;  %v1643_v5 = vshll.u32 %v1472_v47, 16 }
 0x14b   : > { %v1347_v18 = vadd.bf16 %v1231_v31, %v1064_v27  ;;  %v1626_v21 = vrot.slane %v1624_v7, 4  ;;  %v1629_v29 = vrot.slane %v1627_v26, 5  ;;  %v1976_v12 = vmul.bf16 %v4049_v16, %v4748_v4 }
 0x14c   : > { %v1348_v46 = vadd.bf16 %v1234_v42, %v1065_v62  ;;  %v1635_v28 = vrot.slane %v1633_v3, 5  ;;  %v1639_v35 = vrot.slane %v1637_v61, 4  ;;  %v1645_v59 = vrot.slane %v1643_v5, 5 }
 0x14d   : > { %v1422_v48 = vadd.bf16 %v1390_v49, %v1347_v18  ;;  %v1630_v44 = vor.u32 %v1629_v29, %v1626_v21  ;;  %v3676_v33 = vrot.slane %v1974_v63, 9  ;;  %v2092_v10 = vrot.slane %v1975_v19, 5 }
 0x14e   : > { %v1423_v40 = vadd.bf16 %v1391_v39, %v1348_v46  ;;  %v1640_v52 = vor.u32 %v1639_v35, %v1635_v28  ;;  %v2095_v43 = vrot.slane %v1976_v12, 5  ;;  %v2252_v60 = vmul.bf16 %v4051_v17, %v4904_v56  ;;  %v467_v35 = vld [vmem:[#allocation2 + $0xb4] sm:$0xf] }
 0x14f   : > { %v1631_v31 = vrot.slane %v1630_v44, 4  ;;  %v2093_v50 = vsel %vm4079_vm4, %v3676_v33, %v2092_v10  ;;  %v2094_v38 = vrot.slane %v2092_v10, 4  ;;  %v2253_v47 = vmul.bf16 %v4051_v17, %v4907_v36 }
 0x150   : > { %v1641_v25 = vrot.slane %v1640_v52, 4  ;;  %v2332_v49 = vmul.bf16 %v4157_v0, %v4904_v56  ;;  %v2333_v39 = vmul.bf16 %v4157_v0, %v4907_v36  ;;  %v2334_v42 = vmul.bf16 %v4157_v0, %v4910_v32 }
 0x151   : > { %v1636_v63 = vsel %vm4102_vm5, %v1631_v31, %v1635_v28  ;;  %v2096_v19 = vsel %vm4079_vm4, %v2094_v38, %v2095_v43  ;;  %v2836_v53 = vmul.bf16 %v4152_v22, %v4904_v56  ;;  %v2837_v27 = vmul.bf16 %v4152_v22, %v4907_v36  ;;  %v468_v43 = vld [vmem:[#allocation2 + $0xb8] sm:$0xf] }
 0x152   : > { %v1646_v7 = vsel %vm4102_vm5, %v1641_v25, %v1645_v59  ;;  %v1929_v26 = vadd.bf16 %v1636_v63, %v1422_v48  ;;  %v2486_v62 = vshrl.u32 %v2332_v49, 16  ;;  %v2489_v3 = vshll.u32 %v2332_v49, 16 }
 0x153   : > { %v1930_v61 = vadd.bf16 %v1646_v7, %v1423_v40  ;;  %v2495_v5 = vshll.u32 %v2333_v39, 16  ;;  %v2499_v18 = vshrl.u32 %v2333_v39, 16  ;;  %v2505_v21 = vshll.u32 %v2334_v42, 16  ;;  %v469_v40 = vld [vmem:[#allocation2 + $0xbc] sm:$0xf] }
 0x154   : > { %v2209_v29 = vadd.bf16 %v2093_v50, %v1929_v26  ;;  %v2488_v12 = vrot.slane %v2486_v62, 4  ;;  %v2491_v46 = vrot.slane %v2489_v3, 5  ;;  %v2838_v28 = vmul.bf16 %v4152_v22, %v4910_v32 }
 0x155   : > { %v2210_v44 = vadd.bf16 %v2096_v19, %v1930_v61  ;;  %v2497_v33 = vrot.slane %v2495_v5, 5  ;;  %v2501_v10 = vrot.slane %v2499_v18, 4  ;;  %v2507_v52 = vrot.slane %v2505_v21, 5 }
 0x156   : > { %v2284_v59 = vadd.bf16 %v2252_v60, %v2209_v29  ;;  %v2492_v48 = vor.u32 %v2491_v46, %v2488_v12  ;;  %v3695_v31 = vrot.slane %v2836_v53, 9  ;;  %v2954_v38 = vrot.slane %v2837_v27, 5 }
 0x157   : > { %v2285_v25 = vadd.bf16 %v2253_v47, %v2210_v44  ;;  %v2502_v49 = vor.u32 %v2501_v10, %v2497_v33  ;;  %v2957_v39 = vrot.slane %v2838_v28, 5  ;;  %v4985_v50 = vmax.bf16 %v3884_v41, %v467_v35 }
 0x158   : > { %v2493_v42 = vrot.slane %v2492_v48, 4  ;;  %v2955_v63 = vsel %vm4079_vm4, %v3695_v31, %v2954_v38  ;;  %v2956_v19 = vrot.slane %v2954_v38, 4  ;;  %v4990_v7 = vmax.bf16 %v3884_v41, %v468_v43 }
 0x159   : > { %v2503_v26 = vrot.slane %v2502_v49, 4  ;;  %v4993_v60 = vmax.bf16 %v3884_v41, %v469_v40  ;;  %v570_v47 = vmul.bf16 %v4041_v11, %v4661_v58  ;;  %v571_v53 = vmul.bf16 %v4041_v11, %v4666_v9 }
 0x15a   : > { %v2498_v27 = vsel %vm4102_vm5, %v2493_v42, %v2497_v33  ;;  %v2958_v62 = vsel %vm4079_vm4, %v2956_v19, %v2957_v39  ;;  %v626_v3 = vmul.bf16 %v4057_v20, %v4661_v58  ;;  %v627_v61 = vmul.bf16 %v4057_v20, %v4666_v9 }
 0x15b   : > { %v2508_v5 = vsel %vm4102_vm5, %v2503_v26, %v2507_v52  ;;  %v2791_v18 = vadd.bf16 %v2498_v27, %v2284_v59  ;;  %v628_v21 = vmul.bf16 %v4057_v20, %v4669_v57  ;;  %v1133_v29 = vmul.bf16 %v4044_v13, %v4661_v58 }
 0x15c   : > { %v2792_v12 = vadd.bf16 %v2508_v5, %v2285_v25  ;;  %v951_v46 = vshrl.u32 %v626_v3, 16  ;;  %v954_v28 = vshll.u32 %v626_v3, 16  ;;  %v960_v35 = vshll.u32 %v627_v61, 16 }
 0x15d   : > { %v3071_v44 = vadd.bf16 %v2955_v63, %v2791_v18  ;;  %v964_v33 = vshrl.u32 %v627_v61, 16  ;;  %v970_v10 = vshll.u32 %v628_v21, 16  ;;  %v1134_v43 = vmul.bf16 %v4044_v13, %v4666_v9 }
 0x15e   : > { %v3072_v48 = vadd.bf16 %v2958_v62, %v2792_v12  ;;  %v953_v31 = vrot.slane %v951_v46, 4  ;;  %v956_v52 = vrot.slane %v954_v28, 5  ;;  %v962_v59 = vrot.slane %v960_v35, 5 }
 0x15f   : > { %v966_v38 = vrot.slane %v964_v33, 4  ;;  %v972_v40 = vrot.slane %v970_v10, 5  ;;  %v1135_v49 = vmul.bf16 %v4044_v13, %v4669_v57  ;;  %v3665_v58 = vrot.slane %v1133_v29, 9 }
 0x160   : > { %v3712_v25 = vcombine.low %v3071_v44, %v3072_v48  ;;  %v957_v39 = vor.u32 %v956_v52, %v953_v31  ;;  %v1286_v42 = vrot.slane %v1134_v43, 5  ;;  %v1406_v63 = vmul.bf16 %v4046_v14, %v4823_v55 }
 0x161   : > { %v967_v19 = vor.u32 %v966_v38, %v962_v59  ;;  %v1289_v26 = vrot.slane %v1135_v49, 5  ;;  %v1407_v9 = vmul.bf16 %v4046_v14, %v4828_v6  ;;  %v1494_v27 = vmul.bf16 %v4085_v37, %v4823_v55 }
 0x162   : > { %3786 = vmatmul.mubr.bf16.gmra.mxu0 %v3712_v25  ;;  %v958_v62 = vrot.slane %v957_v39, 4  ;;  %v1287_v57 = vsel %vm4079_vm4, %v3665_v58, %v1286_v42  ;;  %v1288_v3 = vrot.slane %v1286_v42, 4  ;;  %v1495_v61 = vmul.bf16 %v4085_v37, %v4828_v6 }
 0x163   : > { %v968_v5 = vrot.slane %v967_v19, 4  ;;  %v1496_v18 = vmul.bf16 %v4085_v37, %v4831_v45  ;;  %v1816_v21 = vshrl.u32 %v1494_v27, 16  ;;  %v1819_v29 = vshll.u32 %v1494_v27, 16 }
 0x164   : > { %v963_v12 = vsel %vm4102_vm5, %v958_v62, %v962_v59  ;;  %v1290_v46 = vsel %vm4079_vm4, %v1288_v3, %v1289_v26  ;;  %v1825_v28 = vshll.u32 %v1495_v61, 16  ;;  %v1829_v35 = vshrl.u32 %v1495_v61, 16 }
 0x165   : > { %v973_v44 = vsel %vm4102_vm5, %v968_v5, %v972_v40  ;;  %v1080_v33 = vadd.bf16 %v963_v12, %v570_v47  ;;  %v1818_v10 = vrot.slane %v1816_v21, 4  ;;  %v1821_v43 = vrot.slane %v1819_v29, 5 }
 0x166   : > { %v1081_v48 = vadd.bf16 %v973_v44, %v571_v53  ;;  %v1827_v31 = vrot.slane %v1825_v28, 5  ;;  %v1831_v52 = vrot.slane %v1829_v35, 4  ;;  %v1835_v38 = vshll.u32 %v1496_v18, 16 }
 0x167   : > { %v1363_v49 = vadd.bf16 %v1287_v57, %v1080_v33  ;;  %v1822_v58 = vor.u32 %v1821_v43, %v1818_v10  ;;  %v1998_v59 = vmul.bf16 %v4049_v16, %v4823_v55  ;;  %v1999_v25 = vmul.bf16 %v4049_v16, %v4828_v6 }
 0x168   : > { %v1364_v39 = vadd.bf16 %v1290_v46, %v1081_v48  ;;  %v1832_v42 = vor.u32 %v1831_v52, %v1827_v31  ;;  %v1837_v19 = vrot.slane %v1835_v38, 5  ;;  %v2000_v47 = vmul.bf16 %v4049_v16, %v4831_v45 }
 0x169   : > { %v1438_v40 = vadd.bf16 %v1406_v63, %v1363_v49  ;;  %v1823_v26 = vrot.slane %v1822_v58, 4  ;;  %v3684_v53 = vrot.slane %v1998_v59, 9  ;;  %v2148_v27 = vrot.slane %v1999_v25, 5 }
 0x16a   : > { %v1439_v62 = vadd.bf16 %v1407_v9, %v1364_v39  ;;  %v1833_v3 = vrot.slane %v1832_v42, 4  ;;  %v2151_v57 = vrot.slane %v2000_v47, 5  ;;  %v2268_v61 = vmul.bf16 %v4051_v17, %v4985_v50 }
 0x16b   : > { %v1828_v5 = vsel %vm4102_vm5, %v1823_v26, %v1827_v31  ;;  %v2149_v18 = vsel %vm4079_vm4, %v3684_v53, %v2148_v27  ;;  %v2150_v21 = vrot.slane %v2148_v27, 4  ;;  %v2269_v29 = vmul.bf16 %v4051_v17, %v4990_v7 }
 0x16c   : > { %v1838_v63 = vsel %vm4102_vm5, %v1833_v3, %v1837_v19  ;;  %v1945_v12 = vadd.bf16 %v1828_v5, %v1438_v40  ;;  %v2356_v9 = vmul.bf16 %v4157_v0, %v4985_v50  ;;  %v2357_v46 = vmul.bf16 %v4157_v0, %v4990_v7 }
 0x16d   : > { %v1946_v28 = vadd.bf16 %v1838_v63, %v1439_v62  ;;  %v2152_v35 = vsel %vm4079_vm4, %v2150_v21, %v2151_v57  ;;  %v2358_v44 = vmul.bf16 %v4157_v0, %v4993_v60  ;;  %v2860_v33 = vmul.bf16 %v4152_v22, %v4985_v50 }
 0x16e   : > { %v2225_v10 = vadd.bf16 %v2149_v18, %v1945_v12  ;;  %v2678_v43 = vshrl.u32 %v2356_v9, 16  ;;  %v2681_v48 = vshll.u32 %v2356_v9, 16  ;;  %v2687_v31 = vshll.u32 %v2357_v46, 16 }
 0x16f   : > { %v2226_v52 = vadd.bf16 %v2152_v35, %v1946_v28  ;;  %v2691_v38 = vshrl.u32 %v2357_v46, 16  ;;  %v2697_v49 = vshll.u32 %v2358_v44, 16  ;;  %v2861_v58 = vmul.bf16 %v4152_v22, %v4990_v7 }
 0x170   : > { %v2300_v59 = vadd.bf16 %v2268_v61, %v2225_v10  ;;  %v2680_v25 = vrot.slane %v2678_v43, 4  ;;  %v2683_v39 = vrot.slane %v2681_v48, 5  ;;  %v2689_v42 = vrot.slane %v2687_v31, 5 }
 0x171   : > { %v2301_v19 = vadd.bf16 %v2269_v29, %v2226_v52  ;;  %v2693_v47 = vrot.slane %v2691_v38, 4  ;;  %v2699_v40 = vrot.slane %v2697_v49, 5  ;;  %v2862_v26 = vmul.bf16 %v4152_v22, %v4993_v60 }
 0x172   : > { %v2684_v53 = vor.u32 %v2683_v39, %v2680_v25  ;;  %v3703_v27 = vrot.slane %v2860_v33, 9  ;;  %v3010_v62 = vrot.slane %v2861_v58, 5  ;;  %v556_v3 = vmul.bf16 %v4041_v11, %v4742_v54 }
 0x173   : > { %v2694_v57 = vor.u32 %v2693_v47, %v2689_v42  ;;  %v3013_v5 = vrot.slane %v2862_v26, 5  ;;  %v557_v61 = vmul.bf16 %v4041_v11, %v4745_v51  ;;  %v605_v18 = vmul.bf16 %v4057_v20, %v4742_v54 }
 0x174   : > { %v2685_v21 = vrot.slane %v2684_v53, 4  ;;  %v3011_v29 = vsel %vm4079_vm4, %v3703_v27, %v3010_v62  ;;  %v3012_v63 = vrot.slane %v3010_v62, 4  ;;  %v606_v12 = vmul.bf16 %v4057_v20, %v4745_v51 }
 0x175   : > { %v2695_v9 = vrot.slane %v2694_v57, 4  ;;  %v607_v46 = vmul.bf16 %v4057_v20, %v4748_v4  ;;  %v783_v28 = vshrl.u32 %v605_v18, 16  ;;  %v786_v35 = vshll.u32 %v605_v18, 16 }
 0x176   : > { %v2690_v44 = vsel %vm4102_vm5, %v2685_v21, %v2689_v42  ;;  %v3014_v33 = vsel %vm4079_vm4, %v3012_v63, %v3013_v5  ;;  %v792_v10 = vshll.u32 %v606_v12, 16  ;;  %v796_v43 = vshrl.u32 %v606_v12, 16 }
 0x177   : > { %v2700_v48 = vsel %vm4102_vm5, %v2695_v9, %v2699_v40  ;;  %v2807_v31 = vadd.bf16 %v2690_v44, %v2300_v59  ;;  %v785_v52 = vrot.slane %v783_v28, 4  ;;  %v788_v38 = vrot.slane %v786_v35, 5 }
 0x178   : > { %v2808_v49 = vadd.bf16 %v2700_v48, %v2301_v19  ;;  %v794_v58 = vrot.slane %v792_v10, 5  ;;  %v798_v25 = vrot.slane %v796_v43, 4  ;;  %v802_v39 = vshll.u32 %v607_v46, 16 }
 0x179   : > { %v3087_v47 = vadd.bf16 %v3011_v29, %v2807_v31  ;;  %v789_v26 = vor.u32 %v788_v38, %v785_v52  ;;  %v1112_v42 = vmul.bf16 %v4044_v13, %v4742_v54  ;;  %v1113_v53 = vmul.bf16 %v4044_v13, %v4745_v51 }
 0x17a   : > { %v3088_v27 = vadd.bf16 %v3014_v33, %v2808_v49  ;;  %v799_v62 = vor.u32 %v798_v25, %v794_v58  ;;  %v804_v57 = vrot.slane %v802_v39, 5  ;;  %v1114_v59 = vmul.bf16 %v4044_v13, %v4748_v4 }
 0x17b   : > { %v790_v40 = vrot.slane %v789_v26, 4  ;;  %v3658_v5 = vrot.slane %v1112_v42, 9  ;;  %v1237_v19 = vrot.slane %v1113_v53, 5  ;;  %v1392_v18 = vmul.bf16 %v4046_v14, %v4904_v56 }
 0x17c   : > { %v3720_v21 = vcombine.low %v3087_v47, %v3088_v27  ;;  %v800_v29 = vrot.slane %v799_v62, 4  ;;  %v1240_v63 = vrot.slane %v1114_v59, 5  ;;  %v1393_v54 = vmul.bf16 %v4046_v14, %v4907_v36 }
 0x17d   : > { %v795_v51 = vsel %vm4102_vm5, %v790_v40, %v794_v58  ;;  %v1238_v12 = vsel %vm4079_vm4, %v3658_v5, %v1237_v19  ;;  %v1239_v9 = vrot.slane %v1237_v19, 4  ;;  %v1473_v4 = vmul.bf16 %v4085_v37, %v4904_v56 }
 0x17e   : > { %3802 = vmatmul.mubr.bf16.gmra.mxu1 %v3720_v21  ;;  %v805_v46 = vsel %vm4102_vm5, %v800_v29, %v804_v57  ;;  %v1066_v28 = vadd.bf16 %v795_v51, %v556_v3  ;;  %v1474_v35 = vmul.bf16 %v4085_v37, %v4907_v36  ;;  %v1475_v44 = vmul.bf16 %v4085_v37, %v4910_v32 }
 0x17f   : > { %v1067_v33 = vadd.bf16 %v805_v46, %v557_v61  ;;  %v1241_v10 = vsel %vm4079_vm4, %v1239_v9, %v1240_v63  ;;  %v1648_v43 = vshrl.u32 %v1473_v4, 16  ;;  %v1651_v48 = vshll.u32 %v1473_v4, 16 }
 0x180   : > { %v1349_v31 = vadd.bf16 %v1238_v12, %v1066_v28  ;;  %v1657_v52 = vshll.u32 %v1474_v35, 16  ;;  %v1661_v38 = vshrl.u32 %v1474_v35, 16  ;;  %v1667_v49 = vshll.u32 %v1475_v44, 16 }
 0x181   : > { %v1350_v58 = vadd.bf16 %v1241_v10, %v1067_v33  ;;  %v1650_v25 = vrot.slane %v1648_v43, 4  ;;  %v1653_v39 = vrot.slane %v1651_v48, 5  ;;  %v1977_v3 = vmul.bf16 %v4049_v16, %v4904_v56 }
 0x182   : > { %v1424_v47 = vadd.bf16 %v1392_v18, %v1349_v31  ;;  %v1659_v26 = vrot.slane %v1657_v52, 5  ;;  %v1663_v42 = vrot.slane %v1661_v38, 4  ;;  %v1669_v53 = vrot.slane %v1667_v49, 5 }
 0x183   : > { %v1425_v61 = vadd.bf16 %v1393_v54, %v1350_v58  ;;  %v1654_v27 = vor.u32 %v1653_v39, %v1650_v25  ;;  %v1978_v62 = vmul.bf16 %v4049_v16, %v4907_v36  ;;  %v1979_v57 = vmul.bf16 %v4049_v16, %v4910_v32 }
 0x184   : > { %v1664_v59 = vor.u32 %v1663_v42, %v1659_v26  ;;  %v3677_v40 = vrot.slane %v1977_v3, 9  ;;  %v2254_v5 = vmul.bf16 %v4051_v17, %v4027_v1  ;;  %v2255_v19 = vmul.bf16 %v4051_v17, %v4030_v2  ;;  %v470_v3 = vld [vmem:[#allocation2 + $0xc0] sm:$0xf] }
 0x185   : > { %v1655_v18 = vrot.slane %v1654_v27, 4  ;;  %v2099_v21 = vrot.slane %v1978_v62, 5  ;;  %v2102_v29 = vrot.slane %v1979_v57, 5  ;;  %v2335_v63 = vmul.bf16 %v4157_v0, %v4027_v1 }
 0x186   : > { %v1665_v54 = vrot.slane %v1664_v59, 4  ;;  %v2336_v51 = vmul.bf16 %v4157_v0, %v4030_v2  ;;  %v2337_v12 = vmul.bf16 %v4157_v0, %v4147_v24  ;;  %v2839_v9 = vmul.bf16 %v4152_v22, %v4027_v1 }
 0x187   : > { %v1660_v4 = vsel %vm4102_vm5, %v1655_v18, %v1659_v26  ;;  %v2100_v46 = vsel %vm4079_vm4, %v3677_v40, %v2099_v21  ;;  %v2101_v28 = vrot.slane %v2099_v21, 4  ;;  %v2510_v35 = vshrl.u32 %v2335_v63, 16 }
 0x188   : > { %v1670_v44 = vsel %vm4102_vm5, %v1665_v54, %v1669_v53  ;;  %v1931_v33 = vadd.bf16 %v1660_v4, %v1424_v47  ;;  %v2513_v10 = vshll.u32 %v2335_v63, 16  ;;  %v2519_v43 = vshll.u32 %v2336_v51, 16  ;;  %v471_v53 = vld [vmem:[#allocation2 + $0xc4] sm:$0xf] }
 0x189   : > { %v1932_v48 = vadd.bf16 %v1670_v44, %v1425_v61  ;;  %v2103_v31 = vsel %vm4079_vm4, %v2101_v28, %v2102_v29  ;;  %v2512_v52 = vrot.slane %v2510_v35, 4  ;;  %v2523_v38 = vshrl.u32 %v2336_v51, 16  ;;  %v472_v61 = vld [vmem:[#allocation2 + $0xc8] sm:$0xf] }
 0x18a   : > { %v2211_v49 = vadd.bf16 %v2100_v46, %v1931_v33  ;;  %v2515_v58 = vrot.slane %v2513_v10, 5  ;;  %v2521_v25 = vrot.slane %v2519_v43, 5  ;;  %v2529_v39 = vshll.u32 %v2337_v12, 16 }
 0x18b   : > { %v2212_v26 = vadd.bf16 %v2103_v31, %v1932_v48  ;;  %v2525_v42 = vrot.slane %v2523_v38, 4  ;;  %v2840_v27 = vmul.bf16 %v4152_v22, %v4030_v2  ;;  %v2841_v47 = vmul.bf16 %v4152_v22, %v4147_v24 }
 0x18c   : > { %v2286_v62 = vadd.bf16 %v2254_v5, %v2211_v49  ;;  %v2516_v57 = vor.u32 %v2515_v58, %v2512_v52  ;;  %v2531_v59 = vrot.slane %v2529_v39, 5  ;;  %v3696_v40 = vrot.slane %v2839_v9, 9 }
 0x18d   : > { %v2287_v18 = vadd.bf16 %v2255_v19, %v2212_v26  ;;  %v2526_v21 = vor.u32 %v2525_v42, %v2521_v25  ;;  %v2961_v29 = vrot.slane %v2840_v27, 5  ;;  %v2964_v63 = vrot.slane %v2841_v47, 5 }
 0x18e   : > { %v2517_v54 = vrot.slane %v2516_v57, 4  ;;  %v5138_v51 = vmax.bf16 %v3884_v41, %v470_v3  ;;  %v5141_v12 = vmax.bf16 %v3884_v41, %v471_v53  ;;  %v5144_v4 = vmax.bf16 %v3884_v41, %v472_v61 }
 0x18f   : > { %v2527_v46 = vrot.slane %v2526_v21, 4  ;;  %v2962_v5 = vsel %vm4079_vm4, %v3696_v40, %v2961_v29  ;;  %v2963_v28 = vrot.slane %v2961_v29, 4  ;;  %v572_v19 = vmul.bf16 %v4041_v11, %v4823_v55 }
 0x190   : > { %v2522_v9 = vsel %vm4102_vm5, %v2517_v54, %v2521_v25  ;;  %v573_v35 = vmul.bf16 %v4041_v11, %v4828_v6  ;;  %v629_v44 = vmul.bf16 %v4057_v20, %v4823_v55  ;;  %v630_v33 = vmul.bf16 %v4057_v20, %v4828_v6 }
 0x191   : > { %v2532_v10 = vsel %vm4102_vm5, %v2527_v46, %v2531_v59  ;;  %v2793_v43 = vadd.bf16 %v2522_v9, %v2286_v62  ;;  %v2965_v48 = vsel %vm4079_vm4, %v2963_v28, %v2964_v63  ;;  %v631_v31 = vmul.bf16 %v4057_v20, %v4831_v45 }
 0x192   : > { %v2794_v52 = vadd.bf16 %v2532_v10, %v2287_v18  ;;  %v975_v38 = vshrl.u32 %v629_v44, 16  ;;  %v978_v49 = vshll.u32 %v629_v44, 16  ;;  %v984_v58 = vshll.u32 %v630_v33, 16 }
 0x193   : > { %v3073_v25 = vadd.bf16 %v2962_v5, %v2793_v43  ;;  %v988_v39 = vshrl.u32 %v630_v33, 16  ;;  %v994_v3 = vshll.u32 %v631_v31, 16  ;;  %v1136_v26 = vmul.bf16 %v4044_v13, %v4823_v55 }
 0x194   : > { %v3074_v42 = vadd.bf16 %v2965_v48, %v2794_v52  ;;  %v977_v27 = vrot.slane %v975_v38, 4  ;;  %v980_v47 = vrot.slane %v978_v49, 5  ;;  %v986_v53 = vrot.slane %v984_v58, 5 }
 0x195   : > { %v990_v61 = vrot.slane %v988_v39, 4  ;;  %v996_v62 = vrot.slane %v994_v3, 5  ;;  %v1137_v57 = vmul.bf16 %v4044_v13, %v4828_v6  ;;  %v1138_v59 = vmul.bf16 %v4044_v13, %v4831_v45 }
 0x196   : > { %v3713_v40 = vcombine.low %v3073_v25, %v3074_v42  ;;  %v981_v18 = vor.u32 %v980_v47, %v977_v27  ;;  %v3666_v21 = vrot.slane %v1136_v26, 9  ;;  %v1408_v29 = vmul.bf16 %v4046_v14, %v4985_v50 }
 0x197   : > { %v991_v63 = vor.u32 %v990_v61, %v986_v53  ;;  %v1293_v55 = vrot.slane %v1137_v57, 5  ;;  %v1296_v54 = vrot.slane %v1138_v59, 5  ;;  %v1409_v46 = vmul.bf16 %v4046_v14, %v4990_v7 }
 0x198   : > { %3789 = vmatprep.mubr.bf16.mxu0 %v3713_v40  ;;  %v982_v5 = vrot.slane %v981_v18, 4  ;;  %v1497_v6 = vmul.bf16 %v4085_v37, %v4985_v50  ;;  %v1498_v45 = vmul.bf16 %v4085_v37, %v4990_v7  ;;  %v1499_v28 = vmul.bf16 %v4085_v37, %v4993_v60 }
 0x199   : > { %v992_v9 = vrot.slane %v991_v63, 4  ;;  %v1294_v44 = vsel %vm4079_vm4, %v3666_v21, %v1293_v55  ;;  %v1295_v33 = vrot.slane %v1293_v55, 4  ;;  %v2001_v10 = vmul.bf16 %v4049_v16, %v4985_v50 }
 0x19a   : > { %v987_v43 = vsel %vm4102_vm5, %v982_v5, %v986_v53  ;;  %v1840_v48 = vshrl.u32 %v1497_v6, 16  ;;  %v1843_v31 = vshll.u32 %v1497_v6, 16  ;;  %v1849_v52 = vshll.u32 %v1498_v45, 16 }
 0x19b   : > { %v997_v38 = vsel %vm4102_vm5, %v992_v9, %v996_v62  ;;  %v1082_v49 = vadd.bf16 %v987_v43, %v572_v19  ;;  %v1297_v58 = vsel %vm4079_vm4, %v1295_v33, %v1296_v54  ;;  %v1853_v25 = vshrl.u32 %v1498_v45, 16 }
 0x19c   : > { %v1083_v39 = vadd.bf16 %v997_v38, %v573_v35  ;;  %v1842_v3 = vrot.slane %v1840_v48, 4  ;;  %v1845_v26 = vrot.slane %v1843_v31, 5  ;;  %v1851_v42 = vrot.slane %v1849_v52, 5 }
 0x19d   : > { %v1365_v27 = vadd.bf16 %v1294_v44, %v1082_v49  ;;  %v1855_v47 = vrot.slane %v1853_v25, 4  ;;  %v1859_v61 = vshll.u32 %v1499_v28, 16  ;;  %v2002_v53 = vmul.bf16 %v4049_v16, %v4990_v7 }
 0x19e   : > { %v1366_v57 = vadd.bf16 %v1297_v58, %v1083_v39  ;;  %v1846_v59 = vor.u32 %v1845_v26, %v1842_v3  ;;  %v2003_v62 = vmul.bf16 %v4049_v16, %v4993_v60  ;;  %v3685_v19 = vrot.slane %v2001_v10, 9 }
 0x19f   : > { %v1440_v40 = vadd.bf16 %v1408_v29, %v1365_v27  ;;  %v1856_v18 = vor.u32 %v1855_v47, %v1851_v42  ;;  %v1861_v21 = vrot.slane %v1859_v61, 5  ;;  %v2155_v63 = vrot.slane %v2002_v53, 5 }
 0x1a0   : > { %v1441_v35 = vadd.bf16 %v1409_v46, %v1366_v57  ;;  %v1847_v55 = vrot.slane %v1846_v59, 4  ;;  %v2158_v54 = vrot.slane %v2003_v62, 5  ;;  %v2270_v5 = vmul.bf16 %v4051_v17, %v5138_v51 }
 0x1a1   : > { %v1857_v6 = vrot.slane %v1856_v18, 4  ;;  %v2156_v45 = vsel %vm4079_vm4, %v3685_v19, %v2155_v63  ;;  %v2157_v28 = vrot.slane %v2155_v63, 4  ;;  %v2271_v9 = vmul.bf16 %v4051_v17, %v5141_v12 }
 0x1a2   : > { %v1852_v29 = vsel %vm4102_vm5, %v1847_v55, %v1851_v42  ;;  %v2359_v44 = vmul.bf16 %v4157_v0, %v5138_v51  ;;  %v2360_v46 = vmul.bf16 %v4157_v0, %v5141_v12  ;;  %v2361_v33 = vmul.bf16 %v4157_v0, %v5144_v4 }
 0x1a3   : > { %v1862_v10 = vsel %vm4102_vm5, %v1857_v6, %v1861_v21  ;;  %v1947_v43 = vadd.bf16 %v1852_v29, %v1440_v40  ;;  %v2159_v48 = vsel %vm4079_vm4, %v2157_v28, %v2158_v54  ;;  %v2863_v31 = vmul.bf16 %v4152_v22, %v5138_v51 }
 0x1a4   : > { %v1948_v52 = vadd.bf16 %v1862_v10, %v1441_v35  ;;  %v2702_v38 = vshrl.u32 %v2359_v44, 16  ;;  %v2705_v49 = vshll.u32 %v2359_v44, 16  ;;  %v2711_v58 = vshll.u32 %v2360_v46, 16 }
 0x1a5   : > { %v2227_v25 = vadd.bf16 %v2156_v45, %v1947_v43  ;;  %v2715_v39 = vshrl.u32 %v2360_v46, 16  ;;  %v2721_v3 = vshll.u32 %v2361_v33, 16  ;;  %v2864_v26 = vmul.bf16 %v4152_v22, %v5141_v12 }
 0x1a6   : > { %v2228_v42 = vadd.bf16 %v2159_v48, %v1948_v52  ;;  %v2704_v27 = vrot.slane %v2702_v38, 4  ;;  %v2707_v47 = vrot.slane %v2705_v49, 5  ;;  %v2713_v61 = vrot.slane %v2711_v58, 5 }
 0x1a7   : > { %v2302_v53 = vadd.bf16 %v2270_v5, %v2227_v25  ;;  %v2717_v57 = vrot.slane %v2715_v39, 4  ;;  %v2723_v59 = vrot.slane %v2721_v3, 5  ;;  %v2865_v62 = vmul.bf16 %v4152_v22, %v5144_v4 }
 0x1a8   : > { %v2303_v19 = vadd.bf16 %v2271_v9, %v2228_v42  ;;  %v2708_v40 = vor.u32 %v2707_v47, %v2704_v27  ;;  %v3704_v18 = vrot.slane %v2863_v31, 9  ;;  %v3017_v21 = vrot.slane %v2864_v26, 5 }
 0x1a9   : > { %v2718_v63 = vor.u32 %v2717_v57, %v2713_v61  ;;  %v3020_v35 = vrot.slane %v2865_v62, 5  ;;  %v558_v55 = vmul.bf16 %v4041_v11, %v4904_v56  ;;  %v559_v54 = vmul.bf16 %v4041_v11, %v4907_v36 }
 0x1aa   : > { %v2709_v6 = vrot.slane %v2708_v40, 4  ;;  %v3018_v5 = vsel %vm4079_vm4, %v3704_v18, %v3017_v21  ;;  %v3019_v45 = vrot.slane %v3017_v21, 4  ;;  %v608_v28 = vmul.bf16 %v4057_v20, %v4904_v56 }
 0x1ab   : > { %v2719_v9 = vrot.slane %v2718_v63, 4  ;;  %v609_v29 = vmul.bf16 %v4057_v20, %v4907_v36  ;;  %v610_v44 = vmul.bf16 %v4057_v20, %v4910_v32  ;;  %v1115_v46 = vmul.bf16 %v4044_v13, %v4904_v56 }
 0x1ac   : > { %v2714_v33 = vsel %vm4102_vm5, %v2709_v6, %v2713_v61  ;;  %v3021_v10 = vsel %vm4079_vm4, %v3019_v45, %v3020_v35  ;;  %v807_v43 = vshrl.u32 %v608_v28, 16  ;;  %v810_v48 = vshll.u32 %v608_v28, 16 }
 0x1ad   : > { %v2724_v31 = vsel %vm4102_vm5, %v2719_v9, %v2723_v59  ;;  %v2809_v52 = vadd.bf16 %v2714_v33, %v2302_v53  ;;  %v816_v38 = vshll.u32 %v609_v29, 16  ;;  %v820_v49 = vshrl.u32 %v609_v29, 16 }
 0x1ae   : > { %v2810_v58 = vadd.bf16 %v2724_v31, %v2303_v19  ;;  %v809_v25 = vrot.slane %v807_v43, 4  ;;  %v812_v39 = vrot.slane %v810_v48, 5  ;;  %v826_v3 = vshll.u32 %v610_v44, 16 }
 0x1af   : > { %v3089_v26 = vadd.bf16 %v3018_v5, %v2809_v52  ;;  %v818_v56 = vrot.slane %v816_v38, 5  ;;  %v822_v42 = vrot.slane %v820_v49, 4  ;;  %v1116_v27 = vmul.bf16 %v4044_v13, %v4907_v36 }
 0x1b0   : > { %v3090_v47 = vadd.bf16 %v3021_v10, %v2810_v58  ;;  %v813_v61 = vor.u32 %v812_v39, %v809_v25  ;;  %v828_v57 = vrot.slane %v826_v3, 5  ;;  %v1117_v62 = vmul.bf16 %v4044_v13, %v4910_v32 }
 0x1b1   : > { %v823_v59 = vor.u32 %v822_v42, %v818_v56  ;;  %v3659_v53 = vrot.slane %v1115_v46, 9  ;;  %v1244_v40 = vrot.slane %v1116_v27, 5  ;;  %v1394_v19 = vmul.bf16 %v4046_v14, %v4027_v1 }
 0x1b2   : > { %v3721_v18 = vcombine.low %v3089_v26, %v3090_v47  ;;  %v814_v21 = vrot.slane %v813_v61, 4  ;;  %v1247_v63 = vrot.slane %v1117_v62, 5  ;;  %v1395_v35 = vmul.bf16 %v4046_v14, %v4030_v2 }
 0x1b3   : > { %v824_v6 = vrot.slane %v823_v59, 4  ;;  %v1245_v36 = vsel %vm4079_vm4, %v3659_v53, %v1244_v40  ;;  %v1246_v5 = vrot.slane %v1244_v40, 4  ;;  %v1476_v32 = vmul.bf16 %v4085_v37, %v4027_v1 }
 0x1b4   : > { %3805 = vmatprep.mubr.bf16.mxu1 %v3721_v18  ;;  %v819_v45 = vsel %vm4102_vm5, %v814_v21, %v818_v56  ;;  %v1477_v28 = vmul.bf16 %v4085_v37, %v4030_v2  ;;  %v1478_v9 = vmul.bf16 %v4085_v37, %v4147_v24  ;;  %v1980_v29 = vmul.bf16 %v4049_v16, %v4027_v1 }
 0x1b5   : > { %v829_v44 = vsel %vm4102_vm5, %v824_v6, %v828_v57  ;;  %v1068_v46 = vadd.bf16 %v819_v45, %v558_v55  ;;  %v1248_v33 = vsel %vm4079_vm4, %v1246_v5, %v1247_v63  ;;  %v1672_v10 = vshrl.u32 %v1476_v32, 16 }
 0x1b6   : > { %v1069_v43 = vadd.bf16 %v829_v44, %v559_v54  ;;  %v1675_v48 = vshll.u32 %v1476_v32, 16  ;;  %v1681_v31 = vshll.u32 %v1477_v28, 16  ;;  %v1685_v52 = vshrl.u32 %v1477_v28, 16 }
 0x1b7   : > { %v1351_v38 = vadd.bf16 %v1245_v36, %v1068_v46  ;;  %v1674_v49 = vrot.slane %v1672_v10, 4  ;;  %v1691_v58 = vshll.u32 %v1478_v9, 16  ;;  %v1981_v25 = vmul.bf16 %v4049_v16, %v4030_v2 }
 0x1b8   : > { %v1352_v39 = vadd.bf16 %v1248_v33, %v1069_v43  ;;  %v1677_v1 = vrot.slane %v1675_v48, 5  ;;  %v1683_v3 = vrot.slane %v1681_v31, 5  ;;  %v1687_v26 = vrot.slane %v1685_v52, 4 }
 0x1b9   : > { %v1426_v56 = vadd.bf16 %v1394_v19, %v1351_v38  ;;  %v1693_v55 = vrot.slane %v1691_v58, 5  ;;  %v1982_v42 = vmul.bf16 %v4049_v16, %v4147_v24  ;;  %v3678_v27 = vrot.slane %v1980_v29, 9  ;;  %v474_v58 = vld [vmem:[#allocation2 + $0xd0] sm:$0xf] }
 0x1ba   : > { %v1427_v54 = vadd.bf16 %v1395_v35, %v1352_v39  ;;  %v1678_v47 = vor.u32 %v1677_v1, %v1674_v49  ;;  %v1688_v61 = vor.u32 %v1687_v26, %v1683_v3  ;;  %v2106_v57 = vrot.slane %v1981_v25, 5  ;;  %v473_v49 = vld [vmem:[#allocation2 + $0xcc] sm:$0xf] }
 0x1bb   : > { %v2109_v62 = vrot.slane %v1982_v42, 5  ;;  %v2256_v59 = vmul.bf16 %v4051_v17, %v4150_v15  ;;  %v2257_v2 = vmul.bf16 %v4051_v17, %v4155_v34  ;;  %v2338_v53 = vmul.bf16 %v4157_v0, %v4150_v15 }
 0x1bc   : > { %v1679_v40 = vrot.slane %v1678_v47, 4  ;;  %v1689_v19 = vrot.slane %v1688_v61, 4  ;;  %v2107_v24 = vsel %vm4079_vm4, %v3678_v27, %v2106_v57  ;;  %v2108_v18 = vrot.slane %v2106_v57, 4 }
 0x1bd   : > { %v2339_v21 = vmul.bf16 %v4157_v0, %v4155_v34  ;;  %v2340_v63 = vmul.bf16 %v4157_v0, %v4160_v23  ;;  %v2534_v35 = vshrl.u32 %v2338_v53, 16  ;;  %v2537_v6 = vshll.u32 %v2338_v53, 16 }
 0x1be   : > { %v1684_v36 = vsel %vm4102_vm5, %v1679_v40, %v1683_v3  ;;  %v1694_v5 = vsel %vm4102_vm5, %v1689_v19, %v1693_v55  ;;  %v2110_v32 = vsel %vm4079_vm4, %v2108_v18, %v2109_v62  ;;  %v2842_v45 = vmul.bf16 %v4152_v22, %v4150_v15  ;;  %v475_v3 = vld [vmem:[#allocation2 + $0xd4] sm:$0xf]  ;;  %v5307_v19 = vpop.f32.mrf.mxu0 }
 0x1bf   : > { %v1933_v28 = vadd.bf16 %v1684_v36, %v1426_v56  ;;  %v1934_v9 = vadd.bf16 %v1694_v5, %v1427_v54  ;;  %v2536_v29 = vrot.slane %v2534_v35, 4  ;;  %v2539_v44 = vrot.slane %v2537_v6, 5 }
 0x1c0   : > { %v2543_v46 = vshll.u32 %v2339_v21, 16  ;;  %v2547_v33 = vshrl.u32 %v2339_v21, 16  ;;  %v2553_v10 = vshll.u32 %v2340_v63, 16  ;;  %v2843_v43 = vmul.bf16 %v4152_v22, %v4155_v34  ;;  %v5317_v63 = vpop.f32.mrf.mxu1 }
 0x1c1   : > { %v2213_v48 = vadd.bf16 %v2107_v24, %v1933_v28  ;;  %v2214_v31 = vadd.bf16 %v2110_v32, %v1934_v9  ;;  %v2540_v52 = vor.u32 %v2539_v44, %v2536_v29  ;;  %v2844_v38 = vmul.bf16 %v4152_v22, %v4160_v23 }
 0x1c2   : > { %v2545_v25 = vrot.slane %v2543_v46, 5  ;;  %v2549_v15 = vrot.slane %v2547_v33, 4  ;;  %v2555_v39 = vrot.slane %v2553_v10, 5  ;;  %v3697_v1 = vrot.slane %v2842_v45, 9  ;;  %v5327_v46 = vpop.f32.mrf.mxu0 }
 0x1c3   : > { %v2288_v26 = vadd.bf16 %v2256_v59, %v2213_v48  ;;  %v2289_v56 = vadd.bf16 %v2257_v2, %v2214_v31  ;;  %v2541_v55 = vrot.slane %v2540_v52, 4  ;;  %v2968_v42 = vrot.slane %v2843_v43, 5 }
 0x1c4   : > { %v2550_v27 = vor.u32 %v2549_v15, %v2545_v25  ;;  %v2971_v54 = vrot.slane %v2844_v38, 5  ;;  %v5291_v34 = vmax.bf16 %v3884_v41, %v473_v49  ;;  %v5294_v47 = vmax.bf16 %v3884_v41, %v474_v58 }
 0x1c5   : > { %v2546_v23 = vsel %vm4102_vm5, %v2541_v55, %v2545_v25  ;;  %v2969_v61 = vsel %vm4079_vm4, %v3697_v1, %v2968_v42  ;;  %v2970_v57 = vrot.slane %v2968_v42, 4  ;;  %v5301_v62 = vmax.bf16 %v3884_v41, %v475_v3  ;;  %v5339_v3 = vpop.f32.mrf.mxu0 }
 0x1c6   : > { %v2551_v59 = vrot.slane %v2550_v27, 4  ;;  %v2795_v2 = vadd.bf16 %v2546_v23, %v2288_v26  ;;  %v574_v53 = vmul.bf16 %v4041_v11, %v4985_v50  ;;  %v575_v40 = vmul.bf16 %v4041_v11, %v4990_v7 }
 0x1c7   : > { %v2972_v24 = vsel %vm4079_vm4, %v2970_v57, %v2971_v54  ;;  %v632_v18 = vmul.bf16 %v4057_v20, %v4985_v50  ;;  %v633_v41 = vmul.bf16 %v4057_v20, %v4990_v7  ;;  %v634_v21 = vmul.bf16 %v4057_v20, %v4993_v60 }
 0x1c8   : > { %v2556_v35 = vsel %vm4102_vm5, %v2551_v59, %v2555_v39  ;;  %v3075_v11 = vadd.bf16 %v2969_v61, %v2795_v2  ;;  %v1139_v6 = vmul.bf16 %v4044_v13, %v4985_v50  ;;  %v1140_v36 = vmul.bf16 %v4044_v13, %v4990_v7  ;;  %v5329_v50 = vpop.f32.mrf.mxu1 }
 0x1c9   : > { %v2796_v5 = vadd.bf16 %v2556_v35, %v2289_v56  ;;  %v999_v32 = vshrl.u32 %v632_v18, 16  ;;  %v1002_v45 = vshll.u32 %v632_v18, 16  ;;  %v1008_v28 = vshll.u32 %v633_v41, 16 }
 0x1ca   : > { %v1012_v9 = vshrl.u32 %v633_v41, 16  ;;  %v1018_v29 = vshll.u32 %v634_v21, 16  ;;  %v1141_v20 = vmul.bf16 %v4044_v13, %v4993_v60  ;;  %v3667_v44 = vrot.slane %v1139_v6, 9  ;;  %v5347_v42 = vpop.f32.mrf.mxu1  ;;  %v5355_v21 = vpop.f32.mrf.mxu0 }
 0x1cb   : > { %v3076_v33 = vadd.bf16 %v2972_v24, %v2796_v5  ;;  %v1001_v10 = vrot.slane %v999_v32, 4  ;;  %v1004_v43 = vrot.slane %v1002_v45, 5  ;;  %v1010_v48 = vrot.slane %v1008_v28, 5 }
 0x1cc   : > { %v1014_v31 = vrot.slane %v1012_v9, 4  ;;  %v1020_v7 = vrot.slane %v1018_v29, 5  ;;  %v1300_v52 = vrot.slane %v1140_v36, 5  ;;  %v1303_v38 = vrot.slane %v1141_v20, 5  ;;  %v5357_v5 = vpop.f32.mrf.mxu1 }
 0x1cd   : > { %v3714_v49 = vcombine.low %v3075_v11, %v3076_v33  ;;  %v1005_v58 = vor.u32 %v1004_v43, %v1001_v10  ;;  %v1410_v25 = vmul.bf16 %v4046_v14, %v5138_v51  ;;  %v1411_v13 = vmul.bf16 %v4046_v14, %v5141_v12 }
 0x1ce   : > { %v1015_v60 = vor.u32 %v1014_v31, %v1010_v48  ;;  %v1301_v15 = vsel %vm4079_vm4, %v3667_v44, %v1300_v52  ;;  %v1302_v39 = vrot.slane %v1300_v52, 4  ;;  %v1500_v1 = vmul.bf16 %v4085_v37, %v5138_v51 }
 0x1cf   : > { %3790 = vmatmul.mubr.bf16.gmra.mxu0 %v3714_v49  ;;  %v1006_v26 = vrot.slane %v1005_v58, 4  ;;  %v1501_v56 = vmul.bf16 %v4085_v37, %v5141_v12  ;;  %v1502_v55 = vmul.bf16 %v4085_v37, %v5144_v4  ;;  %v2004_v14 = vmul.bf16 %v4049_v16, %v5138_v51 }
 0x1d0   : > { %v1016_v27 = vrot.slane %v1015_v60, 4  ;;  %v1304_v54 = vsel %vm4079_vm4, %v1302_v39, %v1303_v38  ;;  %v1864_v23 = vshrl.u32 %v1500_v1, 16  ;;  %v1867_v61 = vshll.u32 %v1500_v1, 16 }
 0x1d1   : > { %v1011_v57 = vsel %vm4102_vm5, %v1006_v26, %v1010_v48  ;;  %v1873_v59 = vshll.u32 %v1501_v56, 16  ;;  %v1877_v2 = vshrl.u32 %v1501_v56, 16  ;;  %v1883_v24 = vshll.u32 %v1502_v55, 16  ;;  %v5365_v48 = vpop.f32.mrf.mxu0 }
 0x1d2   : > { %v1021_v37 = vsel %vm4102_vm5, %v1016_v27, %v1020_v7  ;;  %v1084_v18 = vadd.bf16 %v1011_v57, %v574_v53  ;;  %v1866_v41 = vrot.slane %v1864_v23, 4  ;;  %v1869_v51 = vrot.slane %v1867_v61, 5 }
 0x1d3   : > { %v1085_v35 = vadd.bf16 %v1021_v37, %v575_v40  ;;  %v1875_v11 = vrot.slane %v1873_v59, 5  ;;  %v1879_v6 = vrot.slane %v1877_v2, 4  ;;  %v1885_v36 = vrot.slane %v1883_v24, 5  ;;  %v3310_v56 = vpop.f32.mrf.mxu0 }
 0x1d4   : > { %v1367_v32 = vadd.bf16 %v1301_v15, %v1084_v18  ;;  %v1870_v45 = vor.u32 %v1869_v51, %v1866_v41  ;;  %v2005_v28 = vmul.bf16 %v4049_v16, %v5141_v12  ;;  %v2006_v9 = vmul.bf16 %v4049_v16, %v5144_v4  ;;  %v5371_v4 = vpop.f32.mrf.mxu1 }
 0x1d5   : > { %v1368_v29 = vadd.bf16 %v1304_v54, %v1085_v35  ;;  %v1880_v53 = vor.u32 %v1879_v6, %v1875_v11  ;;  %v3686_v20 = vrot.slane %v2004_v14, 9  ;;  %v2272_v44 = vmul.bf16 %v4051_v17, %v5291_v34 }
 0x1d6   : > { %v1442_v40 = vadd.bf16 %v1410_v25, %v1367_v32  ;;  %v1871_v33 = vrot.slane %v1870_v45, 4  ;;  %v2162_v10 = vrot.slane %v2005_v28, 5  ;;  %v2165_v43 = vrot.slane %v2006_v9, 5  ;;  %v3374_v23 = vpop.f32.mrf.mxu1 }
 0x1d7   : > { %v1443_v31 = vadd.bf16 %v1411_v13, %v1368_v29  ;;  %v1881_v7 = vrot.slane %v1880_v53, 4  ;;  %v2273_v12 = vmul.bf16 %v4051_v17, %v5294_v47  ;;  %v2362_v16 = vmul.bf16 %v4157_v0, %v5291_v34 }
 0x1d8   : > { %v1876_v52 = vsel %vm4102_vm5, %v1871_v33, %v1875_v11  ;;  %v2163_v38 = vsel %vm4079_vm4, %v3686_v20, %v2162_v10  ;;  %v2164_v49 = vrot.slane %v2162_v10, 4  ;;  %v2363_v58 = vmul.bf16 %v4157_v0, %v5294_v47 }
 0x1d9   : > { %v1886_v25 = vsel %vm4102_vm5, %v1881_v7, %v1885_v36  ;;  %v1949_v13 = vadd.bf16 %v1876_v52, %v1442_v40  ;;  %v2364_v17 = vmul.bf16 %v4157_v0, %v5301_v62  ;;  %v2726_v60 = vshrl.u32 %v2362_v16, 16  ;;  %v5390_v0 = vld [vmem:[%s5490_s3] ss:$0 sm:$0xff] }
 0x1da   : > { %v1950_v15 = vadd.bf16 %v1886_v25, %v1443_v31  ;;  %v2166_v39 = vsel %vm4079_vm4, %v2164_v49, %v2165_v43  ;;  %v2729_v1 = vshll.u32 %v2362_v16, 16  ;;  %v2735_v26 = vshll.u32 %v2363_v58, 16 }
 0x1db   : > { %v2229_v55 = vadd.bf16 %v2163_v38, %v1949_v13  ;;  %v2728_v14 = vrot.slane %v2726_v60, 4  ;;  %v2739_v27 = vshrl.u32 %v2363_v58, 16  ;;  %v2745_v54 = vshll.u32 %v2364_v17, 16 }
 0x1dc   : > { %v2230_v61 = vadd.bf16 %v2166_v39, %v1950_v15  ;;  %v2731_v57 = vrot.slane %v2729_v1, 5  ;;  %v2737_v59 = vrot.slane %v2735_v26, 5  ;;  %v2866_v2 = vmul.bf16 %v4152_v22, %v5291_v34  ;;  %v3784_v34 = vpop.f32.mrf.mxu0 }
 0x1dd   : > { %v2304_v24 = vadd.bf16 %v2272_v44, %v2229_v55  ;;  %v2741_v37 = vrot.slane %v2739_v27, 4  ;;  %v2747_v18 = vrot.slane %v2745_v54, 5  ;;  %v2867_v41 = vmul.bf16 %v4152_v22, %v5294_v47  ;;  %v3800_v47 = vpop.f32.mrf.mxu1 }
 0x1de   : > { %v2305_v51 = vadd.bf16 %v2273_v12, %v2230_v61  ;;  %v2732_v35 = vor.u32 %v2731_v57, %v2728_v14  ;;  %v2868_v11 = vmul.bf16 %v4152_v22, %v5301_v62  ;;  %v3705_v6 = vrot.slane %v2866_v2, 9  ;;  %v3313_v33 = vpop.f32.mrf.mxu0 }
 0x1df   : > { %v2742_v36 = vor.u32 %v2741_v37, %v2737_v59  ;;  %v3024_v32 = vrot.slane %v2867_v41, 5  ;;  %v3303_v45 = vadd.f32 %v5307_v19, %v5390_v0  ;;  %v3367_v28 = vadd.f32 %v5317_v63, %v5390_v0  ;;  %v3377_v31 = vpop.f32.mrf.mxu1 }
 0x1e0   : > { %v2733_v9 = vrot.slane %v2732_v35, 4  ;;  %v3027_v29 = vrot.slane %v2868_v11, 5  ;;  %v3295_v53 = vadd.f32 %v5390_v0, %v5327_v46  ;;  %v3359_v22 = vadd.f32 %v5390_v0, %v5329_v50 }
 0x1e1   : > { %v2743_v62 = vrot.slane %v2742_v36, 4  ;;  %v3025_v20 = vsel %vm4079_vm4, %v3705_v6, %v3024_v32  ;;  %v3026_v44 = vrot.slane %v3024_v32, 4  ;;  %3423 = vst [vmem:[%s3939_s26 + $0x10] sm:$0xff] %v3303_v45  ;;  %3439 = vst [vmem:[%s3939_s26 + $0x90] sm:$0xff] %v3367_v28  ;;  %v3306_v19 = vadd.f32 %v5339_v3, %v5390_v0 }
 0x1e2   : > { %v2738_v63 = vsel %vm4102_vm5, %v2733_v9, %v2737_v59  ;;  %3421 = vst [vmem:[%s3939_s26] sm:$0xff] %v3295_v53  ;;  %3437 = vst [vmem:[%s3939_s26 + $0x80] sm:$0xff] %v3359_v22  ;;  %v3370_v46 = vadd.f32 %v5347_v42, %v5390_v0  ;;  %v3298_v50 = vadd.f32 %v5390_v0, %v5355_v21 }
 0x1e3   : > { %v3362_v40 = vadd.f32 %v5390_v0, %v5357_v5  ;;  %v2748_v3 = vsel %vm4102_vm5, %v2743_v62, %v2747_v18  ;;  %v2811_v10 = vadd.bf16 %v2738_v63, %v2304_v24  ;;  %v3028_v43 = vsel %vm4079_vm4, %v3026_v44, %v3027_v29  ;;  %3424 = vst [vmem:[%s3939_s26 + $0x18] sm:$0xff] %v3306_v19 }
 0x1e4   : > { %v3319_v42 = vadd.f32 %v5365_v48, %v5390_v0  ;;  %v2812_v21 = vadd.bf16 %v2748_v3, %v2305_v51  ;;  %3440 = vst [vmem:[%s3939_s26 + $0x98] sm:$0xff] %v3370_v46  ;;  %3422 = vst [vmem:[%s3939_s26 + $0x8] sm:$0xff] %v3298_v50  ;;  %v3383_v8 = vadd.f32 %v5371_v4, %v5390_v0 }
 0x1e5   : > { %3438 = vst [vmem:[%s3939_s26 + $0x88] sm:$0xff] %v3362_v40  ;;  %v3311_v30 = vadd.f32 %v5390_v0, %v3310_v56  ;;  %v3375_v5 = vadd.f32 %v5390_v0, %v3374_v23  ;;  %v3091_v7 = vadd.bf16 %v3025_v20, %v2811_v10  ;;  %v3322_v48 = vadd.f32 %v3784_v34, %v5390_v0 }
 0x1e6   : > { %3427 = vst [vmem:[%s3939_s26 + $0x30] sm:$0xff] %v3319_v42  ;;  %v3386_v12 = vadd.f32 %v3800_v47, %v5390_v0  ;;  %v3314_v16 = vadd.f32 %v5390_v0, %v3313_v33  ;;  %v3092_v52 = vadd.bf16 %v3028_v43, %v2812_v21  ;;  %3443 = vst [vmem:[%s3939_s26 + $0xb0] sm:$0xff] %v3383_v8 }
 0x1e7   : > { %3425 = vst [vmem:[%s3939_s26 + $0x20] sm:$0xff] %v3311_v30  ;;  %3441 = vst [vmem:[%s3939_s26 + $0xa0] sm:$0xff] %v3375_v5  ;;  %v3378_v4 = vadd.f32 %v5390_v0, %v3377_v31 }
 0x1e8   : > { %3428 = vst [vmem:[%s3939_s26 + $0x38] sm:$0xff] %v3322_v48  ;;  %3444 = vst [vmem:[%s3939_s26 + $0xb8] sm:$0xff] %v3386_v12  ;;  %v3722_v38 = vcombine.low %v3091_v7, %v3092_v52 }
 0x1e9   : > { %3426 = vst [vmem:[%s3939_s26 + $0x28] sm:$0xff] %v3314_v16  ;;  %3442 = vst [vmem:[%s3939_s26 + $0xa8] sm:$0xff] %v3378_v4 }
 0x1ea   : > { %3806 = vmatmul.mubr.bf16.gmra.mxu1 %v3722_v38 }
 0x222   : > { %v3787_v49 = vpop.f32.mrf.mxu0 }
 0x223   : > { %v3335_v58 = vadd.f32 %v3787_v49, %v5390_v0 }
 0x224   : > { %v3326_v25 = vpop.f32.mrf.mxu0 }
 0x225   : > { %3431 = vst [vmem:[%s3939_s26 + $0x50] sm:$0xff] %v3335_v58  ;;  %v3327_v13 = vadd.f32 %v5390_v0, %v3326_v25 }
 0x226   : > { %v3788_v17 = vpop.f32.mrf.mxu0 }
 0x227   : > { %3429 = vst [vmem:[%s3939_s26 + $0x40] sm:$0xff] %v3327_v13  ;;  %v3338_v60 = vadd.f32 %v3788_v17, %v5390_v0 }
 0x228   : > { %v3329_v15 = vpop.f32.mrf.mxu0 }
 0x229   : > { %3432 = vst [vmem:[%s3939_s26 + $0x58] sm:$0xff] %v3338_v60  ;;  %v3330_v39 = vadd.f32 %v5390_v0, %v3329_v15 }
 0x22b   : > { %3430 = vst [vmem:[%s3939_s26 + $0x48] sm:$0xff] %v3330_v39 }
 0x23e   : > { %v3803_v1 = vpop.f32.mrf.mxu1 }
 0x23f   : > { %v3399_v26 = vadd.f32 %v3803_v1, %v5390_v0 }
 0x240   : > { %v3390_v56 = vpop.f32.mrf.mxu1 }
 0x241   : > { %3447 = vst [vmem:[%s3939_s26 + $0xd0] sm:$0xff] %v3399_v26  ;;  %v3391_v55 = vadd.f32 %v5390_v0, %v3390_v56 }
 0x242   : > { %v3804_v14 = vpop.f32.mrf.mxu1 }
 0x243   : > { %3445 = vst [vmem:[%s3939_s26 + $0xc0] sm:$0xff] %v3391_v55  ;;  %v3402_v27 = vadd.f32 %v3804_v14, %v5390_v0 }
 0x244   : > { %v3393_v54 = vpop.f32.mrf.mxu1 }
 0x245   : > { %3448 = vst [vmem:[%s3939_s26 + $0xd8] sm:$0xff] %v3402_v27  ;;  %v3394_v23 = vadd.f32 %v5390_v0, %v3393_v54 }
 0x247   : > { %3446 = vst [vmem:[%s3939_s26 + $0xc8] sm:$0xff] %v3394_v23 }
 0x28f   : > { %v3791_v61 = vpop.f32.mrf.mxu0 }
 0x290   : > { %v3351_v57 = vadd.f32 %v3791_v61, %v5390_v0 }
 0x291   : > { %v3342_v59 = vpop.f32.mrf.mxu0 }
 0x292   : > { %3435 = vst [vmem:[%s3939_s26 + $0x70] sm:$0xff] %v3351_v57  ;;  %v3343_v2 = vadd.f32 %v5390_v0, %v3342_v59 }
 0x293   : > { %v3792_v24 = vpop.f32.mrf.mxu0 }
 0x294   : > { %3433 = vst [vmem:[%s3939_s26 + $0x60] sm:$0xff] %v3343_v2  ;;  %v3354_v37 = vadd.f32 %v3792_v24, %v5390_v0 }
 0x295   : > { %v3345_v18 = vpop.f32.mrf.mxu0 }
 0x296   : > { %3436 = vst [vmem:[%s3939_s26 + $0x78] sm:$0xff] %v3354_v37  ;;  %v3346_v41 = vadd.f32 %v5390_v0, %v3345_v18 }
 0x298   : > { %3434 = vst [vmem:[%s3939_s26 + $0x68] sm:$0xff] %v3346_v41 }
 0x2aa   : > { %v3807_v51 = vpop.f32.mrf.mxu1 }
 0x2ab   : > { %v3415_v35 = vadd.f32 %v3807_v51, %v5390_v0 }
 0x2ac   : > { %v3406_v11 = vpop.f32.mrf.mxu1 }
 0x2ad   : > { %3451 = vst [vmem:[%s3939_s26 + $0xf0] sm:$0xff] %v3415_v35  ;;  %v3407_v6 = vadd.f32 %v5390_v0, %v3406_v11 }
 0x2ae   : > { %v3808_v34 = vpop.f32.mrf.mxu1 }
 0x2af   : > { %3449 = vst [vmem:[%s3939_s26 + $0xe0] sm:$0xff] %v3407_v6  ;;  %v3418_v36 = vadd.f32 %v3808_v34, %v5390_v0 }
 0x2b0   : > { %v3409_v32 = vpop.f32.mrf.mxu1 }
 0x2b1   : > { %3452 = vst [vmem:[%s3939_s26 + $0xf8] sm:$0xff] %v3418_v36  ;;  %v3410_v45 = vadd.f32 %v5390_v0, %v3409_v32 }
 0x2b3   : > { %3450 = vst [vmem:[%s3939_s26 + $0xe8] sm:$0xff] %v3410_v45 }
 0x2b4 PF: > { %s14_s17 = sadd.s32 1, %s3882_s17   ;;  %s5496_s15 = smov %s3878_s16 }
 0x2b5   : > { %p11_p5 = scmp.ge.s32.totalorder %s14_s17, 4   ;;  %s5497_s16 = smov %s5499_s18 }
 0x2b7   :  { %13 = sbr.rel (!%p11_p5) target bundleno = 2 (0x2), region = 160 }
 0x2bc   :  { %3488 = vsyncmov [#allocation3] }
 0x2bf   :  { %s3489_s29 = vpop.sfrf %3488 }
 0x2c0   :  { %p3733_p6 = scmp.ne.s32.totalorder %s3489_s29, 0 }
 0x2c2   :  { %3493 = shalt.err (%p3733_p6)  }
 0x2c3   :  { %3495 = vsyncmov [#allocation3 + $0x1] }
 0x2c6   :  { %s3496_s30 = vpop.sfrf %3495 }
 0x2c7   :  { %p3734_p7 = scmp.ne.s32.totalorder %s3496_s30, 0 }
 0x2c9   :  { %3500 = shalt.err (%p3734_p7)  }

</bundles_post_ra>
